<compile_context>
chip_gen: v7x
topology: tpu7x:2x2x1
jax: 0.10.0
libtpu: 0.0.40
codegen_flags: <defaults>
</compile_context>

<pallas_src>
import functools

import jax
import jax.numpy as jnp
from jax import lax
from jax.experimental import pallas as pl
from jax.experimental.pallas import tpu as pltpu

# ----------------------------- config ---------------------------------------
N_GRAPHS = 2          # graphs batched per pallas_call (grid axis, "parallel")
N_NODES = 128         # nodes per graph -> fills MXU rows (M = 128)
F_IN = 8              # input node-feature channels (irreps_in, scalars)
HIDDEN = 128          # feature_irreps_hidden (scalars) -> lane-dense
N_EDGES = 512         # edges per graph
N_BASIS = 8           # radial basis size (edge embedding)
RADIAL_HIDDEN = 128   # hidden width of the radial MLP (lane-dense)
N_CONVOLUTIONS = 2    # n_convolutions (same shared-weight ConvNetLayer)
RESNET = False        # module default
AVG_NUM_NEIGHBORS = float(N_EDGES) / float(N_NODES)


# --------------------------- fused Pallas kernel -----------------------------
def nx_convnet_kernel(x0_ref, w_lin_ref, w1_ref, wr1_ref, br1_ref, wr2_ref,
                      br2_ref, w2sc_ref, gather_ref, scatter_ref,
                      edge_emb_ref, o_ref, *, n_convolutions, resnet):
    """Input Linear + n_convolutions x (InteractionBlock + gate), one graph.

    Node features and the radial-MLP edge weights live as SSA values (vregs /
    compiler-managed VMEM temps); no explicit scratch, single output store.
    Weight refs are bf16; all accumulation and elementwise math is f32.
    """
    f32 = jnp.float32
    bf16 = jnp.bfloat16

    # ---- self.linear: irreps_in -> feature_irreps_hidden (0e only) ----------
    x = jnp.dot(x0_ref[...].astype(bf16), w_lin_ref[...],
                preferred_element_type=f32)                           # [N, H]

    # ---- radial MLP on edge embeddings (loop-invariant: shared weights) -----
    e = edge_emb_ref[...]                                             # [E, B]
    hid = jax.nn.silu(
        jnp.dot(e.astype(bf16), wr1_ref[...], preferred_element_type=f32)
        + br1_ref[...])                                               # [E, Hr]
    we = (jnp.dot(hid.astype(bf16), wr2_ref[...],
                  preferred_element_type=f32)
          + br2_ref[...])                                             # [E, H]

    # One-hot gather/scatter matrices stay f32: exact selection / exact-order
    # independent sum (modulo f32 accumulation, same as index_add).
    gather = gather_ref[...]                                          # [E, N]
    scatter = scatter_ref[...]                                        # [N, E]
    w1 = w1_ref[...]                                                  # [H, H]
    w2sc = w2sc_ref[...]                                              # [2H, H]

    # ---- n_convolutions x weight-shared ConvNetLayer ------------------------
    def conv_body(_, x):
        # InteractionBlock.linear_1
        h = jnp.dot(x.astype(bf16), w1, preferred_element_type=f32)   # [N, H]
        # gather neighbor features (gather[e, n] = 1 iff src(e) == n)
        gathered = jnp.dot(gather, h, preferred_element_type=f32)     # [E, H]
        # l=0 tensor product with edge spherical harmonics == per-edge scale
        msg = gathered * we                                           # [E, H]
        # scatter-sum to destination nodes; 1/sqrt(avg_num_neighbors) is
        # pre-folded into w2sc in the wrapper.
        agg = jnp.dot(scatter, msg, preferred_element_type=f32)       # [N, H]
        # linear_2 + self-connection fused: [agg | x] @ [w2s ; wsc], K = 2H.
        fused_in = jnp.concatenate([agg, x], axis=-1)                 # [N, 2H]
        out = jax.nn.silu(
            jnp.dot(fused_in.astype(bf16), w2sc,
                    preferred_element_type=f32))     # gate on scalars == SiLU
        if resnet:                                    # static flag
            out = out + x
        return out

    x = lax.fori_loop(0, n_convolutions, conv_body, x, unroll=True)
    o_ref[...] = x


# ----------------------------- wrapper ---------------------------------------
def nx_convnet_layers_forward(data, params):
    """Mirrors NxConvNetLayers.forward on a batched AtomicDataDict-like dict."""
    x0 = data["node_features"]                        # [G, N, F_IN]
    gather = data["gather"]                           # [G, E, N]
    scatter = data["scatter"]                         # [G, N, E]
    edge_emb = data["edge_embedding"]                 # [G, E, B]
    p = params["conv"]

    # Constant-fold the scatter normalization into linear_2's weight, then
    # stack [w2_scaled ; wsc] once so the kernel does a single K=2H matmul.
    w2_scaled = p["w2"] * jnp.float32(1.0 / (AVG_NUM_NEIGHBORS ** 0.5))
    w2sc = jnp.concatenate([w2_scaled, p["wsc"]], axis=0)     # [2H, H]

    # bf16 operands for every learned-weight matmul (halves weight DMA bytes);
    # accumulation stays f32 via preferred_element_type in the kernel.
    bf16 = jnp.bfloat16
    w_lin = params["w_lin"].astype(bf16)
    w1 = p["w1"].astype(bf16)
    wr1 = p["wr1"].astype(bf16)
    wr2 = p["wr2"].astype(bf16)
    w2sc = w2sc.astype(bf16)
    br1, br2 = p["br1"], p["br2"]                     # biases stay f32

    n_graphs = x0.shape[0]

    def per_graph(shape):
        # One graph per grid step; leading graph dim squeezed out of the Ref.
        return pl.BlockSpec((None,) + shape,
                            lambda g, _s=len(shape): (g,) + (0,) * _s)

    def shared(shape):
        # Weights: same whole-array block at every grid step (constant map).
        return pl.BlockSpec(shape, lambda g, _s=len(shape): (0,) * _s)

    kernel = functools.partial(nx_convnet_kernel,
                               n_convolutions=N_CONVOLUTIONS,
                               resnet=RESNET)

    args = (x0, w_lin, w1, wr1, br1, wr2, br2, w2sc, gather, scatter, edge_emb)
    in_specs = [
        per_graph((N_NODES, F_IN)),                   # x0
        shared((F_IN, HIDDEN)),                       # w_lin
        shared((HIDDEN, HIDDEN)),                     # w1
        shared((N_BASIS, RADIAL_HIDDEN)),             # wr1
        shared((1, RADIAL_HIDDEN)),                   # br1
        shared((RADIAL_HIDDEN, HIDDEN)),              # wr2
        shared((1, HIDDEN)),                          # br2
        shared((2 * HIDDEN, HIDDEN)),                 # w2sc
        per_graph((N_EDGES, N_NODES)),                # gather one-hot
        per_graph((N_NODES, N_EDGES)),                # scatter one-hot
        per_graph((N_EDGES, N_BASIS)),                # edge embedding
    ]

    x_out = pl.pallas_call(
        kernel,
        out_shape=jax.ShapeDtypeStruct((n_graphs, N_NODES, HIDDEN),
                                       jnp.float32),
        grid=(n_graphs,),
        in_specs=in_specs,
        out_specs=per_graph((N_NODES, HIDDEN)),
        compiler_params=pltpu.CompilerParams(
            dimension_semantics=("parallel",)),       # v7x: 2 TCs split graphs
    )(*args)

    out = dict(data)
    out["node_features"] = x_out
    return out


# ------------------------- deterministic init --------------------------------
def init_params(key):
    ks = jax.random.split(key, 6)

    def w(k, shape):
        return jax.random.normal(k, shape, jnp.float32) / jnp.sqrt(
            jnp.float32(shape[0]))

    return {
        "w_lin": w(ks[0], (F_IN, HIDDEN)),
        "conv": {
            "w1": w(ks[1], (HIDDEN, HIDDEN)),
            "wr1": w(ks[2], (N_BASIS, RADIAL_HIDDEN)),
            "br1": jnp.zeros((1, RADIAL_HIDDEN), jnp.float32),
            "wr2": w(ks[3], (RADIAL_HIDDEN, HIDDEN)),
            "br2": jnp.zeros((1, HIDDEN), jnp.float32),
            "w2": w(ks[4], (HIDDEN, HIDDEN)),
            "wsc": w(ks[5], (HIDDEN, HIDDEN)),
        },
    }


# --------------------------------- main --------------------------------------
if __name__ == "__main__":
    key = jax.random.PRNGKey(0)
    k_feat, k_edge, k_emb, k_params = jax.random.split(key, 4)

    node_features = jax.random.normal(
        k_feat, (N_GRAPHS, N_NODES, F_IN), jnp.float32)
    edge_index = jax.random.randint(
        k_edge, (N_GRAPHS, 2, N_EDGES), 0, N_NODES)
    edge_embedding = jax.random.normal(
        k_emb, (N_GRAPHS, N_EDGES, N_BASIS), jnp.float32)

    src, dst = edge_index[:, 0], edge_index[:, 1]
    gather_mat = jax.nn.one_hot(src, N_NODES, dtype=jnp.float32)     # [G,E,N]
    scatter_mat = jnp.swapaxes(
        jax.nn.one_hot(dst, N_NODES, dtype=jnp.float32), -1, -2)     # [G,N,E]

    params = init_params(k_params)
    data = {
        "node_features": node_features,
        "edge_index": edge_index,
        "edge_embedding": edge_embedding,
        "gather": gather_mat,
        "scatter": scatter_mat,
    }

    out = nx_convnet_layers_forward(data, params)
    jax.block_until_ready(out["node_features"])
    assert out["node_features"].shape == (N_GRAPHS, N_NODES, HIDDEN)
    print("KERNEL_OK")
</pallas_src>

<mosaic_0001>
module attributes {stable_mosaic.version = 11 : i64} {
  func.func @nx_convnet_kernel(%arg0: i32, %arg1: memref<1x128x8xf32, #tpu.memory_space<vmem>>, %arg2: memref<8x128xbf16, #tpu.memory_space<vmem>>, %arg3: memref<128x128xbf16, #tpu.memory_space<vmem>>, %arg4: memref<8x128xbf16, #tpu.memory_space<vmem>>, %arg5: memref<1x128xf32, #tpu.memory_space<vmem>>, %arg6: memref<128x128xbf16, #tpu.memory_space<vmem>>, %arg7: memref<1x128xf32, #tpu.memory_space<vmem>>, %arg8: memref<256x128xbf16, #tpu.memory_space<vmem>>, %arg9: memref<1x512x128xf32, #tpu.memory_space<vmem>>, %arg10: memref<1x128x512xf32, #tpu.memory_space<vmem>>, %arg11: memref<1x512x8xf32, #tpu.memory_space<vmem>>, %arg12: memref<1x128x128xf32, #tpu.memory_space<vmem>>) attributes {dimension_semantics = [#tpu.dimension_semantics<parallel>], iteration_bounds = array<i64: 2>, scalar_prefetch = 0 : i64, scratch_operands = 0 : i64, tpu.core_type = #tpu.core_type<tc>, window_params = [{transform_indices = @transform_0, window_bounds = array<i64: 1, 128, 8>}, {pipeline_mode = #tpu.pipeline_mode<synchronous>, transform_indices = @transform_1, window_bounds = array<i64: 8, 128>}, {pipeline_mode = #tpu.pipeline_mode<synchronous>, transform_indices = @transform_2, window_bounds = array<i64: 128, 128>}, {pipeline_mode = #tpu.pipeline_mode<synchronous>, transform_indices = @transform_3, window_bounds = array<i64: 8, 128>}, {pipeline_mode = #tpu.pipeline_mode<synchronous>, transform_indices = @transform_4, window_bounds = array<i64: 1, 128>}, {pipeline_mode = #tpu.pipeline_mode<synchronous>, transform_indices = @transform_5, window_bounds = array<i64: 128, 128>}, {pipeline_mode = #tpu.pipeline_mode<synchronous>, transform_indices = @transform_6, window_bounds = array<i64: 1, 128>}, {pipeline_mode = #tpu.pipeline_mode<synchronous>, transform_indices = @transform_7, window_bounds = array<i64: 256, 128>}, {transform_indices = @transform_8, window_bounds = array<i64: 1, 512, 128>}, {transform_indices = @transform_9, window_bounds = array<i64: 1, 128, 512>}, {transform_indices = @transform_10, window_bounds = array<i64: 1, 512, 8>}, {transform_indices = @transform_11, window_bounds = array<i64: 1, 128, 128>}]} {
    %c0 = arith.constant 0 : index
    %c0_0 = arith.constant 0 : index
    %c0_1 = arith.constant 0 : index
    %0 = vector.load %arg1[%c0, %c0_0, %c0_1] : memref<1x128x8xf32, #tpu.memory_space<vmem>>, vector<1x128x8xf32>
    %1 = vector.shape_cast %0 : vector<1x128x8xf32> to vector<128x8xf32>
    %2 = arith.truncf %1 : vector<128x8xf32> to vector<128x8xbf16>
    %c0_2 = arith.constant 0 : index
    %c0_3 = arith.constant 0 : index
    %3 = vector.load %arg2[%c0_2, %c0_3] : memref<8x128xbf16, #tpu.memory_space<vmem>>, vector<8x128xbf16>
    %cst = arith.constant dense<0.000000e+00> : vector<128x128xf32>
    %4 = tpu.matmul %2, %3, %cst {dimension_numbers = #tpu.dot_dimension_numbers<[1], [0], [0], [1], [0, 0, 1, 1], [], []>} : vector<128x8xbf16>, vector<8x128xbf16>, vector<128x128xf32> -> vector<128x128xf32>
    %c0_4 = arith.constant 0 : index
    %c0_5 = arith.constant 0 : index
    %c0_6 = arith.constant 0 : index
    %5 = vector.load %arg11[%c0_4, %c0_5, %c0_6] : memref<1x512x8xf32, #tpu.memory_space<vmem>>, vector<1x512x8xf32>
    %6 = vector.shape_cast %5 : vector<1x512x8xf32> to vector<512x8xf32>
    %7 = arith.truncf %6 : vector<512x8xf32> to vector<512x8xbf16>
    %c0_7 = arith.constant 0 : index
    %c0_8 = arith.constant 0 : index
    %8 = vector.load %arg4[%c0_7, %c0_8] : memref<8x128xbf16, #tpu.memory_space<vmem>>, vector<8x128xbf16>
    %cst_9 = arith.constant dense<0.000000e+00> : vector<512x128xf32>
    %9 = tpu.matmul %7, %8, %cst_9 {dimension_numbers = #tpu.dot_dimension_numbers<[1], [0], [0], [1], [0, 0, 1, 1], [], []>} : vector<512x8xbf16>, vector<8x128xbf16>, vector<512x128xf32> -> vector<512x128xf32>
    %c0_10 = arith.constant 0 : index
    %c0_11 = arith.constant 0 : index
    %10 = vector.load %arg5[%c0_10, %c0_11] : memref<1x128xf32, #tpu.memory_space<vmem>>, vector<1x128xf32>
    %11 = vector.broadcast %10 : vector<1x128xf32> to vector<512x128xf32>
    %12 = arith.addf %9, %11 : vector<512x128xf32>
    %13 = arith.negf %12 : vector<512x128xf32>
    %14 = math.exp %13 : vector<512x128xf32>
    %cst_12 = arith.constant 1.000000e+00 : f32
    %15 = vector.broadcast %cst_12 : f32 to vector<512x128xf32>
    %16 = arith.addf %15, %14 : vector<512x128xf32>
    %17 = arith.divf %15, %16 : vector<512x128xf32>
    %18 = arith.mulf %12, %17 : vector<512x128xf32>
    %19 = arith.truncf %18 : vector<512x128xf32> to vector<512x128xbf16>
    %c0_13 = arith.constant 0 : index
    %c0_14 = arith.constant 0 : index
    %20 = vector.load %arg6[%c0_13, %c0_14] : memref<128x128xbf16, #tpu.memory_space<vmem>>, vector<128x128xbf16>
    %cst_15 = arith.constant dense<0.000000e+00> : vector<512x128xf32>
    %21 = tpu.matmul %19, %20, %cst_15 {dimension_numbers = #tpu.dot_dimension_numbers<[1], [0], [0], [1], [0, 0, 1, 1], [], []>} : vector<512x128xbf16>, vector<128x128xbf16>, vector<512x128xf32> -> vector<512x128xf32>
    %c0_16 = arith.constant 0 : index
    %c0_17 = arith.constant 0 : index
    %22 = vector.load %arg7[%c0_16, %c0_17] : memref<1x128xf32, #tpu.memory_space<vmem>>, vector<1x128xf32>
    %23 = vector.broadcast %22 : vector<1x128xf32> to vector<512x128xf32>
    %24 = arith.addf %21, %23 : vector<512x128xf32>
    %c0_18 = arith.constant 0 : index
    %c0_19 = arith.constant 0 : index
    %c0_20 = arith.constant 0 : index
    %25 = vector.load %arg9[%c0_18, %c0_19, %c0_20] : memref<1x512x128xf32, #tpu.memory_space<vmem>>, vector<1x512x128xf32>
    %26 = vector.shape_cast %25 : vector<1x512x128xf32> to vector<512x128xf32>
    %c0_21 = arith.constant 0 : index
    %c0_22 = arith.constant 0 : index
    %c0_23 = arith.constant 0 : index
    %27 = vector.load %arg10[%c0_21, %c0_22, %c0_23] : memref<1x128x512xf32, #tpu.memory_space<vmem>>, vector<1x128x512xf32>
    %28 = vector.shape_cast %27 : vector<1x128x512xf32> to vector<128x512xf32>
    %c0_24 = arith.constant 0 : index
    %c0_25 = arith.constant 0 : index
    %29 = vector.load %arg3[%c0_24, %c0_25] : memref<128x128xbf16, #tpu.memory_space<vmem>>, vector<128x128xbf16>
    %c0_26 = arith.constant 0 : index
    %c0_27 = arith.constant 0 : index
    %30 = vector.load %arg8[%c0_26, %c0_27] : memref<256x128xbf16, #tpu.memory_space<vmem>>, vector<256x128xbf16>
    %c0_i32 = arith.constant 0 : i32
    %31 = arith.truncf %4 : vector<128x128xf32> to vector<128x128xbf16>
    %cst_28 = arith.constant dense<0.000000e+00> : vector<128x128xf32>
    %32 = tpu.matmul %31, %29, %cst_28 {dimension_numbers = #tpu.dot_dimension_numbers<[1], [0], [0], [1], [0, 0, 1, 1], [], []>} : vector<128x128xbf16>, vector<128x128xbf16>, vector<128x128xf32> -> vector<128x128xf32>
    %cst_29 = arith.constant dense<0.000000e+00> : vector<512x128xf32>
    %33 = tpu.matmul %26, %32, %cst_29 {dimension_numbers = #tpu.dot_dimension_numbers<[1], [0], [0], [1], [0, 0, 1, 1], [], []>} : vector<512x128xf32>, vector<128x128xf32>, vector<512x128xf32> -> vector<512x128xf32>
    %34 = arith.mulf %33, %24 : vector<512x128xf32>
    %cst_30 = arith.constant dense<0.000000e+00> : vector<128x128xf32>
    %35 = tpu.matmul %28, %34, %cst_30 {dimension_numbers = #tpu.dot_dimension_numbers<[1], [0], [0], [1], [0, 0, 1, 1], [], []>} : vector<128x512xf32>, vector<512x128xf32>, vector<128x128xf32> -> vector<128x128xf32>
    %36 = tpu.concatenate %35, %4 in 1 : vector<128x128xf32>, vector<128x128xf32> -> vector<128x256xf32>
    %37 = arith.truncf %36 : vector<128x256xf32> to vector<128x256xbf16>
    %cst_31 = arith.constant dense<0.000000e+00> : vector<128x128xf32>
    %38 = tpu.matmul %37, %30, %cst_31 {dimension_numbers = #tpu.dot_dimension_numbers<[1], [0], [0], [1], [0, 0, 1, 1], [], []>} : vector<128x256xbf16>, vector<256x128xbf16>, vector<128x128xf32> -> vector<128x128xf32>
    %39 = arith.negf %38 : vector<128x128xf32>
    %40 = math.exp %39 : vector<128x128xf32>
    %cst_32 = arith.constant 1.000000e+00 : f32
    %41 = vector.broadcast %cst_32 : f32 to vector<128x128xf32>
    %42 = arith.addf %41, %40 : vector<128x128xf32>
    %43 = arith.divf %41, %42 : vector<128x128xf32>
    %44 = arith.mulf %38, %43 : vector<128x128xf32>
    %c1_i32 = arith.constant 1 : i32
    %45 = arith.truncf %44 : vector<128x128xf32> to vector<128x128xbf16>
    %cst_33 = arith.constant dense<0.000000e+00> : vector<128x128xf32>
    %46 = tpu.matmul %45, %29, %cst_33 {dimension_numbers = #tpu.dot_dimension_numbers<[1], [0], [0], [1], [0, 0, 1, 1], [], []>} : vector<128x128xbf16>, vector<128x128xbf16>, vector<128x128xf32> -> vector<128x128xf32>
    %cst_34 = arith.constant dense<0.000000e+00> : vector<512x128xf32>
    %47 = tpu.matmul %26, %46, %cst_34 {dimension_numbers = #tpu.dot_dimension_numbers<[1], [0], [0], [1], [0, 0, 1, 1], [], []>} : vector<512x128xf32>, vector<128x128xf32>, vector<512x128xf32> -> vector<512x128xf32>
    %48 = arith.mulf %47, %24 : vector<512x128xf32>
    %cst_35 = arith.constant dense<0.000000e+00> : vector<128x128xf32>
    %49 = tpu.matmul %28, %48, %cst_35 {dimension_numbers = #tpu.dot_dimension_numbers<[1], [0], [0], [1], [0, 0, 1, 1], [], []>} : vector<128x512xf32>, vector<512x128xf32>, vector<128x128xf32> -> vector<128x128xf32>
    %50 = tpu.concatenate %49, %44 in 1 : vector<128x128xf32>, vector<128x128xf32> -> vector<128x256xf32>
    %51 = arith.truncf %50 : vector<128x256xf32> to vector<128x256xbf16>
    %cst_36 = arith.constant dense<0.000000e+00> : vector<128x128xf32>
    %52 = tpu.matmul %51, %30, %cst_36 {dimension_numbers = #tpu.dot_dimension_numbers<[1], [0], [0], [1], [0, 0, 1, 1], [], []>} : vector<128x256xbf16>, vector<256x128xbf16>, vector<128x128xf32> -> vector<128x128xf32>
    %53 = arith.negf %52 : vector<128x128xf32>
    %54 = math.exp %53 : vector<128x128xf32>
    %cst_37 = arith.constant 1.000000e+00 : f32
    %55 = vector.broadcast %cst_37 : f32 to vector<128x128xf32>
    %56 = arith.addf %55, %54 : vector<128x128xf32>
    %57 = arith.divf %55, %56 : vector<128x128xf32>
    %58 = arith.mulf %52, %57 : vector<128x128xf32>
    %c0_38 = arith.constant 0 : index
    %c0_39 = arith.constant 0 : index
    %c0_40 = arith.constant 0 : index
    %59 = vector.load %arg12[%c0_38, %c0_39, %c0_40] : memref<1x128x128xf32, #tpu.memory_space<vmem>>, vector<1x128x128xf32>
    %60 = vector.shape_cast %59 : vector<1x128x128xf32> to vector<128x128xf32>
    %61 = vector.shape_cast %58 : vector<128x128xf32> to vector<1x128x128xf32>
    tpu.vector_store %arg12[%c0_38, %c0_39, %c0_40], %61 {strides = array<i32>} : memref<1x128x128xf32, #tpu.memory_space<vmem>>, vector<1x128x128xf32>,
    return
  }
  func.func @transform_0(%arg0: i32) -> (i32, i32, i32) {
    %c0_i32 = arith.constant 0 : i32
    %c0_i32_0 = arith.constant 0 : i32
    %c0_i32_1 = arith.constant 0 : i32
    return %arg0, %c0_i32, %c0_i32_0 : i32, i32, i32
  }
  func.func @transform_1(%arg0: i32) -> (i32, i32) {
    %c0_i32 = arith.constant 0 : i32
    %c0_i32_0 = arith.constant 0 : i32
    %c0_i32_1 = arith.constant 0 : i32
    return %c0_i32, %c0_i32_0 : i32, i32
  }
  func.func @transform_2(%arg0: i32) -> (i32, i32) {
    %c0_i32 = arith.constant 0 : i32
    %c0_i32_0 = arith.constant 0 : i32
    %c0_i32_1 = arith.constant 0 : i32
    return %c0_i32, %c0_i32_0 : i32, i32
  }
  func.func @transform_3(%arg0: i32) -> (i32, i32) {
    %c0_i32 = arith.constant 0 : i32
    %c0_i32_0 = arith.constant 0 : i32
    %c0_i32_1 = arith.constant 0 : i32
    return %c0_i32, %c0_i32_0 : i32, i32
  }
  func.func @transform_4(%arg0: i32) -> (i32, i32) {
    %c0_i32 = arith.constant 0 : i32
    %c0_i32_0 = arith.constant 0 : i32
    %c0_i32_1 = arith.constant 0 : i32
    return %c0_i32, %c0_i32_0 : i32, i32
  }
  func.func @transform_5(%arg0: i32) -> (i32, i32) {
    %c0_i32 = arith.constant 0 : i32
    %c0_i32_0 = arith.constant 0 : i32
    %c0_i32_1 = arith.constant 0 : i32
    return %c0_i32, %c0_i32_0 : i32, i32
  }
  func.func @transform_6(%arg0: i32) -> (i32, i32) {
    %c0_i32 = arith.constant 0 : i32
    %c0_i32_0 = arith.constant 0 : i32
    %c0_i32_1 = arith.constant 0 : i32
    return %c0_i32, %c0_i32_0 : i32, i32
  }
  func.func @transform_7(%arg0: i32) -> (i32, i32) {
    %c0_i32 = arith.constant 0 : i32
    %c0_i32_0 = arith.constant 0 : i32
    %c0_i32_1 = arith.constant 0 : i32
    return %c0_i32, %c0_i32_0 : i32, i32
  }
  func.func @transform_8(%arg0: i32) -> (i32, i32, i32) {
    %c0_i32 = arith.constant 0 : i32
    %c0_i32_0 = arith.constant 0 : i32
    %c0_i32_1 = arith.constant 0 : i32
    return %arg0, %c0_i32, %c0_i32_0 : i32, i32, i32
  }
  func.func @transform_9(%arg0: i32) -> (i32, i32, i32) {
    %c0_i32 = arith.constant 0 : i32
    %c0_i32_0 = arith.constant 0 : i32
    %c0_i32_1 = arith.constant 0 : i32
    return %arg0, %c0_i32, %c0_i32_0 : i32, i32, i32
  }
  func.func @transform_10(%arg0: i32) -> (i32, i32, i32) {
    %c0_i32 = arith.constant 0 : i32
    %c0_i32_0 = arith.constant 0 : i32
    %c0_i32_1 = arith.constant 0 : i32
    return %arg0, %c0_i32, %c0_i32_0 : i32, i32, i32
  }
  func.func @transform_11(%arg0: i32) -> (i32, i32, i32) {
    %c0_i32 = arith.constant 0 : i32
    %c0_i32_0 = arith.constant 0 : i32
    %c0_i32_1 = arith.constant 0 : i32
    return %arg0, %c0_i32, %c0_i32_0 : i32, i32, i32
  }
}

</mosaic_0001>

<bundles_post_ra>
// kernel: tpu_custom_call.1
= control target key start
LH: loop header
LB: loop body
LE: loop exit
PB: predicated region body
PF: predicated region fallthrough
CT: control target
= control target key end

     0   :  { %16 = vsyncpa [#allocation3], 0  ;;  %s9007_s0 = inlined_call_operand.vmem [shape: f32[2,128,8], index: 0, kind: input, shape index: {}]   ;;  %s9008_s1 = inlined_call_operand.vmem [shape: bf16[8,128], index: 1, kind: input, shape index: {}]   ;;  %s9009_s2 = inlined_call_operand.vmem [shape: bf16[128,128], index: 2, kind: input, shape index: {}]   ;;  %s9010_s3 = inlined_call_operand.vmem [shape: bf16[8,128], index: 3, kind: input, shape index: {}]   ;;  %s9011_s4 = inlined_call_operand.vmem [shape: f32[1,128], index: 4, kind: input, shape index: {}]   ;;  %s9012_s5 = inlined_call_operand.vmem [shape: bf16[128,128], index: 5, kind: input, shape index: {}]   ;;  %s9013_s6 = inlined_call_operand.vmem [shape: f32[1,128], index: 6, kind: input, shape index: {}]   ;;  %s9014_s7 = inlined_call_operand.vmem [shape: bf16[256,128], index: 7, kind: input, shape index: {}]   ;;  %s9015_s8 = inlined_call_operand.vmem [shape: f32[2,512,128], index: 8, kind: input, shape index: {}]   ;;  %s9016_s9 = inlined_call_operand.hbm [shape: f32[2,128,512], index: 9, kind: input, shape index: {}]   ;;  %s9017_s10 = inlined_call_operand.vmem [shape: f32[2,512,8], index: 10, kind: input, shape index: {}]   ;;  %s9018_s11 = inlined_call_operand.hbm [shape: f32[2,128,128], index: 11, kind: output, shape index: {}]  }
   0x1   :  { %18 = vsyncpa [#allocation3 + $0x1], 0 }
   0x2   :  { %19 = vsyncpa [#allocation4], 0 }
   0x3   :  { %21 = vsyncpa [#allocation4 + $0x1], 0  ;;  %s6924_s17 = smov 0   ;;  %s6926_s18 = smov 0  }
   0x4   :  { %s6928_s19 = smov 0   ;;  %s6930_s20 = smov 0  }
   0x5 LB: > { %9080 = sst [smem:[#allocation8_spill]] %s6852_s19  ;;  %s6945_s21 = sadd.s32 4294967295, %s6856_s20   ;;  %s6856_s20 = sphi %s6930_s20, %s9252_s20   ;;  %s6852_s19 = sphi %s6928_s19, %s9249_s19   ;;  %s6848_s18 = sphi %s6926_s18, %s9251_s18   ;;  %s6844_s17 = sphi %s6924_s17, %s9250_s17  }
   0x6   : > { %s4530_s22 = sadd.s32 4294967294, %s6856_s20   ;;  %s6949_s23 = sadd.s32 1, %s6856_s20  }
   0x7   : > { %s233_s24 = sadd.s32 1, %s6852_s19  ;;  %s230_s25 = ssub.s32 %s6856_s20, %s6949_s23 }
   0x8   : > { %p240_p0 = scmp.ne.s32.totalorder %s6852_s19, %s6848_s18  ;;  %p231_p1 = scmp.eq.s32.totalorder %s230_s25, 0 }
   0x9   : > { %p241_p2 = scmp.eq.s32.totalorder %s6856_s20, 0  ;;  %p246_p3 = scmp.ne.s32.totalorder %s6848_s18, %s6844_s17 }
   0xa   : > { %p247_p4 = scmp.eq.s32.totalorder %s6945_s21, 0  ;;  %p296_p7 = scmp.eq.s32.totalorder %s6945_s21, 1 }
   0xb   : > { %s6961_s26 = scalar_select %p231_p1, %s6852_s19, %s233_s24  }
   0xc   : > { %p6963_p5 = por %p241_p2, %p240_p0  ;;  %p6967_p6 = por %p247_p4, %p246_p3 }
   0xd   : > { %9081 = sst [smem:[#allocation9_spill]] %s6961_s26  ;;  %p302_p8 = scmp.eq.s32.totalorder %s4530_s22, 1 }
   0xe   : > { %p6153_p10 = scmp.lt.s32.totalorder %s6856_s20, 2  ;;  %p6974_p11 = por %p296_p7, %p240_p0 }
   0xf   : > { %p6978_p12 = por %p302_p8, %p246_p3  ;;  %s359_s12 = sand.u32 1, %s6852_s19  }
  0x10   : > { %s9084_s29 = scalar_select %p6974_p11, 1, 0 }
  0x11   : > { %s9085_s30 = scalar_select %p6978_p12, 1, 0 }
  0x12   : > { %s4720_s13 = sshll.u32 %s6856_s20, 13  ;;  %s4533_s14 = sshll.u32 %s359_s12, 9 }
  0x13   : > { %s6987_s24 = scalar_lea.hbm %s9016_s9, %s4720_s13  ;;  %s363_s22 = scalar_lea.vmem [#allocation2], %s4533_s14 }
  0x14   : > { %s370_s25 = sshll.u32 %s363_s22, 4  ;;  %p6991_p13 = pnand %p6153_p10, %p6963_p5  ;;  %s6995_s25 = int_to_ptr.vmem [resolvable:$true] %s370_s25 }
  0x15   : > { %s6997_s19 = scalar_lea.sflag [#allocation3], %s359_s12  ;;  %s6760_s15 = scalar_lea.hbm %s6987_s24, 8192 }
  0x16   : > { %p6761_p0 = scmp.ne.s32.totalorder %s6987_s24, %s6760_s15  ;;  %p6762_p1 = pneg %p6991_p13 }
  0x17   : > { %s6765_s14 = scalar_lea.hbm %s9016_s9, 16384  ;;  %p6766_p4 = scmp.lt.u32.totalorder %s6987_s24, %s9016_s9 }
  0x18   : > { %p6763_p2 = pnand %p6762_p1, %p6761_p0  ;;  %p6767_p5 = scmp.lt.u32.totalorder %s6765_s14, %s6760_s15 }
  0x19   : > { %p6769_p8 = scmp.lt.u32.totalorder %s6760_s15, %s6987_s24 }
  0x1a   : > { %p6764_p3 = pneg %p6763_p2  ;;  %p6768_p7 = por %p6767_p5, %p6766_p4 }
  0x1c   : > { %p6770_p10 = por %p6769_p8, %p6768_p7 }
  0x1e   : > { %p6771_p9 = pnand %p6770_p10, %p6764_p3 }
  0x20   : > { %6774 = shalt.err (!%p6771_p9)
}
  0x21   : > { %s6775_s12 = scalar_lea.vmem %s6995_s25, 8192  ;;  %s6858_s13 = smov [#allocation2]  }
  0x22   : > { %p6776_p0 = scmp.ne.s32.totalorder %s6995_s25, %s6775_s12  ;;  %s6780_s27 = sshll.u32 %s6858_s13, 4  ;;  %s6781_s27 = int_to_ptr.vmem [resolvable:$false] %s6780_s27 }
  0x23   : > { %s6782_s16 = scalar_lea.vmem %s6781_s27, 16384  ;;  %p6783_p11 = scmp.lt.s32.totalorder %s6995_s25, %s6781_s27 }
  0x24   : > { %p6778_p2 = pnand %p6776_p0, %p6762_p1  ;;  %p6784_p4 = scmp.lt.s32.totalorder %s6782_s16, %s6775_s12 }
  0x26   : > { %p6779_p12 = pneg %p6778_p2  ;;  %p6785_p5 = por %p6784_p4, %p6783_p11 }
  0x28   : > { %p6786_p7 = pnand %p6785_p5, %p6779_p12 }
  0x2a   : > { %6789 = shalt.err (!%p6786_p7)
}
  0x2b   : > { %s6859_s15 = smov 512   ;;  %s6860_s14 = smov 32  }
  0x2c   : > { %6148 = dma.hbm_to_vmem [thread:$0]  (!%p6991_p13), %s6987_s24, 8192, %s6995_s25, %s6997_s19, %s6859_s15, %s6859_s15, %s6860_s14  }
  0x2d   : > { %p4536_p9 = scmp.ge.s32.totalorder %s6856_s20, 1  ;;  %p386_p1 = scmp.lt.s32.totalorder %s6856_s20, 3 }
  0x2f   : > { %p387_p3 = pnand %p4536_p9, %p386_p1 }
  0x31   : > { %390 = sbr.rel (%p387_p3) target bundleno = 2517 (0x9d5), region = 64 }
  0x38   : > { %s7028_s22 = sand.u32 1, %s6848_s18  }
  0x39   : > { %s4537_s12 = sshll.u32 %s7028_s22, 9  ;;  %s393_s13 = scalar_lea.sflag [#allocation3], %s7028_s22 }
  0x3a   : > { %s7032_s27 = scalar_lea.vmem [#allocation2], %s4537_s12 }
  0x3b   : > { %6835 = dma.done.wait (%p6967_p6), %s393_s13, 8192  }
  0x3c   : > { %6837 = vsyncadd (%p6967_p6), %s393_s13, 4294959104  ;;  %p450_p11 = scmp.lt.s32.totalorder %s6945_s21, 1  ;;  %vm516_vm0 = vcmask 1043456   ;;  %v490_v0 = vld [vmem:[%s9008_s1] sm:$0xf]  ;;  %vm491_vm1 = vcmask 64512  }
  0x3d   : > { %6139 = vmatprep.subr.msk.bf16.mxu0 %vm516_vm0, %v490_v0  ;;  %v518_v3 = vsel %vm516_vm0, %v490_v0, 0  ;;  %v713_v15 = vld [vmem:[%s9010_s3] sm:$0xf]  ;;  %v6192_v54 = vld [vmem:[%s9009_s2 + $0x8] sm:$0xff]   ;;  %v6193_v57 = vld [vmem:[%s9009_s2 + $0x10] sm:$0xff]   ;;  %s4724_s25 = sshll.u32 %s6945_s21, 11 }
  0x3e   : > { %s7040_s19 = scalar_select %p450_p11, %s6945_s21, 1  ;;  %5448 = vmatpush3.bf16.msra.mxu0 %v518_v3  ;;  %6140 = vmatprep.subr.msk.bf16.mxu1 %vm516_vm0, %v713_v15  ;;  %v818_v16 = vsel %vm516_vm0, %v713_v15, 0  ;;  %v6191_v53 = vld [vmem:[%s9009_s2] sm:$0xff]   ;;  %v6194_v62 = vld [vmem:[%s9009_s2 + $0x18] sm:$0xff]  }
  0x3f   : > { %5466 = vmatpush3.bf16.msra.mxu1 %v818_v16  ;;  %v6195_v0 = vld [vmem:[%s9009_s2 + $0x20] sm:$0xff]   ;;  %s8959_s14 = scalar_lea.hbm %s9018_s11, %s4724_s25  ;;  %p9245_p12 = scmp.ne.s32.totalorder %s9084_s29, 0 }
  0x40   : > { %s4721_s26 = sshll.u32 %s7040_s19, 7  ;;  %s4722_s28 = sshll.u32 %s7040_s19, 9  ;;  %5611 = vmatprep.subr.bf16.mxu1 %v6191_v53 }
  0x41   : > { %s7046_s16 = scalar_lea.vmem %s9007_s0, %s4721_s26  ;;  %s7065_s26 = scalar_lea.vmem %s9017_s10, %s4722_s28 }
  0x42   : > { %v466_v1 = vld [vmem:[%s7046_s16] sm:$0xff]  ;;  %v467_v2 = vld [vmem:[%s7046_s16 + $0x8] sm:$0xff]  ;;  %v468_v5 = vld [vmem:[%s7046_s16 + $0x10] sm:$0xff]  ;;  %s6861_s21 = smov [#allocation5]  }
  0x43   : > { %v482_v4 = vpack.c.bf16 %v467_v2, %v466_v1  ;;  %v469_v6 = vld [vmem:[%s7046_s16 + $0x18] sm:$0xff]  ;;  %v470_v7 = vld [vmem:[%s7046_s16 + $0x20] sm:$0xff]  ;;  %v471_v9 = vld [vmem:[%s7046_s16 + $0x28] sm:$0xff] }
  0x44   : > { %v483_v8 = vpack.c.bf16 %v469_v6, %v468_v5  ;;  %v484_v10 = vpack.c.bf16 %v471_v9, %v470_v7  ;;  %v472_v11 = vld [vmem:[%s7046_s16 + $0x30] sm:$0xff]  ;;  %v473_v12 = vld [vmem:[%s7046_s16 + $0x38] sm:$0xff]  ;;  %v474_v13 = vld [vmem:[%s7046_s16 + $0x40] sm:$0xff] }
  0x45   : > { %5449 = vmatprep.mubr.msk.bf16.mxu0 %vm491_vm1, %v482_v4  ;;  %v475_v14 = vld [vmem:[%s7046_s16 + $0x48] sm:$0xff]  ;;  %v617_v17 = vld [vmem:[%s7065_s26] sm:$0xff]  ;;  %v619_v19 = vld [vmem:[%s7065_s26 + $0x10] sm:$0xff]  ;;  %v485_v26 = vpack.c.bf16 %v473_v12, %v472_v11 }
  0x46   : > { %5450 = vmatmul.mubr.msk.bf16.vlgmr.msra.gmra.mrb[0].mxu0 %vm491_vm1, %v483_v8  ;;  %v618_v18 = vld [vmem:[%s7065_s26 + $0x8] sm:$0xff]  ;;  %v620_v21 = vld [vmem:[%s7065_s26 + $0x18] sm:$0xff]  ;;  %v621_v22 = vld [vmem:[%s7065_s26 + $0x20] sm:$0xff]  ;;  %v486_v27 = vpack.c.bf16 %v475_v14, %v474_v13 }
  0x47   : > { %5453 = vmatprep.mubr.msk.bf16.mxu0 %vm491_vm1, %v484_v10  ;;  %v681_v20 = vpack.c.bf16 %v618_v18, %v617_v17  ;;  %v622_v23 = vld [vmem:[%s7065_s26 + $0x28] sm:$0xff]  ;;  %v682_v24 = vpack.c.bf16 %v620_v21, %v619_v19  ;;  %v623_v28 = vld [vmem:[%s7065_s26 + $0x30] sm:$0xff]  ;;  %v624_v29 = vld [vmem:[%s7065_s26 + $0x38] sm:$0xff] }
  0x48   : > { %v683_v25 = vpack.c.bf16 %v622_v23, %v621_v22  ;;  %v625_v30 = vld [vmem:[%s7065_s26 + $0x40] sm:$0xff]  ;;  %v626_v31 = vld [vmem:[%s7065_s26 + $0x48] sm:$0xff]  ;;  %v476_v32 = vld [vmem:[%s7046_s16 + $0x50] sm:$0xff]  ;;  %v684_v34 = vpack.c.bf16 %v624_v29, %v623_v28 }
  0x49   : > { %5467 = vmatprep.mubr.msk.bf16.mxu1 %vm491_vm1, %v681_v20  ;;  %v477_v33 = vld [vmem:[%s7046_s16 + $0x58] sm:$0xff]  ;;  %v478_v35 = vld [vmem:[%s7046_s16 + $0x60] sm:$0xff]  ;;  %v479_v36 = vld [vmem:[%s7046_s16 + $0x68] sm:$0xff]  ;;  %v685_v37 = vpack.c.bf16 %v626_v31, %v625_v30 }
  0x4a   : > { %5468 = vmatmul.mubr.msk.bf16.vlgmr.msra.gmra.mrb[0].mxu1 %vm491_vm1, %v682_v24  ;;  %v487_v38 = vpack.c.bf16 %v477_v33, %v476_v32  ;;  %v488_v39 = vpack.c.bf16 %v479_v36, %v478_v35  ;;  %v627_v40 = vld [vmem:[%s7065_s26 + $0x50] sm:$0xff]  ;;  %v628_v41 = vld [vmem:[%s7065_s26 + $0x58] sm:$0xff]  ;;  %v629_v42 = vld [vmem:[%s7065_s26 + $0x60] sm:$0xff] }
  0x4b   : > { %5471 = vmatprep.mubr.msk.bf16.mxu1 %vm491_vm1, %v683_v25  ;;  %v630_v43 = vld [vmem:[%s7065_s26 + $0x68] sm:$0xff]  ;;  %v480_v44 = vld [vmem:[%s7046_s16 + $0x70] sm:$0xff]  ;;  %v481_v45 = vld [vmem:[%s7046_s16 + $0x78] sm:$0xff]  ;;  %v686_v46 = vpack.c.bf16 %v628_v41, %v627_v40  ;;  %5612 = vmatpush3.bf16.msra.mxu1 %v6191_v53  ;;  %s4408_s16 = scalar_lea.sflag [#allocation4], %s7028_s22 }
  0x4c   : > { %v687_v47 = vpack.c.bf16 %v630_v43, %v629_v42  ;;  %v489_v48 = vpack.c.bf16 %v481_v45, %v480_v44  ;;  %v631_v49 = vld [vmem:[%s7065_s26 + $0x70] sm:$0xff]  ;;  %v632_v50 = vld [vmem:[%s7065_s26 + $0x78] sm:$0xff]  ;;  %v633_v51 = vld [vmem:[%s7065_s26 + $0x80] sm:$0xff]  ;;  %5613 = vmatprep.subr.bf16.mxu1 %v6192_v54 }
  0x4d   : > { %v634_v52 = vld [vmem:[%s7065_s26 + $0x88] sm:$0xff]  ;;  %v688_v55 = vpack.c.bf16 %v632_v50, %v631_v49  ;;  %v635_v58 = vld [vmem:[%s7065_s26 + $0x90] sm:$0xff]  ;;  %v636_v59 = vld [vmem:[%s7065_s26 + $0x98] sm:$0xff] }
  0x4e   : > { %5454 = vmatmul.mubr.msk.bf16.gmra.mrb[4].mxu0 %vm491_vm1, %v485_v26  ;;  %v689_v56 = vpack.c.bf16 %v634_v52, %v633_v51  ;;  %v637_v60 = vld [vmem:[%s7065_s26 + $0xa0] sm:$0xff]  ;;  %v638_v61 = vld [vmem:[%s7065_s26 + $0xa8] sm:$0xff]  ;;  %v690_v63 = vpack.c.bf16 %v636_v59, %v635_v58  ;;  %v639_v2 = vld [vmem:[%s7065_s26 + $0xb0] sm:$0xff] }
  0x4f   : > { %5457 = vmatprep.mubr.msk.bf16.mxu0 %vm491_vm1, %v486_v27  ;;  %5614 = vmatpush3.bf16.msra.mxu1 %v6192_v54  ;;  %v691_v1 = vpack.c.bf16 %v638_v61, %v637_v60  ;;  %v640_v3 = vld [vmem:[%s7065_s26 + $0xb8] sm:$0xff]  ;;  %v641_v4 = vld [vmem:[%s7065_s26 + $0xc0] sm:$0xff]  ;;  %v642_v5 = vld [vmem:[%s7065_s26 + $0xc8] sm:$0xff] }
  0x50   : > { %5615 = vmatprep.subr.bf16.mxu1 %v6193_v57  ;;  %v6196_v6 = vld [vmem:[%s9009_s2 + $0x28] sm:$0xff]   ;;  %v692_v7 = vpack.c.bf16 %v640_v3, %v639_v2  ;;  %v6197_v8 = vld [vmem:[%s9009_s2 + $0x30] sm:$0xff]   ;;  %v693_v9 = vpack.c.bf16 %v642_v5, %v641_v4  ;;  %v644_v11 = vld [vmem:[%s7065_s26 + $0xd8] sm:$0xff] }
  0x51   : > { %v643_v10 = vld [vmem:[%s7065_s26 + $0xd0] sm:$0xff]  ;;  %v645_v12 = vld [vmem:[%s7065_s26 + $0xe0] sm:$0xff]  ;;  %v646_v13 = vld [vmem:[%s7065_s26 + $0xe8] sm:$0xff] }
  0x52   : > { %5472 = vmatmul.mubr.msk.bf16.gmra.mrb[4].mxu1 %vm491_vm1, %v684_v34  ;;  %v694_v14 = vpack.c.bf16 %v644_v11, %v643_v10  ;;  %v695_v15 = vpack.c.bf16 %v646_v13, %v645_v12  ;;  %v647_v16 = vld [vmem:[%s7065_s26 + $0xf0] sm:$0xff]  ;;  %v648_v17 = vld [vmem:[%s7065_s26 + $0xf8] sm:$0xff]  ;;  %v649_v18 = vld [vmem:[%s7065_s26 + $0x100] sm:$0xff] }
  0x53   : > { %5475 = vmatprep.mubr.msk.bf16.mxu1 %vm491_vm1, %v685_v37  ;;  %5616 = vmatpush3.bf16.msra.mxu1 %v6193_v57  ;;  %v650_v19 = vld [vmem:[%s7065_s26 + $0x108] sm:$0xff]  ;;  %v696_v20 = vpack.c.bf16 %v648_v17, %v647_v16  ;;  %v651_v22 = vld [vmem:[%s7065_s26 + $0x110] sm:$0xff]  ;;  %v652_v23 = vld [vmem:[%s7065_s26 + $0x118] sm:$0xff] }
  0x54   : > { %5617 = vmatprep.subr.bf16.mxu1 %v6194_v62  ;;  %v697_v21 = vpack.c.bf16 %v650_v19, %v649_v18  ;;  %v653_v24 = vld [vmem:[%s7065_s26 + $0x120] sm:$0xff]  ;;  %v654_v25 = vld [vmem:[%s7065_s26 + $0x128] sm:$0xff]  ;;  %v698_v26 = vpack.c.bf16 %v652_v23, %v651_v22  ;;  %v655_v28 = vld [vmem:[%s7065_s26 + $0x130] sm:$0xff] }
  0x55   : > { %v699_v27 = vpack.c.bf16 %v654_v25, %v653_v24  ;;  %v656_v29 = vld [vmem:[%s7065_s26 + $0x138] sm:$0xff]  ;;  %v657_v30 = vld [vmem:[%s7065_s26 + $0x140] sm:$0xff]  ;;  %v658_v31 = vld [vmem:[%s7065_s26 + $0x148] sm:$0xff] }
  0x56   : > { %5458 = vmatmul.mubr.msk.bf16.gmra.mrb[8].mxu0 %vm491_vm1, %v487_v38  ;;  %v700_v32 = vpack.c.bf16 %v656_v29, %v655_v28  ;;  %v701_v33 = vpack.c.bf16 %v658_v31, %v657_v30  ;;  %v659_v34 = vld [vmem:[%s7065_s26 + $0x150] sm:$0xff]  ;;  %v660_v35 = vld [vmem:[%s7065_s26 + $0x158] sm:$0xff]  ;;  %v661_v36 = vld [vmem:[%s7065_s26 + $0x160] sm:$0xff] }
  0x57   : > { %5461 = vmatprep.mubr.msk.bf16.mxu0 %vm491_vm1, %v488_v39  ;;  %5618 = vmatpush3.bf16.msra.mxu1 %v6194_v62  ;;  %v662_v37 = vld [vmem:[%s7065_s26 + $0x168] sm:$0xff]  ;;  %v702_v38 = vpack.c.bf16 %v660_v35, %v659_v34  ;;  %v6198_v40 = vld [vmem:[%s9009_s2 + $0x38] sm:$0xff]   ;;  %v663_v41 = vld [vmem:[%s7065_s26 + $0x170] sm:$0xff] }
  0x58   : > { %5619 = vmatprep.subr.bf16.mxu1 %v6195_v0  ;;  %v703_v39 = vpack.c.bf16 %v662_v37, %v661_v36  ;;  %v664_v42 = vld [vmem:[%s7065_s26 + $0x178] sm:$0xff]  ;;  %v665_v43 = vld [vmem:[%s7065_s26 + $0x180] sm:$0xff]  ;;  %v666_v44 = vld [vmem:[%s7065_s26 + $0x188] sm:$0xff] }
  0x59   : > { %v704_v45 = vpack.c.bf16 %v664_v42, %v663_v41  ;;  %v669_v49 = vld [vmem:[%s7065_s26 + $0x1a0] sm:$0xff]  ;;  %v670_v50 = vld [vmem:[%s7065_s26 + $0x1a8] sm:$0xff]  ;;  %v671_v53 = vld [vmem:[%s7065_s26 + $0x1b0] sm:$0xff] }
  0x5a   : > { %5476 = vmatmul.mubr.msk.bf16.gmra.mrb[8].mxu1 %vm491_vm1, %v686_v46  ;;  %v705_v46 = vpack.c.bf16 %v666_v44, %v665_v43  ;;  %v707_v52 = vpack.c.bf16 %v670_v50, %v669_v49  ;;  %v672_v54 = vld [vmem:[%s7065_s26 + $0x1b8] sm:$0xff]  ;;  %v675_v59 = vld [vmem:[%s7065_s26 + $0x1d0] sm:$0xff]  ;;  %v677_v61 = vld [vmem:[%s7065_s26 + $0x1e0] sm:$0xff] }
  0x5b   : > { %5479 = vmatprep.mubr.msk.bf16.mxu1 %vm491_vm1, %v687_v47  ;;  %5620 = vmatpush3.bf16.msra.mxu1 %v6195_v0  ;;  %v667_v47 = vld [vmem:[%s7065_s26 + $0x190] sm:$0xff]  ;;  %v708_v57 = vpack.c.bf16 %v672_v54, %v671_v53  ;;  %v676_v60 = vld [vmem:[%s7065_s26 + $0x1d8] sm:$0xff]  ;;  %v678_v62 = vld [vmem:[%s7065_s26 + $0x1e8] sm:$0xff] }
  0x5c   : > { %5621 = vmatprep.subr.bf16.mxu1 %v6196_v6  ;;  %v711_v0 = vpack.c.bf16 %v678_v62, %v677_v61  ;;  %v680_v2 = vld [vmem:[%s7065_s26 + $0x1f8] sm:$0xff]  ;;  %v6199_v4 = vld [vmem:[%s9012_s5] sm:$0xff]   ;;  %v6200_v5 = vld [vmem:[%s9012_s5 + $0x8] sm:$0xff]  }
  0x5d   : > { %5531 = vmatprep.subr.bf16.mxu0 %v6199_v4  ;;  %v6205_v10 = vld [vmem:[%s9012_s5 + $0x30] sm:$0xff]   ;;  %v6206_v11 = vld [vmem:[%s9012_s5 + $0x38] sm:$0xff]   ;;  %v7239_v17 = vld [vmem:[%s9011_s4] ss:$0 sm:$0xff] }
  0x5e   : > { %5462 = vmatmul.mubr.msk.bf16.gmra.mrb[12].mxu0 %vm491_vm1, %v489_v48  ;;  %v668_v48 = vld [vmem:[%s7065_s26 + $0x198] sm:$0xff] }
  0x5f   : > { %5622 = vmatpush3.bf16.msra.mxu1 %v6196_v6  ;;  %v706_v51 = vpack.c.bf16 %v668_v48, %v667_v47  ;;  %5532 = vmatpush3.bf16.msra.mxu0 %v6199_v4  ;;  %v6201_v6 = vld [vmem:[%s9012_s5 + $0x10] sm:$0xff]  }
  0x60   : > { %5623 = vmatprep.subr.bf16.mxu1 %v6197_v8  ;;  %5533 = vmatprep.subr.bf16.mxu0 %v6200_v5 }
  0x62   : > { %5480 = vmatmul.mubr.msk.bf16.gmra.mrb[12].mxu1 %vm491_vm1, %v688_v55  ;;  %v673_v55 = vld [vmem:[%s7065_s26 + $0x1c0] sm:$0xff] }
  0x63   : > { %5483 = vmatprep.mubr.msk.bf16.mxu1 %vm491_vm1, %v689_v56  ;;  %5624 = vmatpush3.bf16.msra.mxu1 %v6197_v8  ;;  %v674_v56 = vld [vmem:[%s7065_s26 + $0x1c8] sm:$0xff]  ;;  %v6203_v8 = vld [vmem:[%s9012_s5 + $0x20] sm:$0xff]  }
  0x64   : > { %5625 = vmatprep.subr.bf16.mxu1 %v6198_v40  ;;  %v709_v58 = vpack.c.bf16 %v674_v56, %v673_v55  ;;  %5534 = vmatpush3.bf16.msra.mxu0 %v6200_v5 }
  0x65   : > { %5535 = vmatprep.subr.bf16.mxu0 %v6201_v6 }
  0x67   : > { %5626 = vmatpush3.bf16.msra.mxu1 %v6198_v40 }
  0x68   : > { %5536 = vmatpush3.bf16.msra.mxu0 %v6201_v6 }
  0x6a   : > { %5484 = vmatmul.mubr.msk.bf16.gmra.mrb[16].mxu1 %vm491_vm1, %v690_v63  ;;  %v710_v63 = vpack.c.bf16 %v676_v60, %v675_v59 }
  0x6b   : > { %5487 = vmatprep.mubr.msk.bf16.mxu1 %vm491_vm1, %v691_v1  ;;  %v679_v1 = vld [vmem:[%s7065_s26 + $0x1f0] sm:$0xff]  ;;  %s7592_s26 = scalar_lea.vmem %s9015_s8, %s4722_s28 }
  0x6c   : > { %v712_v3 = vpack.c.bf16 %v680_v2, %v679_v1 }
  0x72   : > { %5488 = vmatmul.mubr.msk.bf16.gmra.mrb[20].mxu1 %vm491_vm1, %v692_v7  ;;  %v6202_v7 = vld [vmem:[%s9012_s5 + $0x18] sm:$0xff]  }
  0x73   : > { %5491 = vmatprep.mubr.msk.bf16.mxu1 %vm491_vm1, %v693_v9  ;;  %5537 = vmatprep.subr.bf16.mxu0 %v6202_v7  ;;  %v6204_v9 = vld [vmem:[%s9012_s5 + $0x28] sm:$0xff]  }
  0x74   : > { %5538 = vmatpush3.bf16.msra.mxu0 %v6202_v7 }
  0x75   : > { %5539 = vmatprep.subr.bf16.mxu0 %v6203_v8 }
  0x78   : > { %5540 = vmatpush3.bf16.msra.mxu0 %v6203_v8 }
  0x79   : > { %5541 = vmatprep.subr.bf16.mxu0 %v6204_v9 }
  0x7a   : > { %5492 = vmatmul.mubr.msk.bf16.gmra.mrb[24].mxu1 %vm491_vm1, %v694_v14 }
  0x7b   : > { %5495 = vmatprep.mubr.msk.bf16.mxu1 %vm491_vm1, %v695_v15 }
  0x7c   : > { %5542 = vmatpush3.bf16.msra.mxu0 %v6204_v9 }
  0x7d   : > { %5543 = vmatprep.subr.bf16.mxu0 %v6205_v10 }
  0x80   : > { %5544 = vmatpush3.bf16.msra.mxu0 %v6205_v10 }
  0x81   : > { %5545 = vmatprep.subr.bf16.mxu0 %v6206_v11 }
  0x82   : > { %5496 = vmatmul.mubr.msk.bf16.gmra.mrb[28].mxu1 %vm491_vm1, %v696_v20 }
  0x83   : > { %5499 = vmatprep.mubr.msk.bf16.mxu1 %vm491_vm1, %v697_v21 }
  0x84   : > { %5546 = vmatpush3.bf16.msra.mxu0 %v6206_v11 }
  0x8a   : > { %5500 = vmatmul.mubr.msk.bf16.gmra.mrb[32].mxu1 %vm491_vm1, %v698_v26 }
  0x8b   : > { %5503 = vmatprep.mubr.msk.bf16.mxu1 %vm491_vm1, %v699_v27 }
  0x92   : > { %5504 = vmatmul.mubr.msk.bf16.gmra.mrb[36].mxu1 %vm491_vm1, %v700_v32 }
  0x93   : > { %5507 = vmatprep.mubr.msk.bf16.mxu1 %vm491_vm1, %v701_v33 }
  0x9a   : > { %5508 = vmatmul.mubr.msk.bf16.gmra.mrb[40].mxu1 %vm491_vm1, %v702_v38 }
  0x9b   : > { %5511 = vmatprep.mubr.msk.bf16.mxu1 %vm491_vm1, %v703_v39 }
  0xa2   : > { %5512 = vmatmul.mubr.msk.bf16.gmra.mrb[44].mxu1 %vm491_vm1, %v704_v45 }
  0xa3   : > { %5515 = vmatprep.mubr.msk.bf16.mxu1 %vm491_vm1, %v705_v46 }
  0xaa   : > { %5516 = vmatmul.mubr.msk.bf16.gmra.mrb[48].mxu1 %vm491_vm1, %v706_v51 }
  0xab   : > { %5519 = vmatprep.mubr.msk.bf16.mxu1 %vm491_vm1, %v707_v52 }
  0xb2   : > { %5520 = vmatmul.mubr.msk.bf16.gmra.mrb[52].mxu1 %vm491_vm1, %v708_v57 }
  0xb3   : > { %5523 = vmatprep.mubr.msk.bf16.mxu1 %vm491_vm1, %v709_v58 }
  0xba   : > { %5524 = vmatmul.mubr.msk.bf16.gmra.mrb[56].mxu1 %vm491_vm1, %v710_v63 }
  0xbb   : > { %5527 = vmatprep.mubr.msk.bf16.mxu1 %vm491_vm1, %v711_v0 }
  0xc2   : > { %5528 = vmatmul.mubr.msk.bf16.gmra.mrb[60].mxu1 %vm491_vm1, %v712_v3 }
 0x119   : > { %v5451_v12 = vpop.f32.mrb[0].mxu0 }
 0x11a   : > { %v554_v13 = vpop.f32.mrb[1].mxu0 }
 0x11b   : > { %v5452_v14 = vpop.f32.mrb[2].mxu0 }
 0x11c   : > { %v7234_v15 = vpack.c.bf16 %v5452_v14, %v5451_v12  ;;  %v557_v16 = vpop.f32.mrb[3].mxu0 }
 0x11d   : > { %v7241_v18 = vpack.c.bf16 %v557_v16, %v554_v13  ;;  %v5469_v19 = vpop.f32.mrb[0].mxu1 }
 0x11e   : > { %9087 = vst [vmem:[#allocation10_spill] sm:$0xff] %v7234_v15  ;;  %v7245_v20 = vadd.f32 %v5469_v19, %v7239_v17  ;;  %v854_v21 = vpop.f32.mrb[1].mxu1 }
 0x11f   : > { %5627 = vmatprep.mubr.bf16.mxu1 %v7241_v18  ;;  %v7249_v22 = vadd.f32 %v7239_v17, %v854_v21  ;;  %v5470_v23 = vpop.f32.mrb[2].mxu1 }
 0x120   : > { %5628 = vmatmul.mubr.bf16.vlgmr.msra.gmra.mrb[64].mxu1 %v7234_v15  ;;  %v4588_v25 = vmul.f32 -1.442695, %v7245_v20  ;;  %v7253_v26 = vadd.f32 %v5470_v23, %v7239_v17  ;;  %v857_v27 = vpop.f32.mrb[3].mxu1 }
 0x121   : > { %v5455_v24 = vpop.f32.mrb[4].mxu0  ;;  %v4586_v29 = vmul.f32 -1.442695, %v7249_v22  ;;  %v7257_v30 = vadd.f32 %v7239_v17, %v857_v27 }
 0x122   : > { %v570_v28 = vpop.f32.mrb[5].mxu0  ;;  %6223 = vpow2.f32 %v4588_v25  ;;  %v4589_v32 = vmul.f32 -1.442695, %v7253_v26 }
 0x123   : > { %v5456_v31 = vpop.f32.mrb[6].mxu0  ;;  %6225 = vpow2.f32 %v4586_v29  ;;  %v4587_v35 = vmul.f32 -1.442695, %v7257_v30 }
 0x124   : > { %v7260_v33 = vpack.c.bf16 %v5456_v31, %v5455_v24  ;;  %v573_v34 = vpop.f32.mrb[7].mxu0  ;;  %6227 = vpow2.f32 %v4589_v32 }
 0x125   : > { %v7263_v36 = vpack.c.bf16 %v573_v34, %v570_v28  ;;  %6229 = vpow2.f32 %v4587_v35  ;;  %v5473_v37 = vpop.f32.mrb[4].mxu1 }
 0x126   : > { %9088 = vst [vmem:[#allocation11_spill] sm:$0xff] %v7260_v33  ;;  %v7267_v38 = vadd.f32 %v5473_v37, %v7239_v17  ;;  %v870_v39 = vpop.f32.mrb[5].mxu1 }
 0x127   : > { %9089 = vst [vmem:[#allocation12_spill] sm:$0xff] %v7263_v36  ;;  %5631 = vmatprep.mubr.bf16.mxu1 %v7263_v36  ;;  %v7271_v40 = vadd.f32 %v7239_v17, %v870_v39  ;;  %v5474_v41 = vpop.f32.mrb[6].mxu1  ;;  %v2007_v36 = vld [vmem:[%s7592_s26 + $0x1d0] sm:$0xff] }
 0x128   : > { %5632 = vmatmul.mubr.bf16.gmra.mrb[68].mxu1 %v7260_v33  ;;  %v4592_v43 = vmul.f32 -1.442695, %v7267_v38  ;;  %v7275_v44 = vadd.f32 %v5474_v41, %v7239_v17  ;;  %v873_v45 = vpop.f32.mrb[7].mxu1 }
 0x129   : > { %v5459_v42 = vpop.f32.mrb[8].mxu0  ;;  %v4590_v47 = vmul.f32 -1.442695, %v7271_v40  ;;  %v7279_v48 = vadd.f32 %v7239_v17, %v873_v45 }
 0x12a   : > { %v586_v46 = vpop.f32.mrb[9].mxu0  ;;  %6231 = vpow2.f32 %v4592_v43  ;;  %v4593_v50 = vmul.f32 -1.442695, %v7275_v44 }
 0x12b   : > { %v5460_v49 = vpop.f32.mrb[10].mxu0  ;;  %6233 = vpow2.f32 %v4590_v47  ;;  %v4591_v53 = vmul.f32 -1.442695, %v7279_v48 }
 0x12c   : > { %v7282_v51 = vpack.c.bf16 %v5460_v49, %v5459_v42  ;;  %v589_v52 = vpop.f32.mrb[11].mxu0  ;;  %v6224_v54 = vpop.eup %6223  ;;  %6235 = vpow2.f32 %v4593_v50 }
 0x12d   : > { %v7285_v55 = vpack.c.bf16 %v589_v52, %v586_v46  ;;  %v6226_v56 = vpop.eup %6225  ;;  %v1303_v57 = vadd.f32 1.0, %v6224_v54  ;;  %6237 = vpow2.f32 %v4591_v53  ;;  %v5477_v58 = vpop.f32.mrb[8].mxu1 }
 0x12e   : > { %9090 = vst [vmem:[#allocation13_spill] sm:$0xff] %v7282_v51  ;;  %v6228_v59 = vpop.eup %6227  ;;  %v1301_v60 = vadd.f32 1.0, %v6226_v56  ;;  %v7289_v61 = vadd.f32 %v5477_v58, %v7239_v17  ;;  %v886_v62 = vpop.f32.mrb[9].mxu1 }
 0x12f   : > { %9091 = vst [vmem:[#allocation14_spill] sm:$0xff] %v7285_v55  ;;  %5635 = vmatprep.mubr.bf16.mxu1 %v7285_v55  ;;  %v6230_v63 = vpop.eup %6229  ;;  %6239 = vrcp.f32 %v1303_v57  ;;  %v1304_v0 = vadd.f32 1.0, %v6228_v59  ;;  %v7293_v1 = vadd.f32 %v7239_v17, %v886_v62  ;;  %v5478_v2 = vpop.f32.mrb[10].mxu1 }
 0x130   : > { %5636 = vmatmul.mubr.bf16.gmra.mrb[72].mxu1 %v7282_v51  ;;  %6241 = vrcp.f32 %v1301_v60  ;;  %v1302_v4 = vadd.f32 1.0, %v6230_v63  ;;  %v4596_v5 = vmul.f32 -1.442695, %v7289_v61  ;;  %v7297_v6 = vadd.f32 %v5478_v2, %v7239_v17  ;;  %v889_v7 = vpop.f32.mrb[11].mxu1 }
 0x131   : > { %v5463_v3 = vpop.f32.mrb[12].mxu0  ;;  %6243 = vrcp.f32 %v1304_v0  ;;  %v4594_v9 = vmul.f32 -1.442695, %v7293_v1  ;;  %v7301_v10 = vadd.f32 %v7239_v17, %v889_v7 }
 0x132   : > { %v602_v8 = vpop.f32.mrb[13].mxu0  ;;  %6245 = vrcp.f32 %v1302_v4  ;;  %v4597_v12 = vmul.f32 -1.442695, %v7297_v6 }
 0x133   : > { %v5464_v11 = vpop.f32.mrb[14].mxu0  ;;  %6247 = vpow2.f32 %v4596_v5  ;;  %v4595_v16 = vmul.f32 -1.442695, %v7301_v10 }
 0x134   : > { %v7304_v13 = vpack.c.bf16 %v5464_v11, %v5463_v3  ;;  %v605_v14 = vpop.f32.mrb[15].mxu0  ;;  %v6232_v19 = vpop.eup %6231  ;;  %6249 = vpow2.f32 %v4594_v9 }
 0x135   : > { %v7307_v21 = vpack.c.bf16 %v605_v14, %v602_v8  ;;  %v6234_v23 = vpop.eup %6233  ;;  %v1307_v24 = vadd.f32 1.0, %v6232_v19  ;;  %6251 = vpow2.f32 %v4597_v12  ;;  %v5481_v25 = vpop.f32.mrb[12].mxu1 }
 0x136   : > { %9092 = vst [vmem:[#allocation15_spill] sm:$0xff] %v7304_v13  ;;  %v6236_v27 = vpop.eup %6235  ;;  %v1305_v28 = vadd.f32 1.0, %v6234_v23  ;;  %6253 = vpow2.f32 %v4595_v16  ;;  %v7311_v29 = vadd.f32 %v5481_v25, %v7239_v17  ;;  %v902_v31 = vpop.f32.mrb[13].mxu1 }
 0x137   : > { %9093 = vst [vmem:[#allocation16_spill] sm:$0xff] %v7307_v21  ;;  %5639 = vmatprep.mubr.bf16.mxu1 %v7307_v21  ;;  %v6238_v32 = vpop.eup %6237  ;;  %6255 = vrcp.f32 %v1307_v24  ;;  %v1308_v34 = vadd.f32 1.0, %v6236_v27  ;;  %v7315_v35 = vadd.f32 %v7239_v17, %v902_v31  ;;  %v5482_v37 = vpop.f32.mrb[14].mxu1  ;;  %v2003_v21 = vld [vmem:[%s7592_s26 + $0x1b0] sm:$0xff] }
 0x138   : > { %5640 = vmatmul.mubr.bf16.gmra.mrb[76].mxu1 %v7304_v13  ;;  %6257 = vrcp.f32 %v1305_v28  ;;  %v1306_v39 = vadd.f32 1.0, %v6238_v32  ;;  %v4600_v41 = vmul.f32 -1.442695, %v7311_v29  ;;  %v7319_v42 = vadd.f32 %v5482_v37, %v7239_v17  ;;  %v905_v43 = vpop.f32.mrb[15].mxu1 }
 0x139   : > { %v6240_v45 = vpop.eup %6239  ;;  %6259 = vrcp.f32 %v1308_v34  ;;  %v4598_v46 = vmul.f32 -1.442695, %v7315_v35  ;;  %v7323_v47 = vadd.f32 %v7239_v17, %v905_v43 }
 0x13a   : > { %v6242_v49 = vpop.eup %6241  ;;  %v1495_v50 = vmul.f32 %v6240_v45, %v7245_v20  ;;  %6261 = vrcp.f32 %v1306_v39  ;;  %v4601_v52 = vmul.f32 -1.442695, %v7319_v42 }
 0x13b   : > { %v6244_v53 = vpop.eup %6243  ;;  %v1493_v54 = vmul.f32 %v6242_v49, %v7249_v22  ;;  %6263 = vpow2.f32 %v4600_v41  ;;  %v4599_v56 = vmul.f32 -1.442695, %v7323_v47 }
 0x13c   : > { %v6246_v57 = vpop.eup %6245  ;;  %v1496_v58 = vmul.f32 %v6244_v53, %v7253_v26  ;;  %6265 = vpow2.f32 %v4598_v46 }
 0x13d   : > { %v6248_v59 = vpop.eup %6247  ;;  %v1494_v60 = vmul.f32 %v6246_v57, %v7257_v30  ;;  %6267 = vpow2.f32 %v4601_v52  ;;  %v5485_v62 = vpop.f32.mrb[16].mxu1 }
 0x13e   : > { %v6250_v63 = vpop.eup %6249  ;;  %v1558_v20 = vpack.c.bf16 %v1496_v58, %v1495_v50  ;;  %v1311_v0 = vadd.f32 1.0, %v6248_v59  ;;  %6269 = vpow2.f32 %v4599_v56  ;;  %v7332_v2 = vadd.f32 %v5485_v62, %v7239_v17  ;;  %v918_v22 = vpop.f32.mrb[17].mxu1 }
 0x13f   : > { %v6252_v3 = vpop.eup %6251  ;;  %v1309_v4 = vadd.f32 1.0, %v6250_v63  ;;  %v7335_v5 = vadd.f32 %v7239_v17, %v918_v22  ;;  %v5486_v26 = vpop.f32.mrb[18].mxu1  ;;  %v1557_v7 = vpack.c.bf16 %v1494_v60, %v1493_v54 }
 0x140   : > { %v6254_v8 = vpop.eup %6253  ;;  %6271 = vrcp.f32 %v1311_v0  ;;  %v1312_v30 = vadd.f32 1.0, %v6252_v3  ;;  %v4604_v9 = vmul.f32 -1.442695, %v7332_v2  ;;  %v7339_v11 = vadd.f32 %v5486_v26, %v7239_v17  ;;  %v921_v12 = vpop.f32.mrb[19].mxu1 }
 0x141   : > { %v6256_v14 = vpop.eup %6255  ;;  %6273 = vrcp.f32 %v1309_v4  ;;  %v1310_v16 = vadd.f32 1.0, %v6254_v8  ;;  %v4602_v19 = vmul.f32 -1.442695, %v7335_v5  ;;  %v7343_v23 = vadd.f32 %v7239_v17, %v921_v12  ;;  %5547 = vmatprep.mubr.bf16.mxu0 %v1557_v7 }
 0x142   : > { %v6258_v24 = vpop.eup %6257  ;;  %v1499_v25 = vmul.f32 %v6256_v14, %v7267_v38  ;;  %6275 = vrcp.f32 %v1312_v30  ;;  %v4605_v27 = vmul.f32 -1.442695, %v7339_v11  ;;  %5548 = vmatmul.mubr.bf16.vlgmr.msra.gmra.mrb[16].mxu0 %v1558_v20 }
 0x143   : > { %v6260_v28 = vpop.eup %6259  ;;  %v1497_v31 = vmul.f32 %v6258_v24, %v7271_v40  ;;  %6277 = vrcp.f32 %v1310_v16  ;;  %v4603_v32 = vmul.f32 -1.442695, %v7343_v23 }
 0x144   : > { %v6262_v34 = vpop.eup %6261  ;;  %v1500_v37 = vmul.f32 %v6260_v28, %v7275_v44  ;;  %6279 = vpow2.f32 %v4604_v9 }
 0x145   : > { %v6264_v39 = vpop.eup %6263  ;;  %v1498_v41 = vmul.f32 %v6262_v34, %v7279_v48  ;;  %6281 = vpow2.f32 %v4602_v19  ;;  %v5489_v43 = vpop.f32.mrb[20].mxu1 }
 0x146   : > { %v6266_v38 = vpop.eup %6265  ;;  %v1315_v45 = vadd.f32 1.0, %v6264_v39  ;;  %6283 = vpow2.f32 %v4605_v27  ;;  %v7352_v46 = vadd.f32 %v5489_v43, %v7239_v17  ;;  %v934_v49 = vpop.f32.mrb[21].mxu1  ;;  %v1560_v40 = vpack.c.bf16 %v1500_v37, %v1499_v25 }
 0x147   : > { %v6268_v50 = vpop.eup %6267  ;;  %v1313_v52 = vadd.f32 1.0, %v6266_v38  ;;  %6285 = vpow2.f32 %v4603_v32  ;;  %v7355_v53 = vadd.f32 %v7239_v17, %v934_v49  ;;  %v5490_v44 = vpop.f32.mrb[22].mxu1  ;;  %v1559_v54 = vpack.c.bf16 %v1498_v41, %v1497_v31 }
 0x148   : > { %v6270_v56 = vpop.eup %6269  ;;  %6287 = vrcp.f32 %v1315_v45  ;;  %v1316_v48 = vadd.f32 1.0, %v6268_v50  ;;  %v4608_v57 = vmul.f32 -1.442695, %v7352_v46  ;;  %v7359_v58 = vadd.f32 %v5490_v44, %v7239_v17  ;;  %v937_v59 = vpop.f32.mrb[23].mxu1 }
 0x149   : > { %6289 = vrcp.f32 %v1313_v52  ;;  %v1314_v60 = vadd.f32 1.0, %v6270_v56  ;;  %v4606_v62 = vmul.f32 -1.442695, %v7355_v53  ;;  %v7363_v63 = vadd.f32 %v7239_v17, %v937_v59  ;;  %5551 = vmatprep.mubr.bf16.mxu0 %v1559_v54 }
 0x14a   : > { %v6272_v20 = vpop.eup %6271  ;;  %6291 = vrcp.f32 %v1316_v48  ;;  %v4609_v0 = vmul.f32 -1.442695, %v7359_v58  ;;  %5552 = vmatmul.mubr.bf16.gmra.mrb[20].mxu0 %v1560_v40 }
 0x14b   : > { %v6274_v22 = vpop.eup %6273  ;;  %v1503_v3 = vmul.f32 %v6272_v20, %v7289_v61  ;;  %6293 = vrcp.f32 %v1314_v60  ;;  %v4607_v4 = vmul.f32 -1.442695, %v7363_v63 }
 0x14c   : > { %v6276_v26 = vpop.eup %6275  ;;  %v1501_v7 = vmul.f32 %v6274_v22, %v7293_v1  ;;  %6295 = vpow2.f32 %v4608_v57 }
 0x14d   : > { %v6278_v8 = vpop.eup %6277  ;;  %v1504_v30 = vmul.f32 %v6276_v26, %v7297_v6  ;;  %6297 = vpow2.f32 %v4606_v62  ;;  %v5493_v9 = vpop.f32.mrb[24].mxu1 }
 0x14e   : > { %v6280_v12 = vpop.eup %6279  ;;  %v1502_v14 = vmul.f32 %v6278_v8, %v7301_v10  ;;  %6299 = vpow2.f32 %v4609_v0  ;;  %v7372_v16 = vadd.f32 %v5493_v9, %v7239_v17  ;;  %v950_v61 = vpop.f32.mrb[25].mxu1 }
 0x14f   : > { %v6282_v19 = vpop.eup %6281  ;;  %v1319_v24 = vadd.f32 1.0, %v6280_v12  ;;  %6301 = vpow2.f32 %v4607_v4  ;;  %v7375_v25 = vadd.f32 %v7239_v17, %v950_v61  ;;  %v5494_v1 = vpop.f32.mrb[26].mxu1  ;;  %v1562_v27 = vpack.c.bf16 %v1504_v30, %v1503_v3 }
 0x150   : > { %v6284_v28 = vpop.eup %6283  ;;  %v1317_v6 = vadd.f32 1.0, %v6282_v19  ;;  %v7378_v31 = vadd.f32 %v5494_v1, %v7239_v17  ;;  %v953_v32 = vpop.f32.mrb[27].mxu1  ;;  %v1561_v10 = vpack.c.bf16 %v1502_v14, %v1501_v7  ;;  %v4612_v39 = vmul.f32 -1.442695, %v7372_v16 }
 0x151   : > { %v6286_v34 = vpop.eup %6285  ;;  %6303 = vrcp.f32 %v1319_v24  ;;  %v1320_v37 = vadd.f32 1.0, %v6284_v28  ;;  %v7382_v41 = vadd.f32 %v7239_v17, %v953_v32  ;;  %v4610_v45 = vmul.f32 -1.442695, %v7375_v25 }
 0x152   : > { %v6288_v43 = vpop.eup %6287  ;;  %6305 = vrcp.f32 %v1317_v6  ;;  %v1318_v38 = vadd.f32 1.0, %v6286_v34  ;;  %5555 = vmatprep.mubr.bf16.mxu0 %v1561_v10  ;;  %v4613_v50 = vmul.f32 -1.442695, %v7378_v31 }
 0x153   : > { %v6290_v49 = vpop.eup %6289  ;;  %v1507_v40 = vmul.f32 %v6288_v43, %v7311_v29  ;;  %6307 = vrcp.f32 %v1320_v37  ;;  %5556 = vmatmul.mubr.bf16.gmra.mrb[24].mxu0 %v1562_v27  ;;  %v4611_v44 = vmul.f32 -1.442695, %v7382_v41 }
 0x154   : > { %v6292_v52 = vpop.eup %6291  ;;  %6309 = vrcp.f32 %v1318_v38  ;;  %v1505_v59 = vmul.f32 %v6290_v49, %v7315_v35 }
 0x155   : > { %v6294_v54 = vpop.eup %6293  ;;  %v1508_v56 = vmul.f32 %v6292_v52, %v7319_v42  ;;  %6311 = vpow2.f32 %v4612_v39  ;;  %v5497_v48 = vpop.f32.mrb[28].mxu1 }
 0x156   : > { %v6296_v57 = vpop.eup %6295  ;;  %v1506_v60 = vmul.f32 %v6294_v54, %v7323_v47  ;;  %6313 = vpow2.f32 %v4610_v45  ;;  %v7392_v29 = vadd.f32 %v5497_v48, %v7239_v17  ;;  %v966_v62 = vpop.f32.mrb[29].mxu1 }
 0x157   : > { %v6298_v20 = vpop.eup %6297  ;;  %v1323_v0 = vadd.f32 1.0, %v6296_v57  ;;  %6315 = vpow2.f32 %v4613_v50  ;;  %v7395_v22 = vadd.f32 %v7239_v17, %v966_v62  ;;  %v5498_v3 = vpop.f32.mrb[30].mxu1  ;;  %v1564_v42 = vpack.c.bf16 %v1508_v56, %v1507_v40 }
 0x158   : > { %v6300_v4 = vpop.eup %6299  ;;  %v1321_v26 = vadd.f32 1.0, %v6298_v20  ;;  %6317 = vpow2.f32 %v4611_v44  ;;  %v7398_v35 = vadd.f32 %v5498_v3, %v7239_v17  ;;  %v969_v47 = vpop.f32.mrb[31].mxu1  ;;  %v4616_v30 = vmul.f32 -1.442695, %v7392_v29 }
 0x159   : > { %v6302_v7 = vpop.eup %6301  ;;  %6319 = vrcp.f32 %v1323_v0  ;;  %v1324_v8 = vadd.f32 1.0, %v6300_v4  ;;  %v7402_v9 = vadd.f32 %v7239_v17, %v969_v47  ;;  %v4614_v14 = vmul.f32 -1.442695, %v7395_v22 }
 0x15a   : > { %6321 = vrcp.f32 %v1321_v26  ;;  %v1322_v12 = vadd.f32 1.0, %v6302_v7  ;;  %v1563_v61 = vpack.c.bf16 %v1506_v60, %v1505_v59  ;;  %v4617_v24 = vmul.f32 -1.442695, %v7398_v35 }
 0x15b   : > { %v6304_v19 = vpop.eup %6303  ;;  %6323 = vrcp.f32 %v1324_v8  ;;  %v4615_v27 = vmul.f32 -1.442695, %v7402_v9 }
 0x15c   : > { %v6306_v1 = vpop.eup %6305  ;;  %6325 = vrcp.f32 %v1322_v12  ;;  %5559 = vmatprep.mubr.bf16.mxu0 %v1563_v61  ;;  %v1511_v34 = vmul.f32 %v6304_v19, %v7332_v2 }
 0x15d   : > { %v6308_v28 = vpop.eup %6307  ;;  %v1509_v6 = vmul.f32 %v6306_v1, %v7335_v5  ;;  %6327 = vpow2.f32 %v4616_v30  ;;  %5560 = vmatmul.mubr.bf16.gmra.mrb[28].mxu0 %v1564_v42  ;;  %v5501_v32 = vpop.f32.mrb[32].mxu1 }
 0x15e   : > { %v6310_v10 = vpop.eup %6309  ;;  %v1512_v37 = vmul.f32 %v6308_v28, %v7339_v11  ;;  %6329 = vpow2.f32 %v4614_v14  ;;  %v7411_v39 = vadd.f32 %v5501_v32, %v7239_v17  ;;  %v982_v43 = vpop.f32.mrb[33].mxu1 }
 0x15f   : > { %v6312_v38 = vpop.eup %6311  ;;  %v1510_v45 = vmul.f32 %v6310_v10, %v7343_v23  ;;  %6331 = vpow2.f32 %v4617_v24  ;;  %v7415_v49 = vadd.f32 %v7239_v17, %v982_v43  ;;  %v5502_v5 = vpop.f32.mrb[34].mxu1 }
 0x160   : > { %v6314_v40 = vpop.eup %6313  ;;  %v1327_v50 = vadd.f32 1.0, %v6312_v38  ;;  %6333 = vpow2.f32 %v4615_v27  ;;  %v7418_v2 = vadd.f32 %v5502_v5, %v7239_v17  ;;  %v985_v11 = vpop.f32.mrb[35].mxu1  ;;  %v4620_v57 = vmul.f32 -1.442695, %v7411_v39 }
 0x161   : > { %v6316_v52 = vpop.eup %6315  ;;  %v1325_v44 = vadd.f32 1.0, %v6314_v40  ;;  %v7421_v54 = vadd.f32 %v7239_v17, %v985_v11  ;;  %v1565_v56 = vpack.c.bf16 %v1510_v45, %v1509_v6  ;;  %v1566_v59 = vpack.c.bf16 %v1512_v37, %v1511_v34 }
 0x162   : > { %v6318_v48 = vpop.eup %6317  ;;  %6335 = vrcp.f32 %v1327_v50  ;;  %v1328_v23 = vadd.f32 1.0, %v6316_v52  ;;  %v4618_v20 = vmul.f32 -1.442695, %v7415_v49  ;;  %v4621_v3 = vmul.f32 -1.442695, %v7418_v2 }
 0x163   : > { %v6320_v60 = vpop.eup %6319  ;;  %6337 = vrcp.f32 %v1325_v44  ;;  %v1326_v62 = vadd.f32 1.0, %v6318_v48  ;;  %5563 = vmatprep.mubr.bf16.mxu0 %v1565_v56  ;;  %v4619_v4 = vmul.f32 -1.442695, %v7421_v54 }
 0x164   : > { %v6322_v0 = vpop.eup %6321  ;;  %6339 = vrcp.f32 %v1328_v23  ;;  %v1515_v7 = vmul.f32 %v6320_v60, %v7352_v46 }
 0x165   : > { %v6324_v42 = vpop.eup %6323  ;;  %6341 = vrcp.f32 %v1326_v62  ;;  %5564 = vmatmul.mubr.bf16.gmra.mrb[32].mxu0 %v1566_v59  ;;  %v5505_v26 = vpop.f32.mrb[36].mxu1  ;;  %v1513_v8 = vmul.f32 %v6322_v0, %v7355_v53 }
 0x166   : > { %v6326_v47 = vpop.eup %6325  ;;  %6343 = vpow2.f32 %v4620_v57  ;;  %v7430_v30 = vadd.f32 %v5505_v26, %v7239_v17  ;;  %v998_v12 = vpop.f32.mrb[37].mxu1  ;;  %v1516_v61 = vmul.f32 %v6324_v42, %v7359_v58 }
 0x167   : > { %v6328_v14 = vpop.eup %6327  ;;  %v1514_v19 = vmul.f32 %v6326_v47, %v7363_v63  ;;  %6345 = vpow2.f32 %v4618_v20  ;;  %v7435_v24 = vadd.f32 %v7239_v17, %v998_v12  ;;  %v5506_v1 = vpop.f32.mrb[38].mxu1 }
 0x168   : > { %v6330_v27 = vpop.eup %6329  ;;  %v1331_v28 = vadd.f32 1.0, %v6328_v14  ;;  %6347 = vpow2.f32 %v4621_v3  ;;  %v7438_v46 = vadd.f32 %v5506_v1, %v7239_v17  ;;  %v1001_v53 = vpop.f32.mrb[39].mxu1  ;;  %v4624_v34 = vmul.f32 -1.442695, %v7430_v30 }
 0x169   : > { %v6332_v6 = vpop.eup %6331  ;;  %v1329_v32 = vadd.f32 1.0, %v6330_v27  ;;  %6349 = vpow2.f32 %v4619_v4  ;;  %v7441_v10 = vadd.f32 %v7239_v17, %v1001_v53  ;;  %v1567_v37 = vpack.c.bf16 %v1514_v19, %v1513_v8 }
 0x16a   : > { %v6334_v58 = vpop.eup %6333  ;;  %6351 = vrcp.f32 %v1331_v28  ;;  %v1332_v63 = vadd.f32 1.0, %v6332_v6  ;;  %v4622_v38 = vmul.f32 -1.442695, %v7435_v24  ;;  %v1568_v45 = vpack.c.bf16 %v1516_v61, %v1515_v7 }
 0x16b   : > { %6353 = vrcp.f32 %v1329_v32  ;;  %v1330_v43 = vadd.f32 1.0, %v6334_v58  ;;  %v4625_v40 = vmul.f32 -1.442695, %v7438_v46  ;;  %5567 = vmatprep.mubr.bf16.mxu0 %v1567_v37  ;;  %v4623_v11 = vmul.f32 -1.442695, %v7441_v10 }
 0x16c   : > { %v6336_v5 = vpop.eup %6335  ;;  %6355 = vrcp.f32 %v1332_v63 }
 0x16d   : > { %v6338_v50 = vpop.eup %6337  ;;  %6357 = vrcp.f32 %v1330_v43  ;;  %5568 = vmatmul.mubr.bf16.gmra.mrb[36].mxu0 %v1568_v45  ;;  %v5509_v52 = vpop.f32.mrb[40].mxu1  ;;  %v1519_v59 = vmul.f32 %v6336_v5, %v7372_v16 }
 0x16e   : > { %v6340_v44 = vpop.eup %6339  ;;  %v1517_v56 = vmul.f32 %v6338_v50, %v7375_v25  ;;  %6359 = vpow2.f32 %v4624_v34  ;;  %v7449_v48 = vadd.f32 %v5509_v52, %v7239_v17  ;;  %v1014_v23 = vpop.f32.mrb[41].mxu1 }
 0x16f   : > { %v6342_v57 = vpop.eup %6341  ;;  %v1520_v60 = vmul.f32 %v6340_v44, %v7378_v31  ;;  %6361 = vpow2.f32 %v4622_v38  ;;  %v7454_v62 = vadd.f32 %v7239_v17, %v1014_v23  ;;  %v5510_v20 = vpop.f32.mrb[42].mxu1 }
 0x170   : > { %v6344_v0 = vpop.eup %6343  ;;  %v1518_v3 = vmul.f32 %v6342_v57, %v7382_v41  ;;  %6363 = vpow2.f32 %v4625_v40  ;;  %v4628_v25 = vmul.f32 -1.442695, %v7449_v48  ;;  %v7459_v42 = vadd.f32 %v5510_v20, %v7239_v17  ;;  %v1017_v4 = vpop.f32.mrb[43].mxu1 }
 0x171   : > { %v6346_v26 = vpop.eup %6345  ;;  %v1335_v47 = vadd.f32 1.0, %v6344_v0  ;;  %6365 = vpow2.f32 %v4623_v11  ;;  %v7462_v16 = vadd.f32 %v7239_v17, %v1017_v4  ;;  %v4626_v14 = vmul.f32 -1.442695, %v7454_v62 }
 0x172   : > { %v6348_v31 = vpop.eup %6347  ;;  %v1333_v7 = vadd.f32 1.0, %v6346_v26  ;;  %6367 = vpow2.f32 %v4628_v25  ;;  %v1569_v8 = vpack.c.bf16 %v1518_v3, %v1517_v56  ;;  %v1570_v61 = vpack.c.bf16 %v1520_v60, %v1519_v59 }
 0x173   : > { %v6350_v12 = vpop.eup %6349  ;;  %6369 = vrcp.f32 %v1335_v47  ;;  %v1336_v41 = vadd.f32 1.0, %v6348_v31  ;;  %v4629_v27 = vmul.f32 -1.442695, %v7459_v42  ;;  %v4627_v53 = vmul.f32 -1.442695, %v7462_v16 }
 0x174   : > { %v6352_v19 = vpop.eup %6351  ;;  %6371 = vrcp.f32 %v1333_v7  ;;  %v1334_v1 = vadd.f32 1.0, %v6350_v12  ;;  %5571 = vmatprep.mubr.bf16.mxu0 %v1569_v8 }
 0x175   : > { %v6354_v28 = vpop.eup %6353  ;;  %6373 = vrcp.f32 %v1336_v41  ;;  %5572 = vmatmul.mubr.bf16.gmra.mrb[40].mxu0 %v1570_v61  ;;  %v5513_v6 = vpop.f32.mrb[44].mxu1  ;;  %v1523_v43 = vmul.f32 %v6352_v19, %v7392_v29 }
 0x176   : > { %v6356_v32 = vpop.eup %6355  ;;  %v1521_v58 = vmul.f32 %v6354_v28, %v7395_v22  ;;  %6375 = vrcp.f32 %v1334_v1  ;;  %v7469_v63 = vadd.f32 %v5513_v6, %v7239_v17  ;;  %v1030_v34 = vpop.f32.mrb[45].mxu1 }
 0x177   : > { %v6358_v37 = vpop.eup %6357  ;;  %v1524_v38 = vmul.f32 %v6356_v32, %v7398_v35  ;;  %6377 = vpow2.f32 %v4626_v14  ;;  %v5514_v45 = vpop.f32.mrb[46].mxu1  ;;  %v7476_v22 = vadd.f32 %v7239_v17, %v1030_v34 }
 0x178   : > { %v6360_v5 = vpop.eup %6359  ;;  %v1522_v40 = vmul.f32 %v6358_v37, %v7402_v9  ;;  %6379 = vpow2.f32 %v4629_v27  ;;  %v4632_v50 = vmul.f32 -1.442695, %v7469_v63  ;;  %v1033_v11 = vpop.f32.mrb[47].mxu1  ;;  %v7479_v56 = vadd.f32 %v5514_v45, %v7239_v17 }
 0x179   : > { %v6362_v52 = vpop.eup %6361  ;;  %v1339_v44 = vadd.f32 1.0, %v6360_v5  ;;  %6381 = vpow2.f32 %v4627_v53  ;;  %v7482_v23 = vadd.f32 %v7239_v17, %v1033_v11  ;;  %v1572_v60 = vpack.c.bf16 %v1524_v38, %v1523_v43 }
 0x17a   : > { %v6364_v29 = vpop.eup %6363  ;;  %v1337_v35 = vadd.f32 1.0, %v6362_v52  ;;  %6383 = vpow2.f32 %v4632_v50  ;;  %v1571_v9 = vpack.c.bf16 %v1522_v40, %v1521_v58  ;;  %v4630_v3 = vmul.f32 -1.442695, %v7476_v22 }
 0x17b   : > { %v6366_v57 = vpop.eup %6365  ;;  %6385 = vrcp.f32 %v1339_v44  ;;  %v1340_v59 = vadd.f32 1.0, %v6364_v29  ;;  %v4633_v26 = vmul.f32 -1.442695, %v7479_v56  ;;  %v4631_v8 = vmul.f32 -1.442695, %v7482_v23 }
 0x17c   : > { %v6368_v20 = vpop.eup %6367  ;;  %6387 = vrcp.f32 %v1337_v35  ;;  %v1338_v0 = vadd.f32 1.0, %v6366_v57  ;;  %5575 = vmatprep.mubr.bf16.mxu0 %v1571_v9 }
 0x17d   : > { %v6370_v25 = vpop.eup %6369  ;;  %6389 = vrcp.f32 %v1340_v59  ;;  %v1343_v4 = vadd.f32 1.0, %v6368_v20  ;;  %5576 = vmatmul.mubr.bf16.gmra.mrb[44].mxu0 %v1572_v60  ;;  %v5517_v47 = vpop.f32.mrb[48].mxu1 }
 0x17e   : > { %v6372_v31 = vpop.eup %6371  ;;  %v1527_v7 = vmul.f32 %v6370_v25, %v7411_v39  ;;  %6391 = vrcp.f32 %v1338_v0  ;;  %v7489_v12 = vadd.f32 %v5517_v47, %v7239_v17  ;;  %v1046_v41 = vpop.f32.mrb[49].mxu1 }
 0x17f   : > { %v6374_v14 = vpop.eup %6373  ;;  %v1525_v61 = vmul.f32 %v6372_v31, %v7415_v49  ;;  %6393 = vrcp.f32 %v1343_v4  ;;  %v5518_v19 = vpop.f32.mrb[50].mxu1  ;;  %v7495_v39 = vadd.f32 %v7239_v17, %v1046_v41 }
 0x180   : > { %v6376_v1 = vpop.eup %6375  ;;  %v1528_v27 = vmul.f32 %v6374_v14, %v7418_v2  ;;  %6395 = vpow2.f32 %v4630_v3  ;;  %v4636_v28 = vmul.f32 -1.442695, %v7489_v12  ;;  %v1049_v53 = vpop.f32.mrb[51].mxu1  ;;  %v7499_v58 = vadd.f32 %v5518_v19, %v7239_v17 }
 0x181   : > { %v6378_v6 = vpop.eup %6377  ;;  %v1526_v32 = vmul.f32 %v6376_v1, %v7421_v54  ;;  %6397 = vpow2.f32 %v4633_v26  ;;  %v7502_v37 = vadd.f32 %v7239_v17, %v1049_v53  ;;  %v4634_v54 = vmul.f32 -1.442695, %v7495_v39 }
 0x182   : > { %v6380_v49 = vpop.eup %6379  ;;  %v1341_v34 = vadd.f32 1.0, %v6378_v6  ;;  %6399 = vpow2.f32 %v4631_v8  ;;  %v1574_v2 = vpack.c.bf16 %v1528_v27, %v1527_v7  ;;  %v4637_v52 = vmul.f32 -1.442695, %v7499_v58 }
 0x183   : > { %v6382_v43 = vpop.eup %6381  ;;  %v1344_v38 = vadd.f32 1.0, %v6380_v49  ;;  %6401 = vpow2.f32 %v4636_v28  ;;  %v1573_v45 = vpack.c.bf16 %v1526_v32, %v1525_v61  ;;  %v4635_v9 = vmul.f32 -1.442695, %v7502_v37 }
 0x184   : > { %v6384_v5 = vpop.eup %6383  ;;  %6403 = vrcp.f32 %v1341_v34  ;;  %v1342_v40 = vadd.f32 1.0, %v6382_v43 }
 0x185   : > { %v6386_v50 = vpop.eup %6385  ;;  %6405 = vrcp.f32 %v1344_v38  ;;  %v1347_v11 = vadd.f32 1.0, %v6384_v5  ;;  %5579 = vmatprep.mubr.bf16.mxu0 %v1573_v45  ;;  %v5521_v44 = vpop.f32.mrb[52].mxu1 }
 0x186   : > { %v6388_v29 = vpop.eup %6387  ;;  %v1531_v35 = vmul.f32 %v6386_v50, %v7430_v30  ;;  %6407 = vrcp.f32 %v1342_v40  ;;  %5580 = vmatmul.mubr.bf16.gmra.mrb[48].mxu0 %v1574_v2  ;;  %v7509_v57 = vadd.f32 %v5521_v44, %v7239_v17  ;;  %v1062_v59 = vpop.f32.mrb[53].mxu1  ;;  %v7531_v2 = vld [vmem:[%s9011_s4] ss:$0 sm:$0xff] }
 0x187   : > { %v6390_v60 = vpop.eup %6389  ;;  %v1529_v20 = vmul.f32 %v6388_v29, %v7435_v24  ;;  %6409 = vrcp.f32 %v1347_v11  ;;  %v7513_v0 = vadd.f32 %v7239_v17, %v1062_v59  ;;  %v5522_v3 = vpop.f32.mrb[54].mxu1 }
 0x188   : > { %v6392_v25 = vpop.eup %6391  ;;  %v1532_v4 = vmul.f32 %v6390_v60, %v7438_v46  ;;  %6411 = vpow2.f32 %v4634_v54  ;;  %v4640_v30 = vmul.f32 -1.442695, %v7509_v57  ;;  %v1065_v26 = vpop.f32.mrb[55].mxu1  ;;  %v7520_v24 = vadd.f32 %v5522_v3, %v7239_v17 }
 0x189   : > { %v6394_v47 = vpop.eup %6393  ;;  %v1530_v31 = vmul.f32 %v6392_v25, %v7441_v10  ;;  %6413 = vpow2.f32 %v4637_v52  ;;  %v4638_v7 = vmul.f32 -1.442695, %v7513_v0  ;;  %v7523_v41 = vadd.f32 %v7239_v17, %v1065_v26 }
 0x18a   : > { %v6396_v8 = vpop.eup %6395  ;;  %6415 = vpow2.f32 %v4635_v9  ;;  %v1576_v14 = vpack.c.bf16 %v1532_v4, %v1531_v35  ;;  %v1535_v28 = vmul.f32 %v6394_v47, %v7449_v48  ;;  %v4641_v6 = vmul.f32 -1.442695, %v7520_v24 }
 0x18b   : > { %v6398_v46 = vpop.eup %6397  ;;  %v1345_v61 = vadd.f32 1.0, %v6396_v8  ;;  %6417 = vpow2.f32 %v4640_v30  ;;  %v1575_v19 = vpack.c.bf16 %v1530_v31, %v1529_v20  ;;  %v4639_v34 = vmul.f32 -1.442695, %v7523_v41 }
 0x18c   : > { %v6400_v1 = vpop.eup %6399  ;;  %v1348_v27 = vadd.f32 1.0, %v6398_v46  ;;  %6419 = vpow2.f32 %v4638_v7 }
 0x18d   : > { %v6402_v10 = vpop.eup %6401  ;;  %6421 = vrcp.f32 %v1345_v61  ;;  %v1346_v53 = vadd.f32 1.0, %v6400_v1  ;;  %5583 = vmatprep.mubr.bf16.mxu0 %v1575_v19  ;;  %v5525_v32 = vpop.f32.mrb[56].mxu1 }
 0x18e   : > { %v6404_v49 = vpop.eup %6403  ;;  %6423 = vrcp.f32 %v1348_v27  ;;  %v1351_v17 = vadd.f32 1.0, %v6402_v10  ;;  %5584 = vmatmul.mubr.bf16.gmra.mrb[52].mxu0 %v1576_v14  ;;  %v7534_v43 = vadd.f32 %v7531_v2, %v5525_v32  ;;  %v1078_v48 = vpop.f32.mrb[57].mxu1 }
 0x18f   : > { %v6406_v38 = vpop.eup %6405  ;;  %v1533_v45 = vmul.f32 %v6404_v49, %v7454_v62  ;;  %6425 = vrcp.f32 %v1346_v53  ;;  %v7538_v5 = vadd.f32 %v7531_v2, %v1078_v48  ;;  %v5526_v40 = vpop.f32.mrb[58].mxu1 }
 0x190   : > { %v6408_v54 = vpop.eup %6407  ;;  %v1536_v50 = vmul.f32 %v6406_v38, %v7459_v42  ;;  %6427 = vrcp.f32 %v1351_v17  ;;  %v4644_v11 = vmul.f32 -1.442695, %v7534_v43  ;;  %v1081_v52 = vpop.f32.mrb[59].mxu1  ;;  %v7545_v62 = vadd.f32 %v7531_v2, %v5526_v40 }
 0x191   : > { %v6410_v44 = vpop.eup %6409  ;;  %v1534_v29 = vmul.f32 %v6408_v54, %v7462_v16  ;;  %6429 = vpow2.f32 %v4641_v6  ;;  %v4642_v35 = vmul.f32 -1.442695, %v7538_v5  ;;  %v7548_v42 = vadd.f32 %v7531_v2, %v1081_v52 }
 0x192   : > { %v6412_v9 = vpop.eup %6411  ;;  %6431 = vpow2.f32 %v4639_v34  ;;  %v1578_v59 = vpack.c.bf16 %v1536_v50, %v1535_v28  ;;  %v1539_v30 = vmul.f32 %v6410_v44, %v7469_v63  ;;  %v4645_v8 = vmul.f32 -1.442695, %v7545_v62 }
 0x193   : > { %v6414_v60 = vpop.eup %6413  ;;  %v1349_v20 = vadd.f32 1.0, %v6412_v9  ;;  %6433 = vpow2.f32 %v4644_v11  ;;  %v1577_v3 = vpack.c.bf16 %v1534_v29, %v1533_v45  ;;  %v4643_v1 = vmul.f32 -1.442695, %v7548_v42 }
 0x194   : > { %v6416_v25 = vpop.eup %6415  ;;  %v1352_v4 = vadd.f32 1.0, %v6414_v60  ;;  %6435 = vpow2.f32 %v4642_v35 }
 0x195   : > { %v6418_v16 = vpop.eup %6417  ;;  %6437 = vrcp.f32 %v1349_v20  ;;  %v1350_v26 = vadd.f32 1.0, %v6416_v25  ;;  %5587 = vmatprep.mubr.bf16.mxu0 %v1577_v3  ;;  %v5529_v47 = vpop.f32.mrb[60].mxu1 }
 0x196   : > { %v6420_v31 = vpop.eup %6419  ;;  %6439 = vrcp.f32 %v1352_v4  ;;  %v1355_v7 = vadd.f32 1.0, %v6418_v16  ;;  %5588 = vmatmul.mubr.bf16.gmra.mrb[56].mxu0 %v1578_v59  ;;  %v7553_v14 = vadd.f32 %v7531_v2, %v5529_v47  ;;  %v1094_v46 = vpop.f32.mrb[61].mxu1 }
 0x197   : > { %v6422_v61 = vpop.eup %6421  ;;  %6441 = vrcp.f32 %v1350_v26  ;;  %v1353_v19 = vadd.f32 1.0, %v6420_v31  ;;  %v7557_v63 = vadd.f32 %v7531_v2, %v1094_v46  ;;  %v5530_v27 = vpop.f32.mrb[62].mxu1 }
 0x198   : > { %v6424_v10 = vpop.eup %6423  ;;  %v1537_v28 = vmul.f32 %v6422_v61, %v7476_v22  ;;  %6443 = vrcp.f32 %v1355_v7  ;;  %v4648_v53 = vmul.f32 -1.442695, %v7553_v14  ;;  %v1097_v6 = vpop.f32.mrb[63].mxu1  ;;  %v7565_v38 = vadd.f32 %v7531_v2, %v5530_v27 }
 0x199   : > { %v6426_v32 = vpop.eup %6425  ;;  %v1540_v49 = vmul.f32 %v6424_v10, %v7479_v56  ;;  %6445 = vrcp.f32 %v1353_v19  ;;  %v4646_v17 = vmul.f32 -1.442695, %v7557_v63  ;;  %v7568_v22 = vadd.f32 %v7531_v2, %v1097_v6 }
 0x19a   : > { %v6428_v34 = vpop.eup %6427  ;;  %v1538_v48 = vmul.f32 %v6426_v32, %v7482_v23  ;;  %6447 = vpow2.f32 %v4645_v8  ;;  %v4649_v29 = vmul.f32 -1.442695, %v7565_v38 }
 0x19b   : > { %v6430_v45 = vpop.eup %6429  ;;  %6449 = vpow2.f32 %v4643_v1  ;;  %v1580_v40 = vpack.c.bf16 %v1540_v49, %v1539_v30  ;;  %v1543_v9 = vmul.f32 %v6428_v34, %v7489_v12  ;;  %v4647_v2 = vmul.f32 -1.442695, %v7568_v22 }
 0x19c   : > { %v6432_v54 = vpop.eup %6431  ;;  %v1356_v50 = vadd.f32 1.0, %v6430_v45  ;;  %6451 = vpow2.f32 %v4648_v53  ;;  %v1579_v56 = vpack.c.bf16 %v1538_v48, %v1537_v28 }
 0x19d   : > { %v6434_v11 = vpop.eup %6433  ;;  %v1354_v52 = vadd.f32 1.0, %v6432_v54  ;;  %6453 = vpow2.f32 %v4646_v17 }
 0x19e   : > { %v6436_v44 = vpop.eup %6435  ;;  %6455 = vrcp.f32 %v1356_v50  ;;  %v1359_v23 = vadd.f32 1.0, %v6434_v11  ;;  %5591 = vmatprep.mubr.bf16.mxu0 %v1579_v56 }
 0x19f   : > { %v6438_v35 = vpop.eup %6437  ;;  %6457 = vrcp.f32 %v1354_v52  ;;  %5592 = vmatmul.mubr.bf16.gmra.mrb[60].mxu0 %v1580_v40  ;;  %v1357_v20 = vadd.f32 1.0, %v6436_v44 }
 0x1a0   : > { %v6440_v59 = vpop.eup %6439  ;;  %v1541_v60 = vmul.f32 %v6438_v35, %v7495_v39  ;;  %6459 = vrcp.f32 %v1359_v23 }
 0x1a1   : > { %v6442_v3 = vpop.eup %6441  ;;  %v1544_v25 = vmul.f32 %v6440_v59, %v7499_v58  ;;  %6461 = vpow2.f32 %v4649_v29 }
 0x1a2   : > { %v6444_v4 = vpop.eup %6443  ;;  %v1542_v16 = vmul.f32 %v6442_v3, %v7502_v37  ;;  %6463 = vpow2.f32 %v4647_v2 }
 0x1a3   : > { %v6446_v30 = vpop.eup %6445  ;;  %v1582_v26 = vpack.c.bf16 %v1544_v25, %v1543_v9  ;;  %6465 = vrcp.f32 %v1357_v20  ;;  %v1547_v61 = vmul.f32 %v6444_v4, %v7509_v57  ;;  %v1949_v9 = vld [vmem:[%s7592_s26] sm:$0xff] }
 0x1a4   : > { %v6448_v12 = vpop.eup %6447  ;;  %v1581_v47 = vpack.c.bf16 %v1542_v16, %v1541_v60  ;;  %v1545_v37 = vmul.f32 %v6446_v30, %v7513_v0 }
 0x1a5   : > { %v6450_v31 = vpop.eup %6449  ;;  %v1360_v7 = vadd.f32 1.0, %v6448_v12 }
 0x1a6   : > { %v6452_v8 = vpop.eup %6451  ;;  %v1358_v46 = vadd.f32 1.0, %v6450_v31  ;;  %5595 = vmatprep.mubr.bf16.mxu0 %v1581_v47 }
 0x1a7   : > { %v6454_v39 = vpop.eup %6453  ;;  %6467 = vrcp.f32 %v1360_v7  ;;  %v1363_v58 = vadd.f32 1.0, %v6452_v8  ;;  %5596 = vmatmul.mubr.bf16.gmra.mrb[64].mxu0 %v1582_v26 }
 0x1a8   : > { %v6456_v19 = vpop.eup %6455  ;;  %6469 = vrcp.f32 %v1358_v46  ;;  %v1361_v1 = vadd.f32 1.0, %v6454_v39 }
 0x1a9   : > { %v6458_v27 = vpop.eup %6457  ;;  %v1548_v10 = vmul.f32 %v6456_v19, %v7520_v24  ;;  %6471 = vrcp.f32 %v1363_v58 }
 0x1aa   : > { %v1546_v28 = vmul.f32 %v6458_v27, %v7523_v41  ;;  %v6460_v53 = vpop.eup %6459  ;;  %6473 = vrcp.f32 %v1361_v1  ;;  %v1951_v27 = vld [vmem:[%s7592_s26 + $0x10] sm:$0xff] }
 0x1ab   : > { %v1584_v6 = vpack.c.bf16 %v1548_v10, %v1547_v61  ;;  %v6462_v32 = vpop.eup %6461  ;;  %v1551_v0 = vmul.f32 %v6460_v53, %v7534_v43 }
 0x1ac   : > { %v1583_v49 = vpack.c.bf16 %v1546_v28, %v1545_v37  ;;  %v6464_v57 = vpop.eup %6463  ;;  %v1364_v17 = vadd.f32 1.0, %v6462_v32  ;;  %v1950_v37 = vld [vmem:[%s7592_s26 + $0x8] sm:$0xff]  ;;  %v1953_v32 = vld [vmem:[%s7592_s26 + $0x20] sm:$0xff] }
 0x1ad   : > { %v6466_v34 = vpop.eup %6465  ;;  %v1362_v48 = vadd.f32 1.0, %v6464_v57 }
 0x1ae   : > { %5599 = vmatprep.mubr.bf16.mxu0 %v1583_v49  ;;  %6475 = vrcp.f32 %v1364_v17  ;;  %v1549_v24 = vmul.f32 %v6466_v34, %v7538_v5  ;;  %v1954_v49 = vld [vmem:[%s7592_s26 + $0x28] sm:$0xff]  ;;  %v1955_v17 = vld [vmem:[%s7592_s26 + $0x30] sm:$0xff] }
 0x1af   : > { %5600 = vmatmul.mubr.bf16.gmra.mrb[68].mxu0 %v1584_v6  ;;  %6477 = vrcp.f32 %v1362_v48  ;;  %v1952_v6 = vld [vmem:[%s7592_s26 + $0x18] sm:$0xff] }
 0x1b1   : > { %v6468_v45 = vpop.eup %6467 }
 0x1b2   : > { %v6470_v41 = vpop.eup %6469  ;;  %v1552_v40 = vmul.f32 %v6468_v45, %v7545_v62  ;;  %v1956_v45 = vld [vmem:[%s7592_s26 + $0x38] sm:$0xff] }
 0x1b3   : > { %v1550_v54 = vmul.f32 %v6470_v41, %v7548_v42  ;;  %v6472_v56 = vpop.eup %6471  ;;  %v1958_v41 = vld [vmem:[%s7592_s26 + $0x48] sm:$0xff] }
 0x1b4   : > { %v1586_v50 = vpack.c.bf16 %v1552_v40, %v1551_v0  ;;  %v6474_v52 = vpop.eup %6473  ;;  %v1555_v44 = vmul.f32 %v6472_v56, %v7553_v14  ;;  %v1959_v40 = vld [vmem:[%s7592_s26 + $0x50] sm:$0xff] }
 0x1b5   : > { %v1585_v11 = vpack.c.bf16 %v1550_v54, %v1549_v24  ;;  %v1553_v43 = vmul.f32 %v6474_v52, %v7557_v63  ;;  %v1957_v24 = vld [vmem:[%s7592_s26 + $0x40] sm:$0xff] }
 0x1b7   : > { %5603 = vmatprep.mubr.bf16.mxu0 %v1585_v11  ;;  %v1960_v11 = vld [vmem:[%s7592_s26 + $0x58] sm:$0xff] }
 0x1b8   : > { %5604 = vmatmul.mubr.bf16.gmra.mrb[72].mxu0 %v1586_v50  ;;  %v6476_v23 = vpop.eup %6475 }
 0x1b9   : > { %v6478_v29 = vpop.eup %6477  ;;  %v1556_v35 = vmul.f32 %v6476_v23, %v7565_v38  ;;  %v1962_v23 = vld [vmem:[%s7592_s26 + $0x68] sm:$0xff] }
 0x1ba   : > { %v1554_v5 = vmul.f32 %v6478_v29, %v7568_v22 }
 0x1bb   : > { %v1588_v62 = vpack.c.bf16 %v1556_v35, %v1555_v44  ;;  %v1961_v44 = vld [vmem:[%s7592_s26 + $0x60] sm:$0xff]  ;;  %v1964_v35 = vld [vmem:[%s7592_s26 + $0x78] sm:$0xff] }
 0x1bc   : > { %v1587_v42 = vpack.c.bf16 %v1554_v5, %v1553_v43  ;;  %v1963_v43 = vld [vmem:[%s7592_s26 + $0x70] sm:$0xff] }
 0x1be   : > { %5607 = vmatprep.mubr.bf16.mxu0 %v1587_v42 }
 0x1c0   : > { %5608 = vmatmul.mubr.bf16.gmra.mrb[76].mxu0 %v1588_v62  ;;  %v1965_v62 = vld [vmem:[%s7592_s26 + $0x80] sm:$0xff] }
 0x1c1   : > { %5675 = vmatprep.mubr.f32.mxu0 %v1949_v9 }
 0x1f3   : > { %v5629_v14 = vpop.f32.mrb[64].mxu1 }
 0x1f4   : > { %v2215_v63 = vpop.f32.mrb[65].mxu1 }
 0x1f5   : > { %v5630_v2 = vpop.f32.mrb[66].mxu1 }
 0x1f6   : > { %v5935_v59 = vpack.c.bf16 %v5630_v2, %v5629_v14  ;;  %v2218_v38 = vpop.f32.mrb[67].mxu1  ;;  %v1966_v14 = vld [vmem:[%s7592_s26 + $0x88] sm:$0xff] }
 0x1f7   : > { %v5931_v60 = vpack.c.bf16 %v2218_v38, %v2215_v63  ;;  %v1967_v63 = vld [vmem:[%s7592_s26 + $0x90] sm:$0xff] }
 0x1f9   : > { %5932 = vmatprep.subr.bf16.mxu0 %v5931_v60 }
 0x1fa   : > { %5934 = vmatpush3.bf16.msra.mxu0 %v5931_v60  ;;  %v1969_v60 = vld [vmem:[%s7592_s26 + $0xa0] sm:$0xff] }
 0x1fb   : > { %v5633_v20 = vpop.f32.mrb[68].mxu1  ;;  %5936 = vmatprep.subr.bf16.mxu0 %v5935_v59 }
 0x1fc   : > { %v2231_v3 = vpop.f32.mrb[69].mxu1 }
 0x1fd   : > { %v5634_v25 = vpop.f32.mrb[70].mxu1 }
 0x1fe   : > { %v5943_v4 = vpack.c.bf16 %v5634_v25, %v5633_v20  ;;  %v2234_v22 = vpop.f32.mrb[71].mxu1  ;;  %5938 = vmatpush3.bf16.msra.mxu0 %v5935_v59  ;;  %v1968_v59 = vld [vmem:[%s7592_s26 + $0x98] sm:$0xff]  ;;  %v1970_v25 = vld [vmem:[%s7592_s26 + $0xa8] sm:$0xff] }
 0x1ff   : > { %v5939_v16 = vpack.c.bf16 %v2234_v22, %v2231_v3 }
 0x201   : > { %5940 = vmatprep.subr.bf16.mxu0 %v5939_v16 }
 0x202   : > { %5942 = vmatpush3.bf16.msra.mxu0 %v5939_v16  ;;  %v1972_v16 = vld [vmem:[%s7592_s26 + $0xb8] sm:$0xff] }
 0x203   : > { %v5637_v30 = vpop.f32.mrb[72].mxu1  ;;  %5944 = vmatprep.subr.bf16.mxu0 %v5943_v4 }
 0x204   : > { %v2247_v26 = vpop.f32.mrb[73].mxu1 }
 0x205   : > { %v5638_v12 = vpop.f32.mrb[74].mxu1 }
 0x206   : > { %v5951_v47 = vpack.c.bf16 %v5638_v12, %v5637_v30  ;;  %v2250_v31 = vpop.f32.mrb[75].mxu1  ;;  %5946 = vmatpush3.bf16.msra.mxu0 %v5943_v4  ;;  %v1971_v4 = vld [vmem:[%s7592_s26 + $0xb0] sm:$0xff] }
 0x207   : > { %v5947_v7 = vpack.c.bf16 %v2250_v31, %v2247_v26  ;;  %v1973_v26 = vld [vmem:[%s7592_s26 + $0xc0] sm:$0xff]  ;;  %v1974_v31 = vld [vmem:[%s7592_s26 + $0xc8] sm:$0xff] }
 0x209   : > { %5948 = vmatprep.subr.bf16.mxu0 %v5947_v7 }
 0x20a   : > { %5950 = vmatpush3.bf16.msra.mxu0 %v5947_v7  ;;  %v1975_v7 = vld [vmem:[%s7592_s26 + $0xd0] sm:$0xff] }
 0x20b   : > { %v5641_v8 = vpop.f32.mrb[76].mxu1  ;;  %5952 = vmatprep.subr.bf16.mxu0 %v5951_v47 }
 0x20c   : > { %v2263_v46 = vpop.f32.mrb[77].mxu1 }
 0x20d   : > { %v5642_v39 = vpop.f32.mrb[78].mxu1 }
 0x20e   : > { %v5959_v61 = vpack.c.bf16 %v5642_v39, %v5641_v8  ;;  %v2266_v58 = vpop.f32.mrb[79].mxu1  ;;  %5954 = vmatpush3.bf16.msra.mxu0 %v5951_v47 }
 0x20f   : > { %v5955_v19 = vpack.c.bf16 %v2266_v58, %v2263_v46  ;;  %v1976_v46 = vld [vmem:[%s7592_s26 + $0xd8] sm:$0xff] }
 0x211   : > { %5956 = vmatprep.subr.bf16.mxu0 %v5955_v19 }
 0x212   : > { %5958 = vmatpush3.bf16.msra.mxu0 %v5955_v19 }
 0x213   : > { %5960 = vmatprep.subr.bf16.mxu0 %v5959_v61 }
 0x215   : > { %v7597_v1 = vpop.f32.mrb[16].mxu0 }
 0x216   : > { %5962 = vmatpush3.bf16.msra.mxu0 %v5959_v61  ;;  %v7600_v10 = vpop.f32.mrb[17].mxu0  ;;  %v1977_v61 = vld [vmem:[%s7592_s26 + $0xe0] sm:$0xff] }
 0x217   : > { %v7602_v28 = vpop.f32.mrb[18].mxu0 }
 0x218   : > { %v7604_v53 = vpop.f32.mrb[19].mxu0 }
 0x219   : > { %5676 = vmatmul.mubr.f32.vlgmr.msra.gmra.mrb[80].mxu0 %v1950_v37  ;;  %v1978_v37 = vld [vmem:[%s7592_s26 + $0xe8] sm:$0xff] }
 0x21a   : > { %5678 = vmatprep.mubr.f32.mxu0 %v1951_v27  ;;  %v1979_v27 = vld [vmem:[%s7592_s26 + $0xf0] sm:$0xff] }
 0x21d   : > { %5679 = vmatmul.mubr.f32.gmra.mrb[82].mxu0 %v1952_v6  ;;  %v7609_v57 = vpop.f32.mrb[20].mxu0 }
 0x21e   : > { %5681 = vmatprep.mubr.f32.mxu0 %v1953_v32  ;;  %v7612_v34 = vpop.f32.mrb[21].mxu0  ;;  %v1980_v32 = vld [vmem:[%s7592_s26 + $0xf8] sm:$0xff] }
 0x21f   : > { %v7614_v48 = vpop.f32.mrb[22].mxu0 }
 0x220   : > { %v7616_v0 = vpop.f32.mrb[23].mxu0 }
 0x221   : > { %5682 = vmatmul.mubr.f32.gmra.mrb[84].mxu0 %v1954_v49 }
 0x222   : > { %5684 = vmatprep.mubr.f32.mxu0 %v1955_v17  ;;  %v1981_v17 = vld [vmem:[%s7592_s26 + $0x100] sm:$0xff] }
 0x225   : > { %5685 = vmatmul.mubr.f32.gmra.mrb[86].mxu0 %v1956_v45 }
 0x226   : > { %5687 = vmatprep.mubr.f32.mxu0 %v1957_v24  ;;  %v7622_v54 = vpop.f32.mrb[24].mxu0 }
 0x227   : > { %v7624_v50 = vpop.f32.mrb[25].mxu0 }
 0x228   : > { %v7626_v56 = vpop.f32.mrb[26].mxu0 }
 0x229   : > { %5688 = vmatmul.mubr.f32.gmra.mrb[88].mxu0 %v1958_v41  ;;  %v7629_v52 = vpop.f32.mrb[27].mxu0  ;;  %v1982_v41 = vld [vmem:[%s7592_s26 + $0x108] sm:$0xff] }
 0x22a   : > { %5690 = vmatprep.mubr.f32.mxu0 %v1959_v40  ;;  %v1983_v40 = vld [vmem:[%s7592_s26 + $0x110] sm:$0xff] }
 0x22d   : > { %5691 = vmatmul.mubr.f32.gmra.mrb[90].mxu0 %v1960_v11  ;;  %v1984_v11 = vld [vmem:[%s7592_s26 + $0x118] sm:$0xff] }
 0x22e   : > { %5693 = vmatprep.mubr.f32.mxu0 %v1961_v44 }
 0x230   : > { %v7634_v29 = vpop.f32.mrb[28].mxu0 }
 0x231   : > { %5694 = vmatmul.mubr.f32.gmra.mrb[92].mxu0 %v1962_v23  ;;  %v7637_v5 = vpop.f32.mrb[29].mxu0  ;;  %v1985_v23 = vld [vmem:[%s7592_s26 + $0x120] sm:$0xff] }
 0x232   : > { %5696 = vmatprep.mubr.f32.mxu0 %v1963_v43  ;;  %v7640_v42 = vpop.f32.mrb[30].mxu0 }
 0x233   : > { %v7642_v9 = vpop.f32.mrb[31].mxu0 }
 0x235   : > { %5697 = vmatmul.mubr.f32.gmra.mrb[94].mxu0 %v1964_v35 }
 0x236   : > { %5699 = vmatprep.mubr.f32.mxu0 %v1965_v62 }
 0x238   : > { %v7646_v2 = vpop.f32.mrb[32].mxu0 }
 0x239   : > { %5700 = vmatmul.mubr.f32.gmra.mrb[96].mxu0 %v1966_v14  ;;  %v7649_v38 = vpop.f32.mrb[33].mxu0  ;;  %v1986_v14 = vld [vmem:[%s7592_s26 + $0x128] sm:$0xff] }
 0x23a   : > { %5702 = vmatprep.mubr.f32.mxu0 %v1967_v63  ;;  %v7652_v20 = vpop.f32.mrb[34].mxu0  ;;  %v1987_v63 = vld [vmem:[%s7592_s26 + $0x130] sm:$0xff] }
 0x23b   : > { %v7654_v3 = vpop.f32.mrb[35].mxu0 }
 0x23d   : > { %5703 = vmatmul.mubr.f32.gmra.mrb[98].mxu0 %v1968_v59  ;;  %v1988_v59 = vld [vmem:[%s7592_s26 + $0x138] sm:$0xff] }
 0x23e   : > { %5705 = vmatprep.mubr.f32.mxu0 %v1969_v60 }
 0x240   : > { %v7658_v22 = vpop.f32.mrb[36].mxu0 }
 0x241   : > { %5706 = vmatmul.mubr.f32.gmra.mrb[100].mxu0 %v1970_v25  ;;  %v7661_v30 = vpop.f32.mrb[37].mxu0  ;;  %v1989_v25 = vld [vmem:[%s7592_s26 + $0x140] sm:$0xff] }
 0x242   : > { %5708 = vmatprep.mubr.f32.mxu0 %v1971_v4  ;;  %v7664_v12 = vpop.f32.mrb[38].mxu0 }
 0x243   : > { %v7666_v47 = vpop.f32.mrb[39].mxu0 }
 0x245   : > { %5709 = vmatmul.mubr.f32.gmra.mrb[102].mxu0 %v1972_v16 }
 0x246   : > { %5711 = vmatprep.mubr.f32.mxu0 %v1973_v26 }
 0x248   : > { %v7670_v8 = vpop.f32.mrb[40].mxu0 }
 0x249   : > { %5712 = vmatmul.mubr.f32.gmra.mrb[104].mxu0 %v1974_v31  ;;  %v7673_v39 = vpop.f32.mrb[41].mxu0  ;;  %v1990_v31 = vld [vmem:[%s7592_s26 + $0x148] sm:$0xff] }
 0x24a   : > { %5714 = vmatprep.mubr.f32.mxu0 %v1975_v7  ;;  %v7676_v58 = vpop.f32.mrb[42].mxu0  ;;  %v1991_v7 = vld [vmem:[%s7592_s26 + $0x150] sm:$0xff] }
 0x24b   : > { %v7678_v19 = vpop.f32.mrb[43].mxu0 }
 0x24d   : > { %5715 = vmatmul.mubr.f32.gmra.mrb[106].mxu0 %v1976_v46  ;;  %v1992_v46 = vld [vmem:[%s7592_s26 + $0x158] sm:$0xff] }
 0x24e   : > { %5717 = vmatprep.mubr.f32.mxu0 %v1977_v61 }
 0x250   : > { %v7682_v6 = vpop.f32.mrb[44].mxu0 }
 0x251   : > { %5718 = vmatmul.mubr.f32.gmra.mrb[108].mxu0 %v1978_v37  ;;  %v7685_v49 = vpop.f32.mrb[45].mxu0  ;;  %v1993_v37 = vld [vmem:[%s7592_s26 + $0x160] sm:$0xff] }
 0x252   : > { %5720 = vmatprep.mubr.f32.mxu0 %v1979_v27  ;;  %v7688_v45 = vpop.f32.mrb[46].mxu0 }
 0x253   : > { %v7690_v24 = vpop.f32.mrb[47].mxu0 }
 0x255   : > { %5721 = vmatmul.mubr.f32.gmra.mrb[110].mxu0 %v1980_v32 }
 0x256   : > { %5723 = vmatprep.mubr.f32.mxu0 %v1981_v17 }
 0x259   : > { %5724 = vmatmul.mubr.f32.gmra.mrb[112].mxu0 %v1982_v41  ;;  %v7695_v44 = vpop.f32.mrb[48].mxu0  ;;  %v1994_v41 = vld [vmem:[%s7592_s26 + $0x168] sm:$0xff] }
 0x25a   : > { %5726 = vmatprep.mubr.f32.mxu0 %v1983_v40  ;;  %v7698_v43 = vpop.f32.mrb[49].mxu0  ;;  %v1995_v40 = vld [vmem:[%s7592_s26 + $0x170] sm:$0xff] }
 0x25b   : > { %v7700_v35 = vpop.f32.mrb[50].mxu0 }
 0x25c   : > { %v7702_v62 = vpop.f32.mrb[51].mxu0 }
 0x25d   : > { %5727 = vmatmul.mubr.f32.gmra.mrb[114].mxu0 %v1984_v11  ;;  %v1996_v11 = vld [vmem:[%s7592_s26 + $0x178] sm:$0xff] }
 0x25e   : > { %5729 = vmatprep.mubr.f32.mxu0 %v1985_v23  ;;  %v1997_v23 = vld [vmem:[%s7592_s26 + $0x180] sm:$0xff] }
 0x261   : > { %5730 = vmatmul.mubr.f32.gmra.mrb[116].mxu0 %v1986_v14  ;;  %v7707_v60 = vpop.f32.mrb[52].mxu0 }
 0x262   : > { %5732 = vmatprep.mubr.f32.mxu0 %v1987_v63  ;;  %v7710_v4 = vpop.f32.mrb[53].mxu0 }
 0x263   : > { %v7712_v16 = vpop.f32.mrb[54].mxu0 }
 0x264   : > { %v7714_v26 = vpop.f32.mrb[55].mxu0 }
 0x265   : > { %5733 = vmatmul.mubr.f32.gmra.mrb[118].mxu0 %v1988_v59 }
 0x266   : > { %5735 = vmatprep.mubr.f32.mxu0 %v1989_v25  ;;  %v1998_v25 = vld [vmem:[%s7592_s26 + $0x188] sm:$0xff] }
 0x269   : > { %5736 = vmatmul.mubr.f32.gmra.mrb[120].mxu0 %v1990_v31  ;;  %v7719_v61 = vpop.f32.mrb[56].mxu0 }
 0x26a   : > { %5738 = vmatprep.mubr.f32.mxu0 %v1991_v7  ;;  %v7722_v27 = vpop.f32.mrb[57].mxu0  ;;  %v1999_v7 = vld [vmem:[%s7592_s26 + $0x190] sm:$0xff] }
 0x26b   : > { %v7724_v32 = vpop.f32.mrb[58].mxu0 }
 0x26c   : > { %v7726_v17 = vpop.f32.mrb[59].mxu0 }
 0x26d   : > { %5739 = vmatmul.mubr.f32.gmra.mrb[122].mxu0 %v1992_v46  ;;  %v2000_v46 = vld [vmem:[%s7592_s26 + $0x198] sm:$0xff] }
 0x26e   : > { %5741 = vmatprep.mubr.f32.mxu0 %v1993_v37  ;;  %v2001_v37 = vld [vmem:[%s7592_s26 + $0x1a0] sm:$0xff] }
 0x271   : > { %5742 = vmatmul.mubr.f32.gmra.mrb[124].mxu0 %v1994_v41 }
 0x272   : > { %5744 = vmatprep.mubr.f32.mxu0 %v1995_v40  ;;  %v7732_v14 = vpop.f32.mrb[60].mxu0 }
 0x273   : > { %v7734_v63 = vpop.f32.mrb[61].mxu0 }
 0x274   : > { %v7736_v59 = vpop.f32.mrb[62].mxu0 }
 0x275   : > { %5745 = vmatmul.mubr.f32.gmra.mrb[126].mxu0 %v1996_v11  ;;  %v7739_v31 = vpop.f32.mrb[63].mxu0 }
 0x276   : > { %5747 = vmatprep.mubr.f32.mxu0 %v1997_v23  ;;  %v2002_v23 = vld [vmem:[%s7592_s26 + $0x1a8] sm:$0xff] }
 0x279   : > { %5748 = vmatmul.mubr.f32.gmra.mrb[128].mxu0 %v1998_v25  ;;  %v2004_v25 = vld [vmem:[%s7592_s26 + $0x1b8] sm:$0xff] }
 0x27a   : > { %5750 = vmatprep.mubr.f32.mxu0 %v1999_v7  ;;  %v7744_v41 = vpop.f32.mrb[64].mxu0  ;;  %v2005_v7 = vld [vmem:[%s7592_s26 + $0x1c0] sm:$0xff] }
 0x27b   : > { %v7746_v40 = vpop.f32.mrb[65].mxu0 }
 0x27c   : > { %v7748_v11 = vpop.f32.mrb[66].mxu0 }
 0x27d   : > { %5751 = vmatmul.mubr.f32.gmra.mrb[130].mxu0 %v2000_v46  ;;  %v7751_v13 = vpop.f32.mrb[67].mxu0 }
 0x27e   : > { %5753 = vmatprep.mubr.f32.mxu0 %v2001_v37  ;;  %v2006_v37 = vld [vmem:[%s7592_s26 + $0x1c8] sm:$0xff] }
 0x281   : > { %5754 = vmatmul.mubr.f32.gmra.mrb[132].mxu0 %v2002_v23  ;;  %v2009_v23 = vld [vmem:[%s7592_s26 + $0x1e0] sm:$0xff] }
 0x282   : > { %5756 = vmatprep.mubr.f32.mxu0 %v2003_v21  ;;  %v7756_v51 = vpop.f32.mrb[68].mxu0  ;;  %v2008_v21 = vld [vmem:[%s7592_s26 + $0x1d8] sm:$0xff] }
 0x283   : > { %9094 = vst [vmem:[#allocation17_spill] sm:$0xff] %v7756_v51  ;;  %v7758_v55 = vpop.f32.mrb[69].mxu0 }
 0x284   : > { %9095 = vst [vmem:[#allocation18_spill] sm:$0xff] %v7758_v55  ;;  %v7760_v46 = vpop.f32.mrb[70].mxu0 }
 0x285   : > { %5757 = vmatmul.mubr.f32.gmra.mrb[134].mxu0 %v2004_v25  ;;  %9096 = vst [vmem:[#allocation19_spill] sm:$0xff] %v7760_v46  ;;  %v7763_v33 = vpop.f32.mrb[71].mxu0  ;;  %v2010_v25 = vld [vmem:[%s7592_s26 + $0x1e8] sm:$0xff] }
 0x286   : > { %5759 = vmatprep.mubr.f32.mxu0 %v2005_v7  ;;  %9097 = vst [vmem:[#allocation20_spill] sm:$0xff] %v7763_v33  ;;  %v2011_v7 = vld [vmem:[%s7592_s26 + $0x1f0] sm:$0xff]  ;;  %v2012_v33 = vld [vmem:[%s7592_s26 + $0x1f8] sm:$0xff] }
 0x289   : > { %5760 = vmatmul.mubr.f32.gmra.mrb[136].mxu0 %v2006_v37 }
 0x28a   : > { %5762 = vmatprep.mubr.f32.mxu0 %v2007_v36 }
 0x28b   : > { %v7768_v15 = vpop.f32.mrb[72].mxu0 }
 0x28c   : > { %9098 = vst [vmem:[#allocation21_spill] sm:$0xff] %v7768_v15  ;;  %v7770_v51 = vpop.f32.mrb[73].mxu0 }
 0x28d   : > { %5763 = vmatmul.mubr.f32.gmra.mrb[138].mxu0 %v2008_v21  ;;  %9099 = vst [vmem:[#allocation22_spill] sm:$0xff] %v7770_v51  ;;  %v7773_v55 = vpop.f32.mrb[74].mxu0 }
 0x28e   : > { %5765 = vmatprep.mubr.f32.mxu0 %v2009_v23  ;;  %9100 = vst [vmem:[#allocation23_spill] sm:$0xff] %v7773_v55  ;;  %v7776_v46 = vpop.f32.mrb[75].mxu0  ;;  %v2014_v23 = vld [vmem:[%s7032_s27 + $0x8] sm:$0xff]  ;;  %v7792_v55 = vld [vmem:[%s9013_s6] ss:$0 sm:$0xff] }
 0x28f   : > { %9101 = vst [vmem:[#allocation24_spill] sm:$0xff] %v7776_v46  ;;  %2791 = vmatprep.mubr.f32.mxu1 %v2014_v23 }
 0x291   : > { %5766 = vmatmul.mubr.f32.gmra.mrb[140].mxu0 %v2010_v25  ;;  %v7796_v25 = vadd.f32 %v7792_v55, %v7604_v53  ;;  %v7814_v53 = vadd.f32 %v7597_v1, %v7792_v55 }
 0x292   : > { %5768 = vmatprep.mubr.f32.mxu0 %v2011_v7 }
 0x293   : > { %v7779_v37 = vpop.f32.mrb[76].mxu0  ;;  %9106 = vst [vmem:[#allocation29_spill] sm:$0xff] %v7796_v25  ;;  %9109 = vst [vmem:[#allocation32_spill] sm:$0xff] %v7814_v53 }
 0x294   : > { %9102 = vst [vmem:[#allocation25_spill] sm:$0xff] %v7779_v37  ;;  %v7781_v36 = vpop.f32.mrb[77].mxu0 }
 0x295   : > { %5769 = vmatmul.mubr.f32.gmra.mrb[142].mxu0 %v2012_v33  ;;  %9103 = vst [vmem:[#allocation26_spill] sm:$0xff] %v7781_v36  ;;  %v7784_v21 = vpop.f32.mrb[78].mxu0  ;;  %v7800_v33 = vadd.f32 %v7792_v55, %v7600_v10 }
 0x296   : > { %3153 = vmatprep.mubr.bf16.mxu0 %v7241_v18  ;;  %9104 = vst [vmem:[#allocation27_spill] sm:$0xff] %v7784_v21  ;;  %v7786_v15 = vpop.f32.mrb[79].mxu0  ;;  %v7810_v21 = vadd.f32 %v7602_v28, %v7792_v55  ;;  %v7830_v28 = vadd.f32 %v7792_v55, %v7612_v34 }
 0x297   : > { %9105 = vst [vmem:[#allocation28_spill] sm:$0xff] %v7786_v15  ;;  %9107 = vst [vmem:[#allocation30_spill] sm:$0xff] %v7800_v33 }
 0x298   : > { %9108 = vst [vmem:[#allocation31_spill] sm:$0xff] %v7810_v21  ;;  %9111 = vst [vmem:[#allocation34_spill] sm:$0xff] %v7830_v28 }
 0x2ec   : > { %v5677_v18 = vpop.f32.mrb[80].mxu0 }
 0x2ed   : > { %v7803_v7 = vmul.f32 %v5677_v18, %v7796_v25  ;;  %v2344_v37 = vpop.f32.mrb[81].mxu0 }
 0x2ee   : > { %v7806_v23 = vmul.f32 %v2344_v37, %v7800_v33  ;;  %v7826_v37 = vadd.f32 %v7792_v55, %v7616_v0  ;;  %v7846_v0 = vadd.f32 %v7609_v57, %v7792_v55 }
 0x2f0   : > { %v5680_v36 = vpop.f32.mrb[82].mxu0  ;;  %9110 = vst [vmem:[#allocation33_spill] sm:$0xff] %v7826_v37  ;;  %9113 = vst [vmem:[#allocation36_spill] sm:$0xff] %v7846_v0 }
 0x2f1   : > { %v7819_v15 = vmul.f32 %v5680_v36, %v7810_v21  ;;  %v2354_v18 = vpop.f32.mrb[83].mxu0 }
 0x2f2   : > { %v7822_v25 = vmul.f32 %v2354_v18, %v7814_v53  ;;  %v7842_v18 = vadd.f32 %v7614_v48, %v7792_v55  ;;  %v7862_v48 = vadd.f32 %v7792_v55, %v7624_v50 }
 0x2f4   : > { %v5683_v10 = vpop.f32.mrb[84].mxu0  ;;  %9112 = vst [vmem:[#allocation35_spill] sm:$0xff] %v7842_v18  ;;  %9115 = vst [vmem:[#allocation38_spill] sm:$0xff] %v7862_v48 }
 0x2f5   : > { %v7835_v33 = vmul.f32 %v5683_v10, %v7826_v37  ;;  %v2364_v36 = vpop.f32.mrb[85].mxu0 }
 0x2f6   : > { %v7838_v21 = vmul.f32 %v2364_v36, %v7830_v28  ;;  %v7858_v36 = vadd.f32 %v7792_v55, %v7629_v52  ;;  %v7878_v52 = vadd.f32 %v7622_v54, %v7792_v55 }
 0x2f8   : > { %v5686_v1 = vpop.f32.mrb[86].mxu0  ;;  %9114 = vst [vmem:[#allocation37_spill] sm:$0xff] %v7858_v36  ;;  %9117 = vst [vmem:[#allocation40_spill] sm:$0xff] %v7878_v52 }
 0x2f9   : > { %v7851_v53 = vmul.f32 %v5686_v1, %v7842_v18  ;;  %v2374_v10 = vpop.f32.mrb[87].mxu0 }
 0x2fa   : > { %v7854_v37 = vmul.f32 %v2374_v10, %v7846_v0  ;;  %v7874_v10 = vadd.f32 %v7626_v56, %v7792_v55  ;;  %v7894_v56 = vadd.f32 %v7792_v55, %v7637_v5 }
 0x2fc   : > { %v5689_v34 = vpop.f32.mrb[88].mxu0  ;;  %9116 = vst [vmem:[#allocation39_spill] sm:$0xff] %v7874_v10  ;;  %9119 = vst [vmem:[#allocation42_spill] sm:$0xff] %v7894_v56 }
 0x2fd   : > { %v7867_v28 = vmul.f32 %v5689_v34, %v7858_v36  ;;  %v2384_v1 = vpop.f32.mrb[89].mxu0 }
 0x2fe   : > { %v7870_v18 = vmul.f32 %v2384_v1, %v7862_v48  ;;  %v7890_v1 = vadd.f32 %v7792_v55, %v7642_v9  ;;  %v7910_v9 = vadd.f32 %v7634_v29, %v7792_v55 }
 0x300   : > { %v5692_v57 = vpop.f32.mrb[90].mxu0  ;;  %9118 = vst [vmem:[#allocation41_spill] sm:$0xff] %v7890_v1  ;;  %9121 = vst [vmem:[#allocation44_spill] sm:$0xff] %v7910_v9 }
 0x301   : > { %v7883_v0 = vmul.f32 %v5692_v57, %v7874_v10  ;;  %v2394_v34 = vpop.f32.mrb[91].mxu0 }
 0x302   : > { %v7886_v36 = vmul.f32 %v2394_v34, %v7878_v52  ;;  %v7906_v34 = vadd.f32 %v7640_v42, %v7792_v55  ;;  %v7926_v42 = vadd.f32 %v7792_v55, %v7649_v38 }
 0x304   : > { %v5695_v50 = vpop.f32.mrb[92].mxu0  ;;  %9120 = vst [vmem:[#allocation43_spill] sm:$0xff] %v7906_v34 }
 0x305   : > { %v7899_v48 = vmul.f32 %v5695_v50, %v7890_v1  ;;  %v2404_v57 = vpop.f32.mrb[93].mxu0 }
 0x306   : > { %v7902_v10 = vmul.f32 %v2404_v57, %v7894_v56  ;;  %v7922_v57 = vadd.f32 %v7792_v55, %v7654_v3  ;;  %v7938_v3 = vadd.f32 %v7646_v2, %v7792_v55  ;;  %v7951_v2 = vadd.f32 %v7792_v55, %v7661_v30 }
 0x307   : > { %v7964_v30 = vadd.f32 %v7658_v22, %v7792_v55  ;;  %v7977_v22 = vadd.f32 %v7792_v55, %v7673_v39  ;;  %v7990_v39 = vadd.f32 %v7670_v8, %v7792_v55  ;;  %v8003_v8 = vadd.f32 %v7792_v55, %v7685_v49 }
 0x308   : > { %v5698_v54 = vpop.f32.mrb[94].mxu0  ;;  %v8016_v49 = vadd.f32 %v7682_v6, %v7792_v55  ;;  %v8029_v6 = vadd.f32 %v7792_v55, %v7698_v43  ;;  %v2013_v43 = vld [vmem:[%s7032_s27] sm:$0xff] }
 0x309   : > { %v7915_v52 = vmul.f32 %v5698_v54, %v7906_v34  ;;  %v2414_v50 = vpop.f32.mrb[95].mxu0  ;;  %9128 = vst [vmem:[#allocation46_spill] sm:$0xff] %v8003_v8 }
 0x30a   : > { %v7918_v1 = vmul.f32 %v2414_v50, %v7910_v9  ;;  %v7934_v50 = vadd.f32 %v7652_v20, %v7792_v55  ;;  %v9122_v20 = vpack.c.bf16 %v7803_v7, %v7806_v23  ;;  %v9123_v7 = vpack.c.bf16 %v7819_v15, %v7822_v25  ;;  %9131 = vst [vmem:[#allocation48_spill] sm:$0xff] %v8016_v49 }
 0x30b   : > { %v9124_v15 = vpack.c.bf16 %v7835_v33, %v7838_v21  ;;  %v9125_v21 = vpack.c.bf16 %v7851_v53, %v7854_v37  ;;  %v9127_v53 = vpack.c.bf16 %v7867_v28, %v7870_v18  ;;  %v9130_v28 = vpack.c.bf16 %v7883_v0, %v7886_v36  ;;  %9134 = vst [vmem:[#allocation50_spill] sm:$0xff] %v8029_v6 }
 0x30c   : > { %v5701_v5 = vpop.f32.mrb[96].mxu0  ;;  %v9133_v0 = vpack.c.bf16 %v7899_v48, %v7902_v10  ;;  %v9136_v48 = vpack.c.bf16 %v7915_v52, %v7918_v1  ;;  %v8047_v10 = vadd.f32 %v7695_v44, %v7792_v55  ;;  %v8060_v52 = vadd.f32 %v7792_v55, %v7714_v26  ;;  %v2017_v44 = vld [vmem:[%s7032_s27 + $0x20] sm:$0xff] }
 0x30d   : > { %v2680_v56 = vmul.f32 %v5701_v5, %v7922_v57  ;;  %v2424_v54 = vpop.f32.mrb[97].mxu0  ;;  %v7944_v5 = vadd.f32 %v7792_v55, %v7666_v47  ;;  %v7957_v47 = vadd.f32 %v7664_v12, %v7792_v55  ;;  %v7970_v12 = vadd.f32 %v7792_v55, %v7678_v19 }
 0x30e   : > { %v2679_v34 = vmul.f32 %v2424_v54, %v7926_v42  ;;  %v7983_v19 = vadd.f32 %v7676_v58, %v7792_v55  ;;  %v7996_v58 = vadd.f32 %v7792_v55, %v7690_v24  ;;  %v8009_v24 = vadd.f32 %v7688_v45, %v7792_v55  ;;  %9137 = vst [vmem:[#allocation52_spill] sm:$0xff] %v8047_v10 }
 0x30f   : > { %v8022_v45 = vadd.f32 %v7792_v55, %v7702_v62  ;;  %v8039_v62 = vadd.f32 %v7700_v35, %v7792_v55  ;;  %9138 = vst [vmem:[#allocation53_spill] sm:$0xff] %v8060_v52  ;;  %v8065_v1 = vadd.f32 %v7792_v55, %v7710_v4  ;;  %v2021_v4 = vld [vmem:[%s7032_s27 + $0x40] sm:$0xff] }
 0x310   : > { %v5963_v9 = vpack.c.bf16 %v2680_v56, %v2679_v34  ;;  %v5704_v38 = vpop.f32.mrb[98].mxu0  ;;  %9126 = vst [vmem:[#allocation45_spill] sm:$0xff] %v7996_v58  ;;  %9129 = vst [vmem:[#allocation47_spill] sm:$0xff] %v8009_v24 }
 0x311   : > { %v2682_v51 = vmul.f32 %v5704_v38, %v7934_v50  ;;  %v2434_v46 = vpop.f32.mrb[99].mxu0  ;;  %9132 = vst [vmem:[#allocation49_spill] sm:$0xff] %v8022_v45  ;;  %9135 = vst [vmem:[#allocation51_spill] sm:$0xff] %v8039_v62 }
 0x312   : > { %v2681_v29 = vmul.f32 %v2434_v46, %v7938_v3  ;;  %5964 = vmatprep.subr.bf16.mxu1 %v5963_v9  ;;  %9139 = vst [vmem:[#allocation54_spill] sm:$0xff] %v8065_v1 }
 0x313   : > { %5966 = vmatpush3.bf16.msra.mxu1 %v9122_v20 }
 0x314   : > { %v5967_v56 = vpack.c.bf16 %v2682_v51, %v2681_v29  ;;  %v5707_v34 = vpop.f32.mrb[100].mxu0 }
 0x315   : > { %v2684_v54 = vmul.f32 %v5707_v34, %v7944_v5  ;;  %v2444_v38 = vpop.f32.mrb[101].mxu0 }
 0x316   : > { %v2683_v46 = vmul.f32 %v2444_v38, %v7951_v2  ;;  %5968 = vmatprep.subr.bf16.mxu1 %v5967_v56 }
 0x317   : > { %5970 = vmatpush3.bf16.msra.mxu1 %v9123_v7 }
 0x318   : > { %v5971_v51 = vpack.c.bf16 %v2684_v54, %v2683_v46  ;;  %v5710_v23 = vpop.f32.mrb[102].mxu0 }
 0x319   : > { %v2686_v9 = vmul.f32 %v5710_v23, %v7957_v47  ;;  %v2454_v29 = vpop.f32.mrb[103].mxu0 }
 0x31a   : > { %v2685_v20 = vmul.f32 %v2454_v29, %v7964_v30  ;;  %5972 = vmatprep.subr.bf16.mxu1 %v5971_v51 }
 0x31b   : > { %5974 = vmatpush3.bf16.msra.mxu1 %v9124_v15 }
 0x31c   : > { %v5975_v25 = vpack.c.bf16 %v2686_v9, %v2685_v20  ;;  %v5713_v56 = vpop.f32.mrb[104].mxu0 }
 0x31d   : > { %v2688_v34 = vmul.f32 %v5713_v56, %v7970_v12  ;;  %v2464_v54 = vpop.f32.mrb[105].mxu0 }
 0x31e   : > { %v2687_v38 = vmul.f32 %v2464_v54, %v7977_v22  ;;  %5976 = vmatprep.subr.bf16.mxu1 %v5975_v25 }
 0x31f   : > { %5978 = vmatpush3.bf16.msra.mxu1 %v9125_v21 }
 0x320   : > { %v5979_v33 = vpack.c.bf16 %v2688_v34, %v2687_v38  ;;  %v5716_v46 = vpop.f32.mrb[106].mxu0 }
 0x321   : > { %v2690_v7 = vmul.f32 %v5716_v46, %v7983_v19  ;;  %v2474_v51 = vpop.f32.mrb[107].mxu0 }
 0x322   : > { %v2689_v23 = vmul.f32 %v2474_v51, %v7990_v39  ;;  %5980 = vmatprep.subr.bf16.mxu1 %v5979_v33 }
 0x323   : > { %5982 = vmatpush3.bf16.msra.mxu1 %v9127_v53 }
 0x324   : > { %v5983_v37 = vpack.c.bf16 %v2690_v7, %v2689_v23  ;;  %v5719_v9 = vpop.f32.mrb[108].mxu0  ;;  %v2018_v23 = vld [vmem:[%s7032_s27 + $0x28] sm:$0xff] }
 0x325   : > { %v2692_v29 = vmul.f32 %v5719_v9, %v7996_v58  ;;  %v2484_v20 = vpop.f32.mrb[109].mxu0 }
 0x326   : > { %v2691_v15 = vmul.f32 %v2484_v20, %v8003_v8  ;;  %5984 = vmatprep.subr.bf16.mxu1 %v5983_v37  ;;  %v2022_v20 = vld [vmem:[%s7032_s27 + $0x48] sm:$0xff] }
 0x327   : > { %5986 = vmatpush3.bf16.msra.mxu1 %v9130_v28 }
 0x328   : > { %v5987_v18 = vpack.c.bf16 %v2692_v29, %v2691_v15  ;;  %v5722_v25 = vpop.f32.mrb[110].mxu0 }
 0x329   : > { %v2694_v56 = vmul.f32 %v5722_v25, %v8009_v24  ;;  %v2494_v34 = vpop.f32.mrb[111].mxu0  ;;  %v8083_v25 = vadd.f32 %v7707_v60, %v7792_v55  ;;  %v2025_v60 = vld [vmem:[%s7032_s27 + $0x60] sm:$0xff] }
 0x32a   : > { %v2693_v54 = vmul.f32 %v2494_v34, %v8016_v49  ;;  %5988 = vmatprep.subr.bf16.mxu1 %v5987_v18  ;;  %v8078_v18 = vadd.f32 %v7712_v16, %v7792_v55 }
 0x32b   : > { %5990 = vmatpush3.bf16.msra.mxu1 %v9133_v0  ;;  %9141 = vst [vmem:[#allocation56_spill] sm:$0xff] %v8083_v25 }
 0x32c   : > { %v5991_v36 = vpack.c.bf16 %v2694_v56, %v2693_v54  ;;  %v5725_v38 = vpop.f32.mrb[112].mxu0  ;;  %9140 = vst [vmem:[#allocation55_spill] sm:$0xff] %v8078_v18  ;;  %v2026_v54 = vld [vmem:[%s7032_s27 + $0x68] sm:$0xff] }
 0x32d   : > { %v8032_v21 = vmul.f32 %v5725_v38, %v8022_v45  ;;  %v2504_v33 = vpop.f32.mrb[113].mxu0  ;;  %v8096_v38 = vadd.f32 %v7792_v55, %v7726_v17  ;;  %v2046_v56 = vld [vmem:[%s7032_s27 + $0x108] sm:$0xff] }
 0x32e   : > { %v8035_v46 = vmul.f32 %v2504_v33, %v8029_v6  ;;  %5992 = vmatprep.subr.bf16.mxu1 %v5991_v36  ;;  %v8101_v33 = vadd.f32 %v7792_v55, %v7722_v27  ;;  %v2029_v27 = vld [vmem:[%s7032_s27 + $0x80] sm:$0xff] }
 0x32f   : > { %5994 = vmatpush3.bf16.msra.mxu1 %v9136_v48  ;;  %9142 = vst [vmem:[#allocation57_spill] sm:$0xff] %v8096_v38 }
 0x330   : > { %v5728_v51 = vpop.f32.mrb[114].mxu0  ;;  %9143 = vst [vmem:[#allocation58_spill] sm:$0xff] %v8101_v33 }
 0x331   : > { %v8053_v53 = vmul.f32 %v5728_v51, %v8039_v62  ;;  %v2514_v35 = vpop.f32.mrb[115].mxu0  ;;  %v2030_v51 = vld [vmem:[%s7032_s27 + $0x88] sm:$0xff] }
 0x332   : > { %v8056_v37 = vmul.f32 %v2514_v35, %v8047_v10  ;;  %2792 = vmatmul.mubr.f32.vlgmr.msra.gmra.mrb[80].mxu1 %v2013_v43 }
 0x333   : > { %2796 = vmatprep.mubr.f32.mxu1 %v2018_v23 }
 0x334   : > { %v5731_v29 = vpop.f32.mrb[116].mxu0 }
 0x335   : > { %v8071_v15 = vmul.f32 %v5731_v29, %v8060_v52  ;;  %v2524_v28 = vpop.f32.mrb[117].mxu0  ;;  %v8119_v29 = vadd.f32 %v7719_v61, %v7792_v55  ;;  %v2033_v61 = vld [vmem:[%s7032_s27 + $0xa0] sm:$0xff] }
 0x336   : > { %v8074_v26 = vmul.f32 %v2524_v28, %v8065_v1  ;;  %2797 = vmatmul.mubr.f32.gmra.mrb[82].mxu1 %v2017_v44  ;;  %v8114_v44 = vadd.f32 %v7724_v32, %v7792_v55 }
 0x337   : > { %2801 = vmatprep.mubr.f32.mxu1 %v2022_v20  ;;  %9145 = vst [vmem:[#allocation60_spill] sm:$0xff] %v8119_v29  ;;  %v2042_v20 = vld [vmem:[%s7032_s27 + $0xe8] sm:$0xff] }
 0x338   : > { %v5734_v34 = vpop.f32.mrb[118].mxu0  ;;  %9144 = vst [vmem:[#allocation59_spill] sm:$0xff] %v8114_v44 }
 0x339   : > { %v8089_v0 = vmul.f32 %v5734_v34, %v8078_v18  ;;  %v2534_v36 = vpop.f32.mrb[119].mxu0 }
 0x33a   : > { %v8092_v16 = vmul.f32 %v2534_v36, %v8083_v25  ;;  %2802 = vmatmul.mubr.f32.gmra.mrb[84].mxu1 %v2021_v4  ;;  %v2034_v4 = vld [vmem:[%s7032_s27 + $0xa8] sm:$0xff]  ;;  %v8132_v36 = vadd.f32 %v7792_v55, %v7739_v31 }
 0x33b   : > { %2806 = vmatprep.mubr.f32.mxu1 %v2026_v54 }
 0x33c   : > { %v5737_v43 = vpop.f32.mrb[120].mxu0  ;;  %9146 = vst [vmem:[#allocation61_spill] sm:$0xff] %v8132_v36 }
 0x33d   : > { %v8107_v23 = vmul.f32 %v5737_v43, %v8096_v38  ;;  %v2544_v35 = vpop.f32.mrb[121].mxu0 }
 0x33e   : > { %v8110_v17 = vmul.f32 %v2544_v35, %v8101_v33  ;;  %2807 = vmatmul.mubr.f32.gmra.mrb[86].mxu1 %v2025_v60  ;;  %v8137_v60 = vadd.f32 %v7792_v55, %v7734_v63  ;;  %v2038_v35 = vld [vmem:[%s7032_s27 + $0xc8] sm:$0xff]  ;;  %v2037_v63 = vld [vmem:[%s7032_s27 + $0xc0] sm:$0xff] }
 0x33f   : > { %2811 = vmatprep.mubr.f32.mxu1 %v2030_v51 }
 0x340   : > { %v5740_v28 = vpop.f32.mrb[122].mxu0  ;;  %9147 = vst [vmem:[#allocation62_spill] sm:$0xff] %v8137_v60 }
 0x341   : > { %v8125_v34 = vmul.f32 %v5740_v28, %v8114_v44  ;;  %v2554_v54 = vpop.f32.mrb[123].mxu0 }
 0x342   : > { %v8128_v32 = vmul.f32 %v2554_v54, %v8119_v29  ;;  %2812 = vmatmul.mubr.f32.gmra.mrb[88].mxu1 %v2029_v27  ;;  %v8155_v54 = vadd.f32 %v7732_v14, %v7792_v55  ;;  %v2041_v14 = vld [vmem:[%s7032_s27 + $0xe0] sm:$0xff] }
 0x343   : > { %2816 = vmatprep.mubr.f32.mxu1 %v2034_v4  ;;  %v8150_v4 = vadd.f32 %v7736_v59, %v7792_v55 }
 0x344   : > { %v5743_v51 = vpop.f32.mrb[124].mxu0  ;;  %9149 = vst [vmem:[#allocation64_spill] sm:$0xff] %v8155_v54 }
 0x345   : > { %v8143_v28 = vmul.f32 %v5743_v51, %v8132_v36  ;;  %v2564_v27 = vpop.f32.mrb[125].mxu0  ;;  %9148 = vst [vmem:[#allocation63_spill] sm:$0xff] %v8150_v4  ;;  %v8173_v51 = vadd.f32 %v7792_v55, %v7746_v40  ;;  %v8187_v40 = vadd.f32 %v7744_v41, %v7792_v55  ;;  %v2049_v41 = vld [vmem:[%s7032_s27 + $0x120] sm:$0xff] }
 0x346   : > { %v8146_v31 = vmul.f32 %v2564_v27, %v8137_v60  ;;  %2817 = vmatmul.mubr.f32.gmra.mrb[90].mxu1 %v2033_v61 }
 0x347   : > { %2821 = vmatprep.mubr.f32.mxu1 %v2038_v35  ;;  %v8168_v35 = vadd.f32 %v7792_v55, %v7751_v13  ;;  %9151 = vst [vmem:[#allocation66_spill] sm:$0xff] %v8173_v51  ;;  %v8182_v13 = vadd.f32 %v7748_v11, %v7792_v55  ;;  %9153 = vst [vmem:[#allocation68_spill] sm:$0xff] %v8187_v40 }
 0x348   : > { %v5746_v43 = vpop.f32.mrb[126].mxu0 }
 0x349   : > { %v8161_v27 = vmul.f32 %v5746_v43, %v8150_v4  ;;  %v2574_v61 = vpop.f32.mrb[127].mxu0  ;;  %9150 = vst [vmem:[#allocation65_spill] sm:$0xff] %v8168_v35  ;;  %9152 = vst [vmem:[#allocation67_spill] sm:$0xff] %v8182_v13 }
 0x34a   : > { %v8164_v59 = vmul.f32 %v2574_v61, %v8155_v54  ;;  %2822 = vmatmul.mubr.f32.gmra.mrb[92].mxu1 %v2037_v63  ;;  %v2050_v54 = vld [vmem:[%s7032_s27 + $0x128] sm:$0xff] }
 0x34b   : > { %2826 = vmatprep.mubr.f32.mxu1 %v2042_v20  ;;  %v2045_v20 = vld [vmem:[%s7032_s27 + $0x100] sm:$0xff] }
 0x34c   : > { %v5749_v48 = vpop.f32.mrb[128].mxu0 }
 0x34d   : > { %v2712_v61 = vmul.f32 %v5749_v48, %v8168_v35  ;;  %v2584_v9 = vpop.f32.mrb[129].mxu0 }
 0x34e   : > { %v2711_v63 = vmul.f32 %v2584_v9, %v8173_v51  ;;  %2827 = vmatmul.mubr.f32.gmra.mrb[94].mxu1 %v2041_v14  ;;  %v9154_v14 = vld [vmem:[#allocation20_spill] sm:$0xff] }
 0x34f   : > { %2831 = vmatprep.mubr.f32.mxu1 %v2046_v56  ;;  %v8194_v11 = vadd.f32 %v7792_v55, %v9154_v14  ;;  %v9156_v56 = vpack.c.bf16 %v8032_v21, %v8035_v46  ;;  %v9159_v21 = vld [vmem:[#allocation19_spill] sm:$0xff] }
 0x350   : > { %v5995_v43 = vpack.c.bf16 %v2712_v61, %v2711_v63  ;;  %v5752_v7 = vpop.f32.mrb[130].mxu0  ;;  %v9157_v61 = vld [vmem:[#allocation18_spill] sm:$0xff]  ;;  %v8209_v46 = vadd.f32 %v9159_v21, %v7792_v55 }
 0x351   : > { %v2714_v48 = vmul.f32 %v5752_v7, %v8182_v13  ;;  %v2594_v35 = vpop.f32.mrb[131].mxu0  ;;  %9155 = vst [vmem:[#allocation20_spill] sm:$0xff] %v8194_v11  ;;  %v8202_v63 = vadd.f32 %v7792_v55, %v9157_v61 }
 0x352   : > { %v2713_v9 = vmul.f32 %v2594_v35, %v8187_v40  ;;  %2832 = vmatmul.mubr.f32.gmra.mrb[96].mxu1 %v2045_v20  ;;  %5996 = vmatprep.subr.bf16.mxu1 %v5995_v43  ;;  %v2054_v20 = vld [vmem:[%s7032_s27 + $0x148] sm:$0xff]  ;;  %9160 = vst [vmem:[#allocation19_spill] sm:$0xff] %v8209_v46 }
 0x353   : > { %5998 = vmatpush3.bf16.msra.mxu1 %v9156_v56  ;;  %2836 = vmatprep.mubr.f32.mxu1 %v2050_v54  ;;  %9158 = vst [vmem:[#allocation18_spill] sm:$0xff] %v8202_v63  ;;  %v9161_v54 = vpack.c.bf16 %v8053_v53, %v8056_v37  ;;  %v9164_v53 = vld [vmem:[#allocation24_spill] sm:$0xff] }
 0x354   : > { %v5999_v7 = vpack.c.bf16 %v2714_v48, %v2713_v9  ;;  %v5755_v35 = vpop.f32.mrb[132].mxu0  ;;  %v2053_v48 = vld [vmem:[%s7032_s27 + $0x140] sm:$0xff]  ;;  %v9162_v9 = vld [vmem:[#allocation17_spill] sm:$0xff]  ;;  %v8224_v37 = vadd.f32 %v7792_v55, %v9164_v53 }
 0x355   : > { %v2716_v43 = vmul.f32 %v5755_v35, %v8194_v11  ;;  %v2604_v40 = vpop.f32.mrb[133].mxu0  ;;  %v8217_v56 = vadd.f32 %v9162_v9, %v7792_v55 }
 0x356   : > { %v2715_v14 = vmul.f32 %v2604_v40, %v8202_v63  ;;  %2837 = vmatmul.mubr.f32.gmra.mrb[98].mxu1 %v2049_v41  ;;  %6000 = vmatprep.subr.bf16.mxu1 %v5999_v7  ;;  %v2058_v41 = vld [vmem:[%s7032_s27 + $0x168] sm:$0xff]  ;;  %9165 = vst [vmem:[#allocation24_spill] sm:$0xff] %v8224_v37 }
 0x357   : > { %6002 = vmatpush3.bf16.msra.mxu1 %v9161_v54  ;;  %2841 = vmatprep.mubr.f32.mxu1 %v2054_v20  ;;  %9163 = vst [vmem:[#allocation17_spill] sm:$0xff] %v8217_v56  ;;  %v9166_v20 = vpack.c.bf16 %v8071_v15, %v8074_v26  ;;  %v9169_v15 = vld [vmem:[#allocation23_spill] sm:$0xff] }
 0x358   : > { %v6003_v61 = vpack.c.bf16 %v2716_v43, %v2715_v14  ;;  %v5758_v40 = vpop.f32.mrb[134].mxu0  ;;  %v2057_v43 = vld [vmem:[%s7032_s27 + $0x160] sm:$0xff]  ;;  %v8239_v26 = vadd.f32 %v9169_v15, %v7792_v55 }
 0x359   : > { %v2718_v7 = vmul.f32 %v5758_v40, %v8209_v46  ;;  %v2614_v35 = vpop.f32.mrb[135].mxu0  ;;  %v9167_v14 = vld [vmem:[#allocation22_spill] sm:$0xff] }
 0x35a   : > { %v2717_v21 = vmul.f32 %v2614_v35, %v8217_v56  ;;  %2842 = vmatmul.mubr.f32.gmra.mrb[100].mxu1 %v2053_v48  ;;  %6004 = vmatprep.subr.bf16.mxu1 %v6003_v61  ;;  %v8232_v54 = vadd.f32 %v7792_v55, %v9167_v14  ;;  %v2062_v48 = vld [vmem:[%s7032_s27 + $0x188] sm:$0xff]  ;;  %9170 = vst [vmem:[#allocation23_spill] sm:$0xff] %v8239_v26 }
 0x35b   : > { %6006 = vmatpush3.bf16.msra.mxu1 %v9166_v20  ;;  %2846 = vmatprep.mubr.f32.mxu1 %v2058_v41  ;;  %v9171_v41 = vpack.c.bf16 %v8089_v0, %v8092_v16  ;;  %v9174_v0 = vld [vmem:[#allocation28_spill] sm:$0xff] }
 0x35c   : > { %9168 = vst [vmem:[#allocation22_spill] sm:$0xff] %v8232_v54  ;;  %v6007_v9 = vpack.c.bf16 %v2718_v7, %v2717_v21  ;;  %v5761_v40 = vpop.f32.mrb[136].mxu0  ;;  %v2061_v7 = vld [vmem:[%s7032_s27 + $0x180] sm:$0xff]  ;;  %v9172_v21 = vld [vmem:[#allocation21_spill] sm:$0xff]  ;;  %v8254_v16 = vadd.f32 %v7792_v55, %v9174_v0 }
 0x35d   : > { %v2720_v61 = vmul.f32 %v5761_v40, %v8224_v37  ;;  %v2624_v35 = vpop.f32.mrb[137].mxu0  ;;  %v8247_v20 = vadd.f32 %v9172_v21, %v7792_v55 }
 0x35e   : > { %v2719_v53 = vmul.f32 %v2624_v35, %v8232_v54  ;;  %2847 = vmatmul.mubr.f32.gmra.mrb[102].mxu1 %v2057_v43  ;;  %6008 = vmatprep.subr.bf16.mxu1 %v6007_v9  ;;  %v2066_v43 = vld [vmem:[%s7032_s27 + $0x1a8] sm:$0xff]  ;;  %9175 = vst [vmem:[#allocation28_spill] sm:$0xff] %v8254_v16 }
 0x35f   : > { %6010 = vmatpush3.bf16.msra.mxu1 %v9171_v41  ;;  %2851 = vmatprep.mubr.f32.mxu1 %v2062_v48  ;;  %9173 = vst [vmem:[#allocation21_spill] sm:$0xff] %v8247_v20  ;;  %v9176_v48 = vpack.c.bf16 %v8107_v23, %v8110_v17  ;;  %v9179_v23 = vld [vmem:[#allocation27_spill] sm:$0xff] }
 0x360   : > { %v6011_v14 = vpack.c.bf16 %v2720_v61, %v2719_v53  ;;  %v5764_v40 = vpop.f32.mrb[138].mxu0  ;;  %v2065_v61 = vld [vmem:[%s7032_s27 + $0x1a0] sm:$0xff]  ;;  %v8269_v17 = vadd.f32 %v9179_v23, %v7792_v55 }
 0x361   : > { %v2722_v9 = vmul.f32 %v5764_v40, %v8239_v26  ;;  %v2634_v35 = vpop.f32.mrb[139].mxu0  ;;  %v9177_v53 = vld [vmem:[#allocation26_spill] sm:$0xff] }
 0x362   : > { %v2721_v15 = vmul.f32 %v2634_v35, %v8247_v20  ;;  %2852 = vmatmul.mubr.f32.gmra.mrb[104].mxu1 %v2061_v7  ;;  %6012 = vmatprep.subr.bf16.mxu1 %v6011_v14  ;;  %v8262_v41 = vadd.f32 %v7792_v55, %v9177_v53  ;;  %v2070_v7 = vld [vmem:[%s7032_s27 + $0x1c8] sm:$0xff]  ;;  %9180 = vst [vmem:[#allocation27_spill] sm:$0xff] %v8269_v17 }
 0x363   : > { %6014 = vmatpush3.bf16.msra.mxu1 %v9176_v48  ;;  %2856 = vmatprep.mubr.f32.mxu1 %v2066_v43  ;;  %v9181_v43 = vpack.c.bf16 %v8125_v34, %v8128_v32  ;;  %v9184_v34 = vpack.c.bf16 %v8143_v28, %v8146_v31  ;;  %v6608_v28 = vld [vmem:[%s9009_s2] sm:$0xff]   ;;  %v2019_v31 = vld [vmem:[%s7032_s27 + $0x30] sm:$0xff] }
 0x364   : > { %9178 = vst [vmem:[#allocation26_spill] sm:$0xff] %v8262_v41  ;;  %v6015_v21 = vpack.c.bf16 %v2722_v9, %v2721_v15  ;;  %v5767_v40 = vpop.f32.mrb[140].mxu0  ;;  %v2069_v9 = vld [vmem:[%s7032_s27 + $0x1c0] sm:$0xff]  ;;  %v9182_v15 = vld [vmem:[#allocation25_spill] sm:$0xff] }
 0x365   : > { %v2724_v14 = vmul.f32 %v5767_v40, %v8254_v16  ;;  %v2644_v35 = vpop.f32.mrb[141].mxu0  ;;  %v8277_v48 = vadd.f32 %v9182_v15, %v7792_v55  ;;  %v2073_v55 = vld [vmem:[%s7032_s27 + $0x1e0] sm:$0xff]  ;;  %v2028_v15 = vld [vmem:[%s7032_s27 + $0x78] sm:$0xff] }
 0x366   : > { %v2723_v0 = vmul.f32 %v2644_v35, %v8262_v41  ;;  %2857 = vmatmul.mubr.f32.gmra.mrb[106].mxu1 %v2065_v61  ;;  %6016 = vmatprep.subr.bf16.mxu1 %v6015_v21  ;;  %v2074_v61 = vld [vmem:[%s7032_s27 + $0x1e8] sm:$0xff] }
 0x367   : > { %6018 = vmatpush3.bf16.msra.mxu1 %v9181_v43  ;;  %2861 = vmatprep.mubr.f32.mxu1 %v2070_v7  ;;  %9183 = vst [vmem:[#allocation25_spill] sm:$0xff] %v8277_v48  ;;  %v2016_v7 = vld [vmem:[%s7032_s27 + $0x18] sm:$0xff] }
 0x368   : > { %v6019_v53 = vpack.c.bf16 %v2724_v14, %v2723_v0  ;;  %v5770_v40 = vpop.f32.mrb[142].mxu0  ;;  %v9185_v14 = vpack.c.bf16 %v8161_v27, %v8164_v59  ;;  %v2015_v0 = vld [vmem:[%s7032_s27 + $0x10] sm:$0xff]  ;;  %v2020_v43 = vld [vmem:[%s7032_s27 + $0x38] sm:$0xff]  ;;  %v6609_v27 = vld [vmem:[%s9009_s2 + $0x8] sm:$0xff]  }
 0x369   : > { %v2726_v21 = vmul.f32 %v5770_v40, %v8269_v17  ;;  %v2654_v35 = vpop.f32.mrb[143].mxu0  ;;  %v2023_v59 = vld [vmem:[%s7032_s27 + $0x50] sm:$0xff] }
 0x36a   : > { %v2725_v23 = vmul.f32 %v2654_v35, %v8277_v48  ;;  %2862 = vmatmul.mubr.f32.gmra.mrb[108].mxu1 %v2069_v9  ;;  %6020 = vmatprep.subr.bf16.mxu1 %v6019_v53  ;;  %v2024_v9 = vld [vmem:[%s7032_s27 + $0x58] sm:$0xff]  ;;  %v6610_v53 = vld [vmem:[%s9009_s2 + $0x10] sm:$0xff]  }
 0x36b   : > { %6022 = vmatpush3.bf16.msra.mxu1 %v9184_v34  ;;  %2866 = vmatprep.mubr.f32.mxu1 %v2074_v61  ;;  %v2027_v40 = vld [vmem:[%s7032_s27 + $0x70] sm:$0xff]  ;;  %v2032_v61 = vld [vmem:[%s7032_s27 + $0x98] sm:$0xff]  ;;  %v6612_v34 = vld [vmem:[%s9009_s2 + $0x20] sm:$0xff]  }
 0x36c   : > { %v6023_v32 = vpack.c.bf16 %v2726_v21, %v2725_v23  ;;  %v6611_v21 = vld [vmem:[%s9009_s2 + $0x18] sm:$0xff]   ;;  %v2031_v35 = vld [vmem:[%s7032_s27 + $0x90] sm:$0xff] }
 0x36d   : > { %v2036_v23 = vld [vmem:[%s7032_s27 + $0xb8] sm:$0xff] }
 0x36e   : > { %2867 = vmatmul.mubr.f32.gmra.mrb[110].mxu1 %v2073_v55  ;;  %6024 = vmatprep.subr.bf16.mxu1 %v6023_v32  ;;  %v2035_v55 = vld [vmem:[%s7032_s27 + $0xb0] sm:$0xff]  ;;  %v2040_v32 = vld [vmem:[%s7032_s27 + $0xd8] sm:$0xff] }
 0x36f   : > { %6026 = vmatpush3.bf16.msra.mxu1 %v9185_v14  ;;  %2936 = vmatprep.mubr.f32.mxu1 %v2016_v7  ;;  %v6613_v7 = vld [vmem:[%s9009_s2 + $0x28] sm:$0xff]   ;;  %v2039_v14 = vld [vmem:[%s7032_s27 + $0xd0] sm:$0xff] }
 0x370   : > { %5771 = vmatprep.subr.bf16.mxu1 %v6608_v28 }
 0x372   : > { %2937 = vmatmul.mubr.f32.vlgmr.msra.gmra.mrb[112].mxu1 %v2015_v0  ;;  %v2044_v0 = vld [vmem:[%s7032_s27 + $0xf8] sm:$0xff] }
 0x373   : > { %2941 = vmatprep.mubr.f32.mxu1 %v2020_v43  ;;  %5772 = vmatpush3.bf16.msra.mxu1 %v6608_v28  ;;  %v6614_v43 = vld [vmem:[%s9009_s2 + $0x30] sm:$0xff]  }
 0x374   : > { %5773 = vmatprep.subr.bf16.mxu1 %v6609_v27  ;;  %v2043_v28 = vld [vmem:[%s7032_s27 + $0xf0] sm:$0xff] }
 0x376   : > { %2942 = vmatmul.mubr.f32.gmra.mrb[114].mxu1 %v2019_v31  ;;  %v2048_v31 = vld [vmem:[%s7032_s27 + $0x118] sm:$0xff] }
 0x377   : > { %2946 = vmatprep.mubr.f32.mxu1 %v2024_v9  ;;  %5774 = vmatpush3.bf16.msra.mxu1 %v6609_v27  ;;  %v6615_v9 = vld [vmem:[%s9009_s2 + $0x38] sm:$0xff]   ;;  %v2047_v27 = vld [vmem:[%s7032_s27 + $0x110] sm:$0xff] }
 0x378   : > { %5775 = vmatprep.subr.bf16.mxu1 %v6610_v53 }
 0x37a   : > { %2947 = vmatmul.mubr.f32.gmra.mrb[116].mxu1 %v2023_v59  ;;  %v2052_v59 = vld [vmem:[%s7032_s27 + $0x138] sm:$0xff] }
 0x37b   : > { %2951 = vmatprep.mubr.f32.mxu1 %v2028_v15  ;;  %5776 = vmatpush3.bf16.msra.mxu1 %v6610_v53  ;;  %v2051_v15 = vld [vmem:[%s7032_s27 + $0x130] sm:$0xff]  ;;  %v2056_v53 = vld [vmem:[%s7032_s27 + $0x158] sm:$0xff] }
 0x37c   : > { %5777 = vmatprep.subr.bf16.mxu1 %v6611_v21 }
 0x37e   : > { %2952 = vmatmul.mubr.f32.gmra.mrb[118].mxu1 %v2027_v40  ;;  %v2055_v40 = vld [vmem:[%s7032_s27 + $0x150] sm:$0xff] }
 0x37f   : > { %2956 = vmatprep.mubr.f32.mxu1 %v2032_v61  ;;  %5778 = vmatpush3.bf16.msra.mxu1 %v6611_v21  ;;  %v2060_v61 = vld [vmem:[%s7032_s27 + $0x178] sm:$0xff]  ;;  %v2059_v21 = vld [vmem:[%s7032_s27 + $0x170] sm:$0xff] }
 0x380   : > { %5779 = vmatprep.subr.bf16.mxu1 %v6612_v34 }
 0x382   : > { %2957 = vmatmul.mubr.f32.gmra.mrb[120].mxu1 %v2031_v35  ;;  %v2064_v35 = vld [vmem:[%s7032_s27 + $0x198] sm:$0xff] }
 0x383   : > { %2961 = vmatprep.mubr.f32.mxu1 %v2036_v23  ;;  %5780 = vmatpush3.bf16.msra.mxu1 %v6612_v34  ;;  %v8341_v23 = vld [vmem:[%s9014_s7 + $0x40] sm:$0xff]   ;;  %v2063_v34 = vld [vmem:[%s7032_s27 + $0x190] sm:$0xff] }
 0x384   : > { %5781 = vmatprep.subr.bf16.mxu1 %v6613_v7  ;;  %5063 = vmatprep.subr.bf16.mxu0 %v8341_v23 }
 0x386   : > { %2962 = vmatmul.mubr.f32.gmra.mrb[122].mxu1 %v2035_v55  ;;  %v8348_v55 = vld [vmem:[%s9014_s7] sm:$0xff]  }
 0x387   : > { %2966 = vmatprep.mubr.f32.mxu1 %v2040_v32  ;;  %5782 = vmatpush3.bf16.msra.mxu1 %v6613_v7  ;;  %v2068_v32 = vld [vmem:[%s7032_s27 + $0x1b8] sm:$0xff]  ;;  %v2067_v7 = vld [vmem:[%s7032_s27 + $0x1b0] sm:$0xff] }
 0x388   : > { %5783 = vmatprep.subr.bf16.mxu1 %v6614_v43  ;;  %5064 = vmatpush3.bf16.msra.mxu0 %v8348_v55 }
 0x38a   : > { %2967 = vmatmul.mubr.f32.gmra.mrb[124].mxu1 %v2039_v14  ;;  %v2072_v14 = vld [vmem:[%s7032_s27 + $0x1d8] sm:$0xff] }
 0x38b   : > { %2971 = vmatprep.mubr.f32.mxu1 %v2044_v0  ;;  %5784 = vmatpush3.bf16.msra.mxu1 %v6614_v43  ;;  %v8357_v0 = vld [vmem:[%s9014_s7 + $0x48] sm:$0xff]   ;;  %v2071_v43 = vld [vmem:[%s7032_s27 + $0x1d0] sm:$0xff] }
 0x38c   : > { %5785 = vmatprep.subr.bf16.mxu1 %v6615_v9  ;;  %5065 = vmatprep.subr.bf16.mxu0 %v8357_v0 }
 0x38e   : > { %2972 = vmatmul.mubr.f32.gmra.mrb[126].mxu1 %v2043_v28  ;;  %v8364_v28 = vld [vmem:[%s9014_s7 + $0x8] sm:$0xff]  }
 0x38f   : > { %2976 = vmatprep.mubr.f32.mxu1 %v2048_v31  ;;  %5786 = vmatpush3.bf16.msra.mxu1 %v6615_v9  ;;  %v2076_v31 = vld [vmem:[%s7032_s27 + $0x1f8] sm:$0xff]  ;;  %v2075_v9 = vld [vmem:[%s7032_s27 + $0x1f0] sm:$0xff] }
 0x390   : > { %5066 = vmatpush3.bf16.msra.mxu0 %v8364_v28 }
 0x392   : > { %2977 = vmatmul.mubr.f32.gmra.mrb[128].mxu1 %v2047_v27  ;;  %v8372_v27 = vld [vmem:[%s9014_s7 + $0x50] sm:$0xff]  }
 0x393   : > { %2981 = vmatprep.mubr.f32.mxu1 %v2052_v59  ;;  %5067 = vmatprep.subr.bf16.mxu0 %v8372_v27  ;;  %v8378_v59 = vld [vmem:[%s9014_s7 + $0x10] sm:$0xff]  }
 0x394   : > { %5068 = vmatpush3.bf16.msra.mxu0 %v8378_v59 }
 0x396   : > { %2982 = vmatmul.mubr.f32.gmra.mrb[130].mxu1 %v2051_v15  ;;  %v8384_v15 = vld [vmem:[%s9014_s7 + $0x58] sm:$0xff]  }
 0x397   : > { %2986 = vmatprep.mubr.f32.mxu1 %v2056_v53  ;;  %5069 = vmatprep.subr.bf16.mxu0 %v8384_v15  ;;  %v8390_v53 = vld [vmem:[%s9014_s7 + $0x18] sm:$0xff]  }
 0x398   : > { %5070 = vmatpush3.bf16.msra.mxu0 %v8390_v53 }
 0x39a   : > { %2987 = vmatmul.mubr.f32.gmra.mrb[132].mxu1 %v2055_v40  ;;  %v8396_v40 = vld [vmem:[%s9014_s7 + $0x60] sm:$0xff]  }
 0x39b   : > { %2991 = vmatprep.mubr.f32.mxu1 %v2060_v61  ;;  %5071 = vmatprep.subr.bf16.mxu0 %v8396_v40  ;;  %v8402_v61 = vld [vmem:[%s9014_s7 + $0x20] sm:$0xff]  }
 0x39c   : > { %5072 = vmatpush3.bf16.msra.mxu0 %v8402_v61 }
 0x39e   : > { %2992 = vmatmul.mubr.f32.gmra.mrb[134].mxu1 %v2059_v21  ;;  %v8408_v21 = vld [vmem:[%s9014_s7 + $0x68] sm:$0xff]  }
 0x39f   : > { %2996 = vmatprep.mubr.f32.mxu1 %v2064_v35  ;;  %v8413_v35 = vld [vmem:[%s9014_s7 + $0x28] sm:$0xff]   ;;  %5073 = vmatprep.subr.bf16.mxu0 %v8408_v21 }
 0x3a0   : > { %5074 = vmatpush3.bf16.msra.mxu0 %v8413_v35 }
 0x3a2   : > { %2997 = vmatmul.mubr.f32.gmra.mrb[136].mxu1 %v2063_v34  ;;  %v8420_v34 = vld [vmem:[%s9014_s7 + $0x70] sm:$0xff]  }
 0x3a3   : > { %3001 = vmatprep.mubr.f32.mxu1 %v2068_v32  ;;  %v8425_v32 = vld [vmem:[%s9014_s7 + $0x30] sm:$0xff]   ;;  %5075 = vmatprep.subr.bf16.mxu0 %v8420_v34 }
 0x3a4   : > { %5076 = vmatpush3.bf16.msra.mxu0 %v8425_v32 }
 0x3a6   : > { %3002 = vmatmul.mubr.f32.gmra.mrb[138].mxu1 %v2067_v7  ;;  %v8432_v7 = vld [vmem:[%s9014_s7 + $0x78] sm:$0xff]  }
 0x3a7   : > { %3006 = vmatprep.mubr.f32.mxu1 %v2072_v14  ;;  %v8437_v14 = vld [vmem:[%s9014_s7 + $0x38] sm:$0xff]   ;;  %5077 = vmatprep.subr.bf16.mxu0 %v8432_v7 }
 0x3a8   : > { %5078 = vmatpush3.bf16.msra.mxu0 %v8437_v14 }
 0x3aa   : > { %3007 = vmatmul.mubr.f32.gmra.mrb[140].mxu1 %v2071_v43 }
 0x3ab   : > { %3011 = vmatprep.mubr.f32.mxu1 %v2076_v31 }
 0x3ae   : > { %3012 = vmatmul.mubr.f32.gmra.mrb[142].mxu1 %v2075_v9 }
 0x405   : > { %v4935_v43 = vpop.f32.mrb[80].mxu1 }
 0x406   : > { %v4936_v31 = vpop.f32.mrb[81].mxu1 }
 0x407   : > { %v4937_v9 = vadd.f32 %v4936_v31, %v4935_v43 }
 0x409   : > { %v4938_v48 = vpop.f32.mrb[82].mxu1 }
 0x40a   : > { %v4939_v17 = vpop.f32.mrb[83].mxu1 }
 0x40b   : > { %v4940_v41 = vadd.f32 %v4939_v17, %v4938_v48 }
 0x40d   : > { %v4941_v16 = vpop.f32.mrb[84].mxu1 }
 0x40e   : > { %v4942_v20 = vpop.f32.mrb[85].mxu1 }
 0x40f   : > { %v4943_v26 = vadd.f32 %v4942_v20, %v4941_v16 }
 0x411   : > { %v4944_v54 = vpop.f32.mrb[86].mxu1 }
 0x412   : > { %v4945_v37 = vpop.f32.mrb[87].mxu1 }
 0x413   : > { %v4946_v56 = vadd.f32 %v4945_v37, %v4944_v54 }
 0x415   : > { %v4947_v46 = vpop.f32.mrb[88].mxu1 }
 0x416   : > { %v4948_v63 = vpop.f32.mrb[89].mxu1 }
 0x417   : > { %v4949_v11 = vadd.f32 %v4948_v63, %v4947_v46 }
 0x419   : > { %v4950_v13 = vpop.f32.mrb[90].mxu1 }
 0x41a   : > { %v4951_v51 = vpop.f32.mrb[91].mxu1 }
 0x41b   : > { %v4952_v4 = vadd.f32 %v4951_v51, %v4950_v13 }
 0x41d   : > { %v4953_v60 = vpop.f32.mrb[92].mxu1 }
 0x41e   : > { %v4954_v36 = vpop.f32.mrb[93].mxu1 }
 0x41f   : > { %v4955_v29 = vadd.f32 %v4954_v36, %v4953_v60 }
 0x421   : > { %v4956_v44 = vpop.f32.mrb[94].mxu1 }
 0x422   : > { %v4957_v43 = vpop.f32.mrb[95].mxu1 }
 0x423   : > { %v8441_v31 = vadd.f32 %v4957_v43, %v4956_v44 }
 0x425   : > { %v4959_v17 = vpop.f32.mrb[96].mxu1 }
 0x426   : > { %v4960_v48 = vpop.f32.mrb[97].mxu1 }
 0x427   : > { %v8443_v33 = vadd.f32 %v4960_v48, %v4959_v17 }
 0x429   : > { %v4962_v20 = vpop.f32.mrb[98].mxu1 }
 0x42a   : > { %v4963_v16 = vpop.f32.mrb[99].mxu1 }
 0x42b   : > { %v8445_v37 = vadd.f32 %v4963_v16, %v4962_v20 }
 0x42d   : > { %v4965_v54 = vpop.f32.mrb[100].mxu1 }
 0x42e   : > { %v4966_v63 = vpop.f32.mrb[101].mxu1 }
 0x42f   : > { %v8447_v46 = vadd.f32 %v4966_v63, %v4965_v54 }
 0x431   : > { %v4968_v51 = vpop.f32.mrb[102].mxu1 }
 0x432   : > { %v4969_v13 = vpop.f32.mrb[103].mxu1 }
 0x433   : > { %v8449_v38 = vadd.f32 %v4969_v13, %v4968_v51 }
 0x435   : > { %v4971_v36 = vpop.f32.mrb[104].mxu1 }
 0x436   : > { %v4972_v60 = vpop.f32.mrb[105].mxu1 }
 0x437   : > { %v8451_v44 = vadd.f32 %v4972_v60, %v4971_v36 }
 0x439   : > { %v4974_v43 = vpop.f32.mrb[106].mxu1 }
 0x43a   : > { %v4975_v25 = vpop.f32.mrb[107].mxu1 }
 0x43b   : > { %v8453_v17 = vadd.f32 %v4975_v25, %v4974_v43 }
 0x43d   : > { %v4977_v48 = vpop.f32.mrb[108].mxu1 }
 0x43e   : > { %v4978_v18 = vpop.f32.mrb[109].mxu1 }
 0x43f   : > { %v8455_v20 = vadd.f32 %v4978_v18, %v4977_v48  ;;  %v9186_v48 = vld [vmem:[#allocation10_spill] sm:$0xff] }
 0x441   : > { %v4980_v16 = vpop.f32.mrb[110].mxu1 }
 0x442   : > { %v4981_v1 = vpop.f32.mrb[111].mxu1 }
 0x443   : > { %v8457_v54 = vadd.f32 %v4981_v1, %v4980_v16 }
 0x445   : > { %v5015_v63 = vpop.f32.mrb[112].mxu1 }
 0x446   : > { %v5016_v52 = vpop.f32.mrb[113].mxu1 }
 0x447   : > { %v5017_v51 = vadd.f32 %v5016_v52, %v5015_v63 }
 0x449   : > { %v2939_v13 = vadd.f32 %v5017_v51, %v4937_v9  ;;  %v5018_v10 = vpop.f32.mrb[114].mxu1 }
 0x44a   : > { %v5019_v62 = vpop.f32.mrb[115].mxu1 }
 0x44b   : > { %v5020_v36 = vadd.f32 %v5019_v62, %v5018_v10  ;;  %v9187_v10 = vld [vmem:[#allocation12_spill] sm:$0xff] }
 0x44d   : > { %v2944_v60 = vadd.f32 %v5020_v36, %v4940_v41  ;;  %v5021_v6 = vpop.f32.mrb[116].mxu1 }
 0x44e   : > { %v5022_v45 = vpop.f32.mrb[117].mxu1 }
 0x44f   : > { %v3017_v25 = vpack.c.bf16 %v2944_v60, %v2939_v13  ;;  %v5023_v43 = vadd.f32 %v5022_v45, %v5021_v6 }
 0x451   : > { %v2949_v49 = vadd.f32 %v5023_v43, %v4943_v26  ;;  %v5024_v24 = vpop.f32.mrb[118].mxu1  ;;  %3154 = vmatmul.mubr.bf16.vlgmr.msra.gmra.mrb[144].mxu0 %v3017_v25 }
 0x452   : > { %v5025_v18 = vpop.f32.mrb[119].mxu1  ;;  %3161 = vmatprep.mubr.bf16.mxu0 %v9186_v48 }
 0x453   : > { %v5026_v1 = vadd.f32 %v5025_v18, %v5024_v24 }
 0x455   : > { %v2954_v16 = vadd.f32 %v5026_v1, %v4946_v56  ;;  %v5027_v8 = vpop.f32.mrb[120].mxu1  ;;  %v9188_v56 = vld [vmem:[#allocation11_spill] sm:$0xff] }
 0x456   : > { %v5028_v58 = vpop.f32.mrb[121].mxu1 }
 0x457   : > { %v5029_v52 = vadd.f32 %v5028_v58, %v5027_v8  ;;  %v3018_v9 = vpack.c.bf16 %v2954_v16, %v2949_v49  ;;  %v9189_v16 = vld [vmem:[#allocation14_spill] sm:$0xff] }
 0x459   : > { %v2959_v63 = vadd.f32 %v5029_v52, %v4949_v11  ;;  %v5030_v51 = vpop.f32.mrb[122].mxu1  ;;  %3162 = vmatmul.mubr.bf16.gmra.mrb[148].mxu0 %v3018_v9 }
 0x45a   : > { %v5031_v62 = vpop.f32.mrb[123].mxu1  ;;  %3169 = vmatprep.mubr.bf16.mxu0 %v9187_v10 }
 0x45b   : > { %v5032_v41 = vadd.f32 %v5031_v62, %v5030_v51 }
 0x45d   : > { %v2964_v45 = vadd.f32 %v5032_v41, %v4952_v4  ;;  %v5033_v6 = vpop.f32.mrb[124].mxu1 }
 0x45e   : > { %v5034_v26 = vpop.f32.mrb[125].mxu1 }
 0x45f   : > { %v5035_v13 = vadd.f32 %v5034_v26, %v5033_v6  ;;  %v3019_v36 = vpack.c.bf16 %v2964_v45, %v2959_v63  ;;  %v9190_v45 = vld [vmem:[#allocation13_spill] sm:$0xff] }
 0x461   : > { %v2969_v60 = vadd.f32 %v5035_v13, %v4955_v29  ;;  %v5036_v25 = vpop.f32.mrb[126].mxu1  ;;  %3170 = vmatmul.mubr.bf16.gmra.mrb[152].mxu0 %v3019_v36 }
 0x462   : > { %v5037_v24 = vpop.f32.mrb[127].mxu1  ;;  %3177 = vmatprep.mubr.bf16.mxu0 %v9188_v56  ;;  %v9191_v56 = vld [vmem:[#allocation16_spill] sm:$0xff] }
 0x463   : > { %v5038_v58 = vadd.f32 %v5037_v24, %v5036_v25 }
 0x465   : > { %v2974_v8 = vadd.f32 %v5038_v58, %v8441_v31  ;;  %v5039_v49 = vpop.f32.mrb[128].mxu1 }
 0x466   : > { %v5040_v11 = vpop.f32.mrb[129].mxu1 }
 0x467   : > { %v5041_v43 = vadd.f32 %v5040_v11, %v5039_v49  ;;  %v3020_v18 = vpack.c.bf16 %v2974_v8, %v2969_v60 }
 0x469   : > { %v2979_v48 = vadd.f32 %v5041_v43, %v8443_v33  ;;  %v5042_v4 = vpop.f32.mrb[130].mxu1  ;;  %3178 = vmatmul.mubr.bf16.gmra.mrb[156].mxu0 %v3020_v18 }
 0x46a   : > { %v5043_v1 = vpop.f32.mrb[131].mxu1  ;;  %3185 = vmatprep.mubr.bf16.mxu0 %v9189_v16 }
 0x46b   : > { %v5044_v29 = vadd.f32 %v5043_v1, %v5042_v4  ;;  %v9192_v4 = vld [vmem:[#allocation15_spill] sm:$0xff] }
 0x46d   : > { %v2984_v52 = vadd.f32 %v5044_v29, %v8445_v37  ;;  %v5045_v9 = vpop.f32.mrb[132].mxu1  ;;  %v6616_v29 = vld [vmem:[%s7032_s27 + $0x8] sm:$0xff] }
 0x46e   : > { %v5046_v63 = vpop.f32.mrb[133].mxu1 }
 0x46f   : > { %v5047_v51 = vadd.f32 %v5046_v63, %v5045_v9  ;;  %v3021_v62 = vpack.c.bf16 %v2984_v52, %v2979_v48 }
 0x471   : > { %v2989_v31 = vadd.f32 %v5047_v51, %v8447_v46  ;;  %v5048_v10 = vpop.f32.mrb[134].mxu1  ;;  %3186 = vmatmul.mubr.bf16.gmra.mrb[160].mxu0 %v3021_v62 }
 0x472   : > { %v5049_v41 = vpop.f32.mrb[135].mxu1  ;;  %3193 = vmatprep.mubr.bf16.mxu0 %v9190_v45 }
 0x473   : > { %v5050_v33 = vadd.f32 %v5049_v41, %v5048_v10 }
 0x475   : > { %v2994_v6 = vadd.f32 %v5050_v33, %v8449_v38  ;;  %v5051_v26 = vpop.f32.mrb[136].mxu1 }
 0x476   : > { %v5052_v13 = vpop.f32.mrb[137].mxu1 }
 0x477   : > { %v5053_v36 = vadd.f32 %v5052_v13, %v5051_v26  ;;  %v3022_v60 = vpack.c.bf16 %v2994_v6, %v2989_v31 }
 0x479   : > { %v2999_v37 = vadd.f32 %v5053_v36, %v8451_v44  ;;  %v5054_v25 = vpop.f32.mrb[138].mxu1  ;;  %3194 = vmatmul.mubr.bf16.gmra.mrb[164].mxu0 %v3022_v60 }
 0x47a   : > { %v5055_v24 = vpop.f32.mrb[139].mxu1  ;;  %3201 = vmatprep.mubr.bf16.mxu0 %v9191_v56 }
 0x47b   : > { %v5056_v46 = vadd.f32 %v5055_v24, %v5054_v25 }
 0x47d   : > { %v3004_v58 = vadd.f32 %v5056_v46, %v8453_v17  ;;  %v5057_v8 = vpop.f32.mrb[140].mxu1 }
 0x47e   : > { %v5058_v49 = vpop.f32.mrb[141].mxu1 }
 0x47f   : > { %v5059_v11 = vadd.f32 %v5058_v49, %v5057_v8  ;;  %v3023_v43 = vpack.c.bf16 %v3004_v58, %v2999_v37 }
 0x481   : > { %v3009_v38 = vadd.f32 %v5059_v11, %v8455_v20  ;;  %v5060_v18 = vpop.f32.mrb[142].mxu1  ;;  %3202 = vmatmul.mubr.bf16.gmra.mrb[168].mxu0 %v3023_v43 }
 0x482   : > { %v5061_v48 = vpop.f32.mrb[143].mxu1  ;;  %3209 = vmatprep.mubr.bf16.mxu0 %v9192_v4 }
 0x483   : > { %v5062_v44 = vadd.f32 %v5061_v48, %v5060_v18 }
 0x485   : > { %v3014_v1 = vadd.f32 %v5062_v44, %v8457_v54 }
 0x487   : > { %v3024_v16 = vpack.c.bf16 %v3014_v1, %v3009_v38 }
 0x489   : > { %3210 = vmatmul.mubr.bf16.gmra.mrb[172].mxu0 %v3024_v16 }
 0x48a   : > { %3948 = vmatprep.mubr.f32.mxu0 %v6616_v29 }
 0x524   : > { %v5079_v52 = vpop.f32.mrb[144].mxu0 }
 0x525   : > { %v5080_v17 = vpop.f32.mrb[145].mxu0 }
 0x526   : > { %v5081_v9 = vadd.f32 %v5080_v17, %v5079_v52  ;;  %v5082_v63 = vpop.f32.mrb[146].mxu0 }
 0x527   : > { %v5083_v51 = vpop.f32.mrb[147].mxu0 }
 0x528   : > { %v4683_v62 = vmul.f32 -1.442695, %v5081_v9  ;;  %v5084_v31 = vadd.f32 %v5083_v51, %v5082_v63 }
 0x52a   : > { %6479 = vpow2.f32 %v4683_v62  ;;  %v4684_v20 = vmul.f32 -1.442695, %v5084_v31 }
 0x52c   : > { %6481 = vpow2.f32 %v4684_v20  ;;  %v5085_v10 = vpop.f32.mrb[148].mxu0 }
 0x52d   : > { %v5086_v41 = vpop.f32.mrb[149].mxu0 }
 0x52e   : > { %v8476_v45 = vadd.f32 %v5086_v41, %v5085_v10  ;;  %v5088_v33 = vpop.f32.mrb[150].mxu0 }
 0x52f   : > { %v5089_v54 = vpop.f32.mrb[151].mxu0 }
 0x530   : > { %v4685_v6 = vmul.f32 -1.442695, %v8476_v45  ;;  %v5090_v26 = vadd.f32 %v5089_v54, %v5088_v33 }
 0x532   : > { %6483 = vpow2.f32 %v4685_v6  ;;  %v4686_v13 = vmul.f32 -1.442695, %v5090_v26 }
 0x534   : > { %v6480_v36 = vpop.eup %6479  ;;  %6485 = vpow2.f32 %v4686_v13  ;;  %v5091_v60 = vpop.f32.mrb[152].mxu0 }
 0x535   : > { %v3266_v37 = vadd.f32 1.0, %v6480_v36  ;;  %v5092_v25 = vpop.f32.mrb[153].mxu0 }
 0x536   : > { %v6482_v24 = vpop.eup %6481  ;;  %v8479_v56 = vadd.f32 %v5092_v25, %v5091_v60  ;;  %v5094_v46 = vpop.f32.mrb[154].mxu0 }
 0x537   : > { %6487 = vrcp.f32 %v3266_v37  ;;  %v3267_v58 = vadd.f32 1.0, %v6482_v24  ;;  %v5095_v8 = vpop.f32.mrb[155].mxu0 }
 0x538   : > { %v4687_v49 = vmul.f32 -1.442695, %v8479_v56  ;;  %v8482_v11 = vadd.f32 %v5095_v8, %v5094_v46 }
 0x539   : > { %6489 = vrcp.f32 %v3267_v58 }
 0x53a   : > { %6491 = vpow2.f32 %v4687_v49  ;;  %v4688_v43 = vmul.f32 -1.442695, %v8482_v11 }
 0x53c   : > { %v6484_v38 = vpop.eup %6483  ;;  %6493 = vpow2.f32 %v4688_v43  ;;  %v5097_v18 = vpop.f32.mrb[156].mxu0 }
 0x53d   : > { %v3268_v48 = vadd.f32 1.0, %v6484_v38  ;;  %v5098_v4 = vpop.f32.mrb[157].mxu0 }
 0x53e   : > { %v6486_v44 = vpop.eup %6485  ;;  %v8485_v1 = vadd.f32 %v5098_v4, %v5097_v18  ;;  %v5100_v16 = vpop.f32.mrb[158].mxu0 }
 0x53f   : > { %6495 = vrcp.f32 %v3268_v48  ;;  %v3269_v29 = vadd.f32 1.0, %v6486_v44  ;;  %v5101_v52 = vpop.f32.mrb[159].mxu0 }
 0x540   : > { %v4689_v17 = vmul.f32 -1.442695, %v8485_v1  ;;  %v8488_v63 = vadd.f32 %v5101_v52, %v5100_v16 }
 0x541   : > { %v6488_v51 = vpop.eup %6487  ;;  %6497 = vrcp.f32 %v3269_v29 }
 0x542   : > { %6499 = vpow2.f32 %v4689_v17  ;;  %v4690_v62 = vmul.f32 -1.442695, %v8488_v63  ;;  %v3314_v41 = vmul.f32 %v6488_v51, %v5081_v9 }
 0x543   : > { %v6490_v20 = vpop.eup %6489 }
 0x544   : > { %v6492_v10 = vpop.eup %6491  ;;  %v3315_v33 = vmul.f32 %v6490_v20, %v5084_v31  ;;  %6501 = vpow2.f32 %v4690_v62  ;;  %v5103_v54 = vpop.f32.mrb[160].mxu0 }
 0x545   : > { %v3270_v6 = vadd.f32 1.0, %v6492_v10  ;;  %v5104_v13 = vpop.f32.mrb[161].mxu0 }
 0x546   : > { %v6494_v36 = vpop.eup %6493  ;;  %v8491_v60 = vadd.f32 %v5104_v13, %v5103_v54  ;;  %v5106_v37 = vpop.f32.mrb[162].mxu0  ;;  %v8493_v25 = vpack.c.bf16 %v3315_v33, %v3314_v41 }
 0x547   : > { %6503 = vrcp.f32 %v3270_v6  ;;  %v3271_v24 = vadd.f32 1.0, %v6494_v36  ;;  %v5107_v46 = vpop.f32.mrb[163].mxu0 }
 0x548   : > { %v4691_v58 = vmul.f32 -1.442695, %v8491_v60  ;;  %v8496_v8 = vadd.f32 %v5107_v46, %v5106_v37  ;;  %5787 = vmatprep.mubr.bf16.mxu1 %v8493_v25 }
 0x549   : > { %v6496_v9 = vpop.eup %6495  ;;  %6505 = vrcp.f32 %v3271_v24 }
 0x54a   : > { %6507 = vpow2.f32 %v4691_v58  ;;  %v4692_v31 = vmul.f32 -1.442695, %v8496_v8  ;;  %v3316_v38 = vmul.f32 %v6496_v9, %v8476_v45 }
 0x54b   : > { %v6498_v49 = vpop.eup %6497 }
 0x54c   : > { %v6500_v43 = vpop.eup %6499  ;;  %v3317_v18 = vmul.f32 %v6498_v49, %v5090_v26  ;;  %6509 = vpow2.f32 %v4692_v31  ;;  %v5109_v48 = vpop.f32.mrb[164].mxu0 }
 0x54d   : > { %v3272_v4 = vadd.f32 1.0, %v6500_v43  ;;  %v5110_v44 = vpop.f32.mrb[165].mxu0 }
 0x54e   : > { %v6502_v16 = vpop.eup %6501  ;;  %v8501_v29 = vpack.c.bf16 %v3317_v18, %v3316_v38  ;;  %v8503_v52 = vadd.f32 %v5110_v44, %v5109_v48  ;;  %v5112_v17 = vpop.f32.mrb[166].mxu0 }
 0x54f   : > { %6511 = vrcp.f32 %v3272_v4  ;;  %v3273_v51 = vadd.f32 1.0, %v6502_v16  ;;  %v5113_v62 = vpop.f32.mrb[167].mxu0 }
 0x550   : > { %v4693_v20 = vmul.f32 -1.442695, %v8503_v52  ;;  %v8506_v10 = vadd.f32 %v5113_v62, %v5112_v17  ;;  %5788 = vmatmul.mubr.bf16.vlgmr.msra.gmra.mrb[144].mxu1 %v8501_v29 }
 0x551   : > { %v6504_v45 = vpop.eup %6503  ;;  %6513 = vrcp.f32 %v3273_v51 }
 0x552   : > { %6515 = vpow2.f32 %v4693_v20  ;;  %v4694_v26 = vmul.f32 -1.442695, %v8506_v10  ;;  %v3318_v54 = vmul.f32 %v6504_v45, %v8479_v56 }
 0x553   : > { %v6506_v41 = vpop.eup %6505 }
 0x554   : > { %v6508_v33 = vpop.eup %6507  ;;  %v3319_v6 = vmul.f32 %v6506_v41, %v8482_v11  ;;  %6517 = vpow2.f32 %v4694_v26  ;;  %v5115_v13 = vpop.f32.mrb[168].mxu0 }
 0x555   : > { %v3274_v36 = vadd.f32 1.0, %v6508_v33  ;;  %v5116_v37 = vpop.f32.mrb[169].mxu0 }
 0x556   : > { %v6510_v24 = vpop.eup %6509  ;;  %v5117_v46 = vadd.f32 %v5116_v37, %v5115_v13  ;;  %v5118_v58 = vpop.f32.mrb[170].mxu0  ;;  %v8512_v9 = vpack.c.bf16 %v3319_v6, %v3318_v54 }
 0x557   : > { %6519 = vrcp.f32 %v3274_v36  ;;  %v3275_v31 = vadd.f32 1.0, %v6510_v24  ;;  %v5119_v49 = vpop.f32.mrb[171].mxu0 }
 0x558   : > { %v4695_v43 = vmul.f32 -1.442695, %v5117_v46  ;;  %v5120_v38 = vadd.f32 %v5119_v49, %v5118_v58  ;;  %5791 = vmatprep.mubr.bf16.mxu1 %v8512_v9 }
 0x559   : > { %v6512_v18 = vpop.eup %6511  ;;  %6521 = vrcp.f32 %v3275_v31 }
 0x55a   : > { %6523 = vpow2.f32 %v4695_v43  ;;  %v4696_v56 = vmul.f32 -1.442695, %v5120_v38  ;;  %v3320_v4 = vmul.f32 %v6512_v18, %v8485_v1 }
 0x55b   : > { %v6514_v11 = vpop.eup %6513 }
 0x55c   : > { %v6516_v48 = vpop.eup %6515  ;;  %v3321_v44 = vmul.f32 %v6514_v11, %v8488_v63  ;;  %6525 = vpow2.f32 %v4696_v56  ;;  %v5121_v16 = vpop.f32.mrb[172].mxu0 }
 0x55d   : > { %v3276_v17 = vadd.f32 1.0, %v6516_v48  ;;  %v5122_v51 = vpop.f32.mrb[173].mxu0 }
 0x55e   : > { %v6518_v62 = vpop.eup %6517  ;;  %v5123_v20 = vadd.f32 %v5122_v51, %v5121_v16  ;;  %v5124_v45 = vpop.f32.mrb[174].mxu0  ;;  %v8517_v26 = vpack.c.bf16 %v3321_v44, %v3320_v4 }
 0x55f   : > { %6527 = vrcp.f32 %v3276_v17  ;;  %v3277_v41 = vadd.f32 1.0, %v6518_v62  ;;  %v5125_v33 = vpop.f32.mrb[175].mxu0 }
 0x560   : > { %v4697_v54 = vmul.f32 -1.442695, %v5123_v20  ;;  %v5126_v6 = vadd.f32 %v5125_v33, %v5124_v45  ;;  %5792 = vmatmul.mubr.bf16.gmra.mrb[148].mxu1 %v8517_v26 }
 0x561   : > { %v6520_v13 = vpop.eup %6519  ;;  %6529 = vrcp.f32 %v3277_v41 }
 0x562   : > { %6531 = vpow2.f32 %v4697_v54  ;;  %v4698_v1 = vmul.f32 -1.442695, %v5126_v6  ;;  %v3322_v37 = vmul.f32 %v6520_v13, %v8491_v60 }
 0x563   : > { %v6522_v63 = vpop.eup %6521 }
 0x564   : > { %v6524_v36 = vpop.eup %6523  ;;  %v3323_v24 = vmul.f32 %v6522_v63, %v8496_v8  ;;  %6533 = vpow2.f32 %v4698_v1  ;;  %v6617_v1 = vld [vmem:[%s7592_s26] sm:$0xff] }
 0x565   : > { %v3278_v58 = vadd.f32 1.0, %v6524_v36 }
 0x566   : > { %v6526_v31 = vpop.eup %6525  ;;  %v8522_v49 = vpack.c.bf16 %v3323_v24, %v3322_v37 }
 0x567   : > { %6535 = vrcp.f32 %v3278_v58  ;;  %v3279_v43 = vadd.f32 1.0, %v6526_v31 }
 0x568   : > { %5795 = vmatprep.mubr.bf16.mxu1 %v8522_v49 }
 0x569   : > { %v6528_v18 = vpop.eup %6527  ;;  %6537 = vrcp.f32 %v3279_v43 }
 0x56a   : > { %v3324_v48 = vmul.f32 %v6528_v18, %v8503_v52 }
 0x56b   : > { %v6530_v56 = vpop.eup %6529 }
 0x56c   : > { %v6532_v11 = vpop.eup %6531  ;;  %v3325_v4 = vmul.f32 %v6530_v56, %v8506_v10 }
 0x56d   : > { %v3280_v60 = vadd.f32 1.0, %v6532_v11 }
 0x56e   : > { %v6534_v44 = vpop.eup %6533  ;;  %v8527_v8 = vpack.c.bf16 %v3325_v4, %v3324_v48 }
 0x56f   : > { %6539 = vrcp.f32 %v3280_v60  ;;  %v3281_v16 = vadd.f32 1.0, %v6534_v44 }
 0x570   : > { %5796 = vmatmul.mubr.bf16.gmra.mrb[152].mxu1 %v8527_v8 }
 0x571   : > { %v6536_v17 = vpop.eup %6535  ;;  %6541 = vrcp.f32 %v3281_v16 }
 0x572   : > { %v3326_v62 = vmul.f32 %v6536_v17, %v5117_v46 }
 0x573   : > { %v6538_v51 = vpop.eup %6537 }
 0x574   : > { %v3327_v45 = vmul.f32 %v6538_v51, %v5120_v38 }
 0x576   : > { %v8530_v41 = vpack.c.bf16 %v3327_v45, %v3326_v62 }
 0x578   : > { %5799 = vmatprep.mubr.bf16.mxu1 %v8530_v41 }
 0x579   : > { %v6540_v52 = vpop.eup %6539 }
 0x57a   : > { %v3328_v33 = vmul.f32 %v6540_v52, %v5123_v20 }
 0x57b   : > { %v6542_v10 = vpop.eup %6541 }
 0x57c   : > { %v3329_v54 = vmul.f32 %v6542_v10, %v5126_v6  ;;  %v6618_v10 = vld [vmem:[%s7592_s26 + $0x8] sm:$0xff] }
 0x57e   : > { %v8533_v13 = vpack.c.bf16 %v3329_v54, %v3328_v33  ;;  %v6619_v33 = vld [vmem:[%s7592_s26 + $0x10] sm:$0xff]  ;;  %v6620_v54 = vld [vmem:[%s7592_s26 + $0x18] sm:$0xff] }
 0x580   : > { %5800 = vmatmul.mubr.bf16.gmra.mrb[156].mxu1 %v8533_v13 }
 0x581   : > { %5835 = vmatprep.mubr.f32.mxu1 %v6617_v1  ;;  %v6621_v1 = vld [vmem:[%s7592_s26 + $0x20] sm:$0xff] }
 0x623   : > { %v5789_v63 = vpop.f32.mrb[144].mxu1 }
 0x624   : > { %v3372_v36 = vpop.f32.mrb[145].mxu1 }
 0x625   : > { %v5790_v37 = vpop.f32.mrb[146].mxu1 }
 0x626   : > { %v6031_v24 = vpack.c.bf16 %v5790_v37, %v5789_v63  ;;  %v3375_v46 = vpop.f32.mrb[147].mxu1  ;;  %v6623_v63 = vld [vmem:[%s7592_s26 + $0x30] sm:$0xff] }
 0x627   : > { %v6027_v38 = vpack.c.bf16 %v3375_v46, %v3372_v36  ;;  %v6636_v36 = vld [vmem:[%s7592_s26 + $0x98] sm:$0xff]  ;;  %v6639_v37 = vld [vmem:[%s7592_s26 + $0xb0] sm:$0xff]  ;;  %v6642_v46 = vld [vmem:[%s7592_s26 + $0xc8] sm:$0xff] }
 0x629   : > { %6028 = vmatprep.subr.bf16.mxu1 %v6027_v38 }
 0x62a   : > { %6030 = vmatpush3.bf16.msra.mxu1 %v6027_v38  ;;  %v6643_v38 = vld [vmem:[%s7592_s26 + $0xd0] sm:$0xff] }
 0x62b   : > { %6032 = vmatprep.subr.bf16.mxu1 %v6031_v24 }
 0x62e   : > { %6034 = vmatpush3.bf16.msra.mxu1 %v6031_v24  ;;  %v6640_v24 = vld [vmem:[%s7592_s26 + $0xb8] sm:$0xff] }
 0x633   : > { %v5793_v58 = vpop.f32.mrb[148].mxu1 }
 0x634   : > { %v3388_v31 = vpop.f32.mrb[149].mxu1 }
 0x635   : > { %v5794_v20 = vpop.f32.mrb[150].mxu1 }
 0x636   : > { %v6039_v6 = vpack.c.bf16 %v5794_v20, %v5793_v58  ;;  %v3391_v43 = vpop.f32.mrb[151].mxu1  ;;  %v6644_v58 = vld [vmem:[%s7592_s26 + $0xd8] sm:$0xff]  ;;  %v6646_v20 = vld [vmem:[%s7592_s26 + $0xe8] sm:$0xff] }
 0x637   : > { %v6035_v18 = vpack.c.bf16 %v3391_v43, %v3388_v31  ;;  %v6645_v31 = vld [vmem:[%s7592_s26 + $0xe0] sm:$0xff]  ;;  %v6648_v43 = vld [vmem:[%s7592_s26 + $0xf8] sm:$0xff] }
 0x639   : > { %6036 = vmatprep.subr.bf16.mxu1 %v6035_v18 }
 0x63a   : > { %6038 = vmatpush3.bf16.msra.mxu1 %v6035_v18  ;;  %v6649_v18 = vld [vmem:[%s7592_s26 + $0x100] sm:$0xff] }
 0x63b   : > { %6040 = vmatprep.subr.bf16.mxu1 %v6039_v6 }
 0x63e   : > { %6042 = vmatpush3.bf16.msra.mxu1 %v6039_v6  ;;  %v6647_v6 = vld [vmem:[%s7592_s26 + $0xf0] sm:$0xff] }
 0x643   : > { %v5797_v56 = vpop.f32.mrb[152].mxu1 }
 0x644   : > { %v3404_v11 = vpop.f32.mrb[153].mxu1 }
 0x645   : > { %v5798_v48 = vpop.f32.mrb[154].mxu1 }
 0x646   : > { %v6047_v4 = vpack.c.bf16 %v5798_v48, %v5797_v56  ;;  %v3407_v60 = vpop.f32.mrb[155].mxu1  ;;  %v6650_v56 = vld [vmem:[%s7592_s26 + $0x108] sm:$0xff]  ;;  %v6652_v48 = vld [vmem:[%s7592_s26 + $0x118] sm:$0xff] }
 0x647   : > { %v6043_v44 = vpack.c.bf16 %v3407_v60, %v3404_v11  ;;  %v6651_v11 = vld [vmem:[%s7592_s26 + $0x110] sm:$0xff]  ;;  %v6654_v60 = vld [vmem:[%s7592_s26 + $0x128] sm:$0xff] }
 0x649   : > { %6044 = vmatprep.subr.bf16.mxu1 %v6043_v44 }
 0x64a   : > { %6046 = vmatpush3.bf16.msra.mxu1 %v6043_v44  ;;  %v6655_v44 = vld [vmem:[%s7592_s26 + $0x130] sm:$0xff] }
 0x64b   : > { %6048 = vmatprep.subr.bf16.mxu1 %v6047_v4 }
 0x64e   : > { %6050 = vmatpush3.bf16.msra.mxu1 %v6047_v4  ;;  %v6653_v4 = vld [vmem:[%s7592_s26 + $0x120] sm:$0xff] }
 0x653   : > { %v5801_v16 = vpop.f32.mrb[156].mxu1 }
 0x654   : > { %v3420_v17 = vpop.f32.mrb[157].mxu1 }
 0x655   : > { %v5802_v51 = vpop.f32.mrb[158].mxu1 }
 0x656   : > { %v6055_v62 = vpack.c.bf16 %v5802_v51, %v5801_v16  ;;  %v3423_v45 = vpop.f32.mrb[159].mxu1  ;;  %v6656_v16 = vld [vmem:[%s7592_s26 + $0x138] sm:$0xff]  ;;  %v6658_v51 = vld [vmem:[%s7592_s26 + $0x148] sm:$0xff] }
 0x657   : > { %v6051_v52 = vpack.c.bf16 %v3423_v45, %v3420_v17  ;;  %v6657_v17 = vld [vmem:[%s7592_s26 + $0x140] sm:$0xff]  ;;  %v6660_v45 = vld [vmem:[%s7592_s26 + $0x158] sm:$0xff] }
 0x659   : > { %6052 = vmatprep.subr.bf16.mxu1 %v6051_v52 }
 0x65a   : > { %6054 = vmatpush3.bf16.msra.mxu1 %v6051_v52  ;;  %v6661_v52 = vld [vmem:[%s7592_s26 + $0x160] sm:$0xff] }
 0x65b   : > { %6056 = vmatprep.subr.bf16.mxu1 %v6055_v62 }
 0x65e   : > { %6058 = vmatpush3.bf16.msra.mxu1 %v6055_v62  ;;  %v6659_v62 = vld [vmem:[%s7592_s26 + $0x150] sm:$0xff] }
 0x65f   : > { %6123 = vmatprep.subr.bf16.mxu1 %v8341_v23  ;;  %v6622_v23 = vld [vmem:[%s7592_s26 + $0x28] sm:$0xff] }
 0x661   : > { %5836 = vmatmul.mubr.f32.vlgmr.msra.gmra.mrb[160].mxu1 %v6618_v10  ;;  %v6662_v10 = vld [vmem:[%s7592_s26 + $0x168] sm:$0xff] }
 0x662   : > { %5838 = vmatprep.mubr.f32.mxu1 %v6619_v33  ;;  %6131 = vmatpush3.bf16.msra.mxu1 %v8348_v55  ;;  %v6624_v55 = vld [vmem:[%s7592_s26 + $0x38] sm:$0xff]  ;;  %v6663_v33 = vld [vmem:[%s7592_s26 + $0x170] sm:$0xff] }
 0x663   : > { %6124 = vmatprep.subr.bf16.mxu1 %v8357_v0  ;;  %v6625_v0 = vld [vmem:[%s7592_s26 + $0x40] sm:$0xff] }
 0x665   : > { %5839 = vmatmul.mubr.f32.gmra.mrb[162].mxu1 %v6620_v54  ;;  %v6664_v54 = vld [vmem:[%s7592_s26 + $0x178] sm:$0xff] }
 0x666   : > { %5841 = vmatprep.mubr.f32.mxu1 %v6621_v1  ;;  %6132 = vmatpush3.bf16.msra.mxu1 %v8364_v28  ;;  %v6626_v28 = vld [vmem:[%s7592_s26 + $0x48] sm:$0xff]  ;;  %v6665_v1 = vld [vmem:[%s7592_s26 + $0x180] sm:$0xff] }
 0x667   : > { %6125 = vmatprep.subr.bf16.mxu1 %v8372_v27  ;;  %v6627_v27 = vld [vmem:[%s7592_s26 + $0x50] sm:$0xff] }
 0x669   : > { %5842 = vmatmul.mubr.f32.gmra.mrb[164].mxu1 %v6622_v23  ;;  %v6666_v23 = vld [vmem:[%s7592_s26 + $0x188] sm:$0xff] }
 0x66a   : > { %5844 = vmatprep.mubr.f32.mxu1 %v6623_v63  ;;  %6133 = vmatpush3.bf16.msra.mxu1 %v8378_v59  ;;  %v6628_v59 = vld [vmem:[%s7592_s26 + $0x58] sm:$0xff]  ;;  %v6667_v63 = vld [vmem:[%s7592_s26 + $0x190] sm:$0xff] }
 0x66b   : > { %6126 = vmatprep.subr.bf16.mxu1 %v8384_v15  ;;  %v6629_v15 = vld [vmem:[%s7592_s26 + $0x60] sm:$0xff] }
 0x66d   : > { %5845 = vmatmul.mubr.f32.gmra.mrb[166].mxu1 %v6624_v55  ;;  %v6668_v55 = vld [vmem:[%s7592_s26 + $0x198] sm:$0xff] }
 0x66e   : > { %5847 = vmatprep.mubr.f32.mxu1 %v6625_v0  ;;  %6134 = vmatpush3.bf16.msra.mxu1 %v8390_v53  ;;  %v6630_v53 = vld [vmem:[%s7592_s26 + $0x68] sm:$0xff]  ;;  %v6669_v0 = vld [vmem:[%s7592_s26 + $0x1a0] sm:$0xff] }
 0x66f   : > { %6127 = vmatprep.subr.bf16.mxu1 %v8396_v40  ;;  %v6631_v40 = vld [vmem:[%s7592_s26 + $0x70] sm:$0xff] }
 0x671   : > { %5848 = vmatmul.mubr.f32.gmra.mrb[168].mxu1 %v6626_v28  ;;  %v6670_v28 = vld [vmem:[%s7592_s26 + $0x1a8] sm:$0xff] }
 0x672   : > { %5850 = vmatprep.mubr.f32.mxu1 %v6627_v27  ;;  %6135 = vmatpush3.bf16.msra.mxu1 %v8402_v61  ;;  %v6632_v61 = vld [vmem:[%s7592_s26 + $0x78] sm:$0xff]  ;;  %v6671_v27 = vld [vmem:[%s7592_s26 + $0x1b0] sm:$0xff] }
 0x673   : > { %6128 = vmatprep.subr.bf16.mxu1 %v8408_v21  ;;  %v6633_v21 = vld [vmem:[%s7592_s26 + $0x80] sm:$0xff] }
 0x675   : > { %5851 = vmatmul.mubr.f32.gmra.mrb[170].mxu1 %v6628_v59  ;;  %v6672_v59 = vld [vmem:[%s7592_s26 + $0x1b8] sm:$0xff] }
 0x676   : > { %5853 = vmatprep.mubr.f32.mxu1 %v6629_v15  ;;  %6136 = vmatpush3.bf16.msra.mxu1 %v8413_v35  ;;  %v6634_v35 = vld [vmem:[%s7592_s26 + $0x88] sm:$0xff]  ;;  %v6673_v15 = vld [vmem:[%s7592_s26 + $0x1c0] sm:$0xff] }
 0x677   : > { %6129 = vmatprep.subr.bf16.mxu1 %v8420_v34  ;;  %v6635_v34 = vld [vmem:[%s7592_s26 + $0x90] sm:$0xff] }
 0x679   : > { %5854 = vmatmul.mubr.f32.gmra.mrb[172].mxu1 %v6630_v53  ;;  %v6674_v53 = vld [vmem:[%s7592_s26 + $0x1c8] sm:$0xff] }
 0x67a   : > { %5856 = vmatprep.mubr.f32.mxu1 %v6631_v40  ;;  %6137 = vmatpush3.bf16.msra.mxu1 %v8425_v32  ;;  %v6637_v32 = vld [vmem:[%s7592_s26 + $0xa0] sm:$0xff]  ;;  %v6675_v40 = vld [vmem:[%s7592_s26 + $0x1d0] sm:$0xff] }
 0x67b   : > { %6130 = vmatprep.subr.bf16.mxu1 %v8432_v7  ;;  %v6638_v7 = vld [vmem:[%s7592_s26 + $0xa8] sm:$0xff] }
 0x67d   : > { %5857 = vmatmul.mubr.f32.gmra.mrb[174].mxu1 %v6632_v61  ;;  %v6676_v61 = vld [vmem:[%s7592_s26 + $0x1d8] sm:$0xff] }
 0x67e   : > { %5859 = vmatprep.mubr.f32.mxu1 %v6633_v21  ;;  %6138 = vmatpush3.bf16.msra.mxu1 %v8437_v14  ;;  %v6641_v14 = vld [vmem:[%s7592_s26 + $0xc0] sm:$0xff] }
 0x67f   : > { %v6677_v21 = vld [vmem:[%s7592_s26 + $0x1e0] sm:$0xff] }
 0x681   : > { %5860 = vmatmul.mubr.f32.gmra.mrb[176].mxu1 %v6634_v35  ;;  %v6678_v35 = vld [vmem:[%s7592_s26 + $0x1e8] sm:$0xff] }
 0x682   : > { %5862 = vmatprep.mubr.f32.mxu1 %v6635_v34  ;;  %v6679_v34 = vld [vmem:[%s7592_s26 + $0x1f0] sm:$0xff] }
 0x685   : > { %5863 = vmatmul.mubr.f32.gmra.mrb[178].mxu1 %v6636_v36  ;;  %v6680_v36 = vld [vmem:[%s7592_s26 + $0x1f8] sm:$0xff]  ;;  %s6794_s26 = sshll.u32 %s6861_s21, 4  ;;  %s6795_s26 = int_to_ptr.vmem [resolvable:$false] %s6794_s26 }
 0x686   : > { %5865 = vmatprep.mubr.f32.mxu1 %v6637_v32  ;;  %s6796_s13 = scalar_lea.vmem %s6795_s26, 4096 }
 0x689   : > { %5866 = vmatmul.mubr.f32.gmra.mrb[180].mxu1 %v6638_v7  ;;  %v9193_v7 = vld [vmem:[#allocation29_spill] sm:$0xff] }
 0x68a   : > { %5868 = vmatprep.mubr.f32.mxu1 %v6639_v37 }
 0x68d   : > { %5869 = vmatmul.mubr.f32.gmra.mrb[182].mxu1 %v6640_v24 }
 0x68e   : > { %5871 = vmatprep.mubr.f32.mxu1 %v6641_v14  ;;  %v9194_v14 = vld [vmem:[#allocation30_spill] sm:$0xff] }
 0x691   : > { %5872 = vmatmul.mubr.f32.gmra.mrb[184].mxu1 %v6642_v46 }
 0x692   : > { %5874 = vmatprep.mubr.f32.mxu1 %v6643_v38 }
 0x695   : > { %5875 = vmatmul.mubr.f32.gmra.mrb[186].mxu1 %v6644_v58 }
 0x696   : > { %5877 = vmatprep.mubr.f32.mxu1 %v6645_v31  ;;  %v9195_v31 = vld [vmem:[#allocation31_spill] sm:$0xff] }
 0x699   : > { %5878 = vmatmul.mubr.f32.gmra.mrb[188].mxu1 %v6646_v20 }
 0x69a   : > { %5880 = vmatprep.mubr.f32.mxu1 %v6647_v6 }
 0x69d   : > { %5881 = vmatmul.mubr.f32.gmra.mrb[190].mxu1 %v6648_v43  ;;  %v9196_v43 = vld [vmem:[#allocation32_spill] sm:$0xff] }
 0x69e   : > { %5883 = vmatprep.mubr.f32.mxu1 %v6649_v18 }
 0x6a1   : > { %5884 = vmatmul.mubr.f32.gmra.mrb[192].mxu1 %v6650_v56 }
 0x6a2   : > { %5886 = vmatprep.mubr.f32.mxu1 %v6651_v11 }
 0x6a5   : > { %5887 = vmatmul.mubr.f32.gmra.mrb[194].mxu1 %v6652_v48  ;;  %v9197_v48 = vld [vmem:[#allocation33_spill] sm:$0xff] }
 0x6a6   : > { %5889 = vmatprep.mubr.f32.mxu1 %v6653_v4 }
 0x6a9   : > { %5890 = vmatmul.mubr.f32.gmra.mrb[196].mxu1 %v6654_v60 }
 0x6aa   : > { %5892 = vmatprep.mubr.f32.mxu1 %v6655_v44  ;;  %v9198_v44 = vld [vmem:[#allocation34_spill] sm:$0xff] }
 0x6ad   : > { %5893 = vmatmul.mubr.f32.gmra.mrb[198].mxu1 %v6656_v16 }
 0x6ae   : > { %5895 = vmatprep.mubr.f32.mxu1 %v6657_v17 }
 0x6b1   : > { %5896 = vmatmul.mubr.f32.gmra.mrb[200].mxu1 %v6658_v51  ;;  %v9199_v51 = vld [vmem:[#allocation35_spill] sm:$0xff] }
 0x6b2   : > { %5898 = vmatprep.mubr.f32.mxu1 %v6659_v62 }
 0x6b5   : > { %5899 = vmatmul.mubr.f32.gmra.mrb[202].mxu1 %v6660_v45 }
 0x6b6   : > { %5901 = vmatprep.mubr.f32.mxu1 %v6661_v52  ;;  %v9200_v52 = vld [vmem:[#allocation36_spill] sm:$0xff] }
 0x6b9   : > { %5902 = vmatmul.mubr.f32.gmra.mrb[204].mxu1 %v6662_v10 }
 0x6ba   : > { %5904 = vmatprep.mubr.f32.mxu1 %v6663_v33 }
 0x6bd   : > { %5905 = vmatmul.mubr.f32.gmra.mrb[206].mxu1 %v6664_v54 }
 0x6be   : > { %5907 = vmatprep.mubr.f32.mxu1 %v6665_v1  ;;  %v9201_v1 = vld [vmem:[#allocation37_spill] sm:$0xff] }
 0x6c1   : > { %5908 = vmatmul.mubr.f32.gmra.mrb[208].mxu1 %v6666_v23 }
 0x6c2   : > { %5910 = vmatprep.mubr.f32.mxu1 %v6667_v63 }
 0x6c5   : > { %5911 = vmatmul.mubr.f32.gmra.mrb[210].mxu1 %v6668_v55  ;;  %v9202_v55 = vld [vmem:[#allocation38_spill] sm:$0xff] }
 0x6c6   : > { %5913 = vmatprep.mubr.f32.mxu1 %v6669_v0 }
 0x6c9   : > { %5914 = vmatmul.mubr.f32.gmra.mrb[212].mxu1 %v6670_v28 }
 0x6ca   : > { %5916 = vmatprep.mubr.f32.mxu1 %v6671_v27 }
 0x6cd   : > { %5917 = vmatmul.mubr.f32.gmra.mrb[214].mxu1 %v6672_v59  ;;  %v9203_v59 = vld [vmem:[#allocation39_spill] sm:$0xff] }
 0x6ce   : > { %5919 = vmatprep.mubr.f32.mxu1 %v6673_v15 }
 0x6d1   : > { %5920 = vmatmul.mubr.f32.gmra.mrb[216].mxu1 %v6674_v53 }
 0x6d2   : > { %5922 = vmatprep.mubr.f32.mxu1 %v6675_v40  ;;  %v9204_v40 = vld [vmem:[#allocation40_spill] sm:$0xff] }
 0x6d5   : > { %5923 = vmatmul.mubr.f32.gmra.mrb[218].mxu1 %v6676_v61 }
 0x6d6   : > { %5925 = vmatprep.mubr.f32.mxu1 %v6677_v21 }
 0x6d9   : > { %5926 = vmatmul.mubr.f32.gmra.mrb[220].mxu1 %v6678_v35 }
 0x6da   : > { %5928 = vmatprep.mubr.f32.mxu1 %v6679_v34  ;;  %v9205_v34 = vld [vmem:[#allocation41_spill] sm:$0xff] }
 0x6dd   : > { %5929 = vmatmul.mubr.f32.gmra.mrb[222].mxu1 %v6680_v36 }
 0x6de   : > { %4230 = vmatprep.mubr.bf16.mxu1 %v8512_v9 }
 0x734   : > { %v5837_v32 = vpop.f32.mrb[160].mxu1 }
 0x735   : > { %v3821_v37 = vmul.f32 %v5837_v32, %v9193_v7  ;;  %v3501_v24 = vpop.f32.mrb[161].mxu1  ;;  %v9206_v7 = vld [vmem:[#allocation42_spill] sm:$0xff] }
 0x736   : > { %v3820_v46 = vmul.f32 %v3501_v24, %v9194_v14 }
 0x738   : > { %v6061_v38 = vpack.c.bf16 %v3821_v37, %v3820_v46  ;;  %v5840_v58 = vpop.f32.mrb[162].mxu1  ;;  %v9207_v46 = vld [vmem:[#allocation43_spill] sm:$0xff] }
 0x739   : > { %v3823_v20 = vmul.f32 %v5840_v58, %v9195_v31  ;;  %v3511_v6 = vpop.f32.mrb[163].mxu1 }
 0x73a   : > { %v3822_v18 = vmul.f32 %v3511_v6, %v9196_v43 }
 0x73c   : > { %v6065_v56 = vpack.c.bf16 %v3823_v20, %v3822_v18  ;;  %v5843_v11 = vpop.f32.mrb[164].mxu1  ;;  %v9208_v20 = vld [vmem:[#allocation44_spill] sm:$0xff] }
 0x73d   : > { %v3825_v4 = vmul.f32 %v5843_v11, %v9197_v48  ;;  %v3521_v60 = vpop.f32.mrb[165].mxu1 }
 0x73e   : > { %v3824_v9 = vmul.f32 %v3521_v60, %v9198_v44 }
 0x740   : > { %v6069_v16 = vpack.c.bf16 %v3825_v4, %v3824_v9  ;;  %v5846_v17 = vpop.f32.mrb[166].mxu1 }
 0x741   : > { %v3827_v62 = vmul.f32 %v5846_v17, %v9199_v51  ;;  %v3531_v45 = vpop.f32.mrb[167].mxu1 }
 0x742   : > { %v3826_v10 = vmul.f32 %v3531_v45, %v9200_v52 }
 0x744   : > { %v6073_v33 = vpack.c.bf16 %v3827_v62, %v3826_v10  ;;  %v5849_v54 = vpop.f32.mrb[168].mxu1 }
 0x745   : > { %v3829_v23 = vmul.f32 %v5849_v54, %v9201_v1  ;;  %v3541_v63 = vpop.f32.mrb[169].mxu1 }
 0x746   : > { %v3828_v0 = vmul.f32 %v3541_v63, %v9202_v55 }
 0x748   : > { %v6077_v28 = vpack.c.bf16 %v3829_v23, %v3828_v0  ;;  %v5852_v27 = vpop.f32.mrb[170].mxu1 }
 0x749   : > { %v3831_v15 = vmul.f32 %v5852_v27, %v9203_v59  ;;  %v3551_v53 = vpop.f32.mrb[171].mxu1  ;;  %v9209_v59 = vld [vmem:[#allocation45_spill] sm:$0xff] }
 0x74a   : > { %v3830_v61 = vmul.f32 %v3551_v53, %v9204_v40 }
 0x74c   : > { %v6081_v21 = vpack.c.bf16 %v3831_v15, %v3830_v61  ;;  %v5855_v35 = vpop.f32.mrb[172].mxu1  ;;  %v9211_v61 = vld [vmem:[#allocation47_spill] sm:$0xff] }
 0x74d   : > { %v3833_v36 = vmul.f32 %v5855_v35, %v9205_v34  ;;  %v3561_v32 = vpop.f32.mrb[173].mxu1 }
 0x74e   : > { %v3832_v37 = vmul.f32 %v3561_v32, %v9206_v7  ;;  %v9213_v32 = vld [vmem:[#allocation49_spill] sm:$0xff] }
 0x750   : > { %v6085_v24 = vpack.c.bf16 %v3833_v36, %v3832_v37  ;;  %v5858_v14 = vpop.f32.mrb[174].mxu1 }
 0x751   : > { %v8632_v58 = vmul.f32 %v5858_v14, %v9207_v46  ;;  %v3571_v31 = vpop.f32.mrb[175].mxu1  ;;  %v9214_v14 = vld [vmem:[#allocation50_spill] sm:$0xff] }
 0x752   : > { %v3834_v6 = vmul.f32 %v3571_v31, %v9208_v20  ;;  %v9215_v31 = vld [vmem:[#allocation51_spill] sm:$0xff] }
 0x754   : > { %v6089_v43 = vpack.c.bf16 %v8632_v58, %v3834_v6  ;;  %v5861_v18 = vpop.f32.mrb[176].mxu1  ;;  %v9216_v6 = vld [vmem:[#allocation52_spill] sm:$0xff] }
 0x755   : > { %v3837_v11 = vmul.f32 %v5861_v18, %v7922_v57  ;;  %v3581_v48 = vpop.f32.mrb[177].mxu1 }
 0x756   : > { %v3836_v4 = vmul.f32 %v3581_v48, %v7926_v42  ;;  %v6682_v48 = vld [vmem:[%s7032_s27 + $0x28] sm:$0xff] }
 0x758   : > { %v6059_v60 = vpack.c.bf16 %v3837_v11, %v3836_v4  ;;  %v5864_v44 = vpop.f32.mrb[178].mxu1  ;;  %v6681_v11 = vld [vmem:[%s7032_s27] sm:$0xff] }
 0x759   : > { %v3839_v9 = vmul.f32 %v5864_v44, %v7934_v50  ;;  %v3591_v17 = vpop.f32.mrb[179].mxu1 }
 0x75a   : > { %v3838_v51 = vmul.f32 %v3591_v17, %v7938_v3  ;;  %6060 = vmatprep.subr.bf16.mxu0 %v6059_v60  ;;  %v9217_v60 = vld [vmem:[#allocation53_spill] sm:$0xff]  ;;  %v9218_v17 = vld [vmem:[#allocation54_spill] sm:$0xff] }
 0x75b   : > { %6062 = vmatpush3.bf16.msra.mxu0 %v6061_v38 }
 0x75c   : > { %v6063_v62 = vpack.c.bf16 %v3839_v9, %v3838_v51  ;;  %v5867_v45 = vpop.f32.mrb[180].mxu1 }
 0x75d   : > { %v3841_v52 = vmul.f32 %v5867_v45, %v7944_v5  ;;  %v3601_v10 = vpop.f32.mrb[181].mxu1  ;;  %v6684_v45 = vld [vmem:[%s7032_s27 + $0x48] sm:$0xff] }
 0x75e   : > { %v3840_v54 = vmul.f32 %v3601_v10, %v7951_v2  ;;  %6064 = vmatprep.subr.bf16.mxu0 %v6063_v62  ;;  %v6683_v62 = vld [vmem:[%s7032_s27 + $0x20] sm:$0xff] }
 0x75f   : > { %6066 = vmatpush3.bf16.msra.mxu0 %v6065_v56 }
 0x760   : > { %v6067_v57 = vpack.c.bf16 %v3841_v52, %v3840_v54  ;;  %v5870_v42 = vpop.f32.mrb[182].mxu1  ;;  %v9219_v54 = vld [vmem:[#allocation55_spill] sm:$0xff] }
 0x761   : > { %v3843_v1 = vmul.f32 %v5870_v42, %v7957_v47  ;;  %v3611_v23 = vpop.f32.mrb[183].mxu1 }
 0x762   : > { %v3842_v50 = vmul.f32 %v3611_v23, %v7964_v30  ;;  %6068 = vmatprep.subr.bf16.mxu0 %v6067_v57 }
 0x763   : > { %6070 = vmatpush3.bf16.msra.mxu0 %v6069_v16 }
 0x764   : > { %v6071_v3 = vpack.c.bf16 %v3843_v1, %v3842_v50  ;;  %v5873_v38 = vpop.f32.mrb[184].mxu1  ;;  %v9220_v1 = vld [vmem:[#allocation56_spill] sm:$0xff]  ;;  %v6685_v50 = vld [vmem:[%s7032_s27 + $0x40] sm:$0xff] }
 0x765   : > { %v3845_v63 = vmul.f32 %v5873_v38, %v7970_v12  ;;  %v3621_v55 = vpop.f32.mrb[185].mxu1  ;;  %v9210_v12 = vld [vmem:[#allocation46_spill] sm:$0xff] }
 0x766   : > { %v3844_v5 = vmul.f32 %v3621_v55, %v7977_v22  ;;  %6072 = vmatprep.subr.bf16.mxu0 %v6071_v3  ;;  %v6686_v3 = vld [vmem:[%s7032_s27 + $0x68] sm:$0xff]  ;;  %v9221_v55 = vld [vmem:[#allocation57_spill] sm:$0xff] }
 0x767   : > { %6074 = vmatpush3.bf16.msra.mxu0 %v6073_v33 }
 0x768   : > { %v6075_v2 = vpack.c.bf16 %v3845_v63, %v3844_v5  ;;  %v5876_v56 = vpop.f32.mrb[186].mxu1 }
 0x769   : > { %v3847_v0 = vmul.f32 %v5876_v56, %v7983_v19  ;;  %v3631_v27 = vpop.f32.mrb[187].mxu1  ;;  %v9212_v19 = vld [vmem:[#allocation48_spill] sm:$0xff]  ;;  %v9222_v56 = vld [vmem:[#allocation58_spill] sm:$0xff] }
 0x76a   : > { %v3846_v47 = vmul.f32 %v3631_v27, %v7990_v39  ;;  %6076 = vmatprep.subr.bf16.mxu0 %v6075_v2  ;;  %v6687_v27 = vld [vmem:[%s7032_s27 + $0x60] sm:$0xff] }
 0x76b   : > { %6078 = vmatpush3.bf16.msra.mxu0 %v6077_v28 }
 0x76c   : > { %v6079_v30 = vpack.c.bf16 %v3847_v0, %v3846_v47  ;;  %v5879_v16 = vpop.f32.mrb[188].mxu1  ;;  %v6688_v47 = vld [vmem:[%s7032_s27 + $0x88] sm:$0xff] }
 0x76d   : > { %v3849_v15 = vmul.f32 %v5879_v16, %v9209_v59  ;;  %v3641_v53 = vpop.f32.mrb[189].mxu1  ;;  %v9223_v59 = vld [vmem:[#allocation59_spill] sm:$0xff] }
 0x76e   : > { %v3848_v40 = vmul.f32 %v3641_v53, %v9210_v12  ;;  %6080 = vmatprep.subr.bf16.mxu0 %v6079_v30  ;;  %v9224_v12 = vld [vmem:[#allocation60_spill] sm:$0xff] }
 0x76f   : > { %6082 = vmatpush3.bf16.msra.mxu0 %v6081_v21 }
 0x770   : > { %v6083_v22 = vpack.c.bf16 %v3849_v15, %v3848_v40  ;;  %v5882_v33 = vpop.f32.mrb[190].mxu1 }
 0x771   : > { %v3851_v35 = vmul.f32 %v5882_v33, %v9211_v61  ;;  %v3651_v34 = vpop.f32.mrb[191].mxu1  ;;  %v6690_v33 = vld [vmem:[%s7032_s27 + $0xa8] sm:$0xff] }
 0x772   : > { %v3850_v36 = vmul.f32 %v3651_v34, %v9212_v19  ;;  %6084 = vmatprep.subr.bf16.mxu0 %v6083_v22  ;;  %v6689_v22 = vld [vmem:[%s7032_s27 + $0x80] sm:$0xff]  ;;  %v9225_v34 = vld [vmem:[#allocation61_spill] sm:$0xff] }
 0x773   : > { %6086 = vmatpush3.bf16.msra.mxu0 %v6085_v24 }
 0x774   : > { %v6087_v39 = vpack.c.bf16 %v3851_v35, %v3850_v36  ;;  %v5885_v28 = vpop.f32.mrb[192].mxu1 }
 0x775   : > { %v8653_v7 = vmul.f32 %v5885_v28, %v9213_v32  ;;  %v3661_v37 = vpop.f32.mrb[193].mxu1  ;;  %v6691_v32 = vld [vmem:[%s7032_s27 + $0xa0] sm:$0xff] }
 0x776   : > { %v8656_v46 = vmul.f32 %v3661_v37, %v9214_v14  ;;  %6088 = vmatprep.subr.bf16.mxu0 %v6087_v39  ;;  %v9226_v39 = vld [vmem:[#allocation62_spill] sm:$0xff]  ;;  %v6692_v37 = vld [vmem:[%s7032_s27 + $0xc8] sm:$0xff] }
 0x777   : > { %6090 = vmatpush3.bf16.msra.mxu0 %v6089_v43 }
 0x778   : > { %v6093_v21 = vpack.c.bf16 %v8653_v7, %v8656_v46  ;;  %v5888_v58 = vpop.f32.mrb[194].mxu1  ;;  %v6700_v7 = vld [vmem:[%s7032_s27 + $0x148] sm:$0xff] }
 0x779   : > { %v8661_v20 = vmul.f32 %v5888_v58, %v9215_v31  ;;  %v3671_v24 = vpop.f32.mrb[195].mxu1  ;;  %v9227_v31 = vld [vmem:[#allocation63_spill] sm:$0xff] }
 0x77a   : > { %v8664_v18 = vmul.f32 %v3671_v24, %v9216_v6  ;;  %3949 = vmatmul.mubr.f32.vlgmr.msra.gmra.mrb[176].mxu0 %v6681_v11  ;;  %v9228_v11 = vld [vmem:[#allocation64_spill] sm:$0xff] }
 0x77b   : > { %3953 = vmatprep.mubr.f32.mxu0 %v6682_v48 }
 0x77c   : > { %v6097_v43 = vpack.c.bf16 %v8661_v20, %v8664_v18  ;;  %v5891_v4 = vpop.f32.mrb[196].mxu1  ;;  %v6702_v20 = vld [vmem:[%s7032_s27 + $0x168] sm:$0xff] }
 0x77d   : > { %v8671_v44 = vmul.f32 %v5891_v4, %v9217_v60  ;;  %v3681_v9 = vpop.f32.mrb[197].mxu1  ;;  %v6693_v4 = vld [vmem:[%s7032_s27 + $0xc0] sm:$0xff]  ;;  %v6694_v60 = vld [vmem:[%s7032_s27 + $0xe8] sm:$0xff] }
 0x77e   : > { %v8674_v51 = vmul.f32 %v3681_v9, %v9218_v17  ;;  %3954 = vmatmul.mubr.f32.gmra.mrb[178].mxu0 %v6683_v62  ;;  %v9229_v62 = vld [vmem:[#allocation65_spill] sm:$0xff] }
 0x77f   : > { %3958 = vmatprep.mubr.f32.mxu0 %v6684_v45 }
 0x780   : > { %v6101_v52 = vpack.c.bf16 %v8671_v44, %v8674_v51  ;;  %v5894_v10 = vpop.f32.mrb[198].mxu1  ;;  %v6704_v44 = vld [vmem:[%s7032_s27 + $0x188] sm:$0xff] }
 0x781   : > { %v8681_v57 = vmul.f32 %v5894_v10, %v9219_v54  ;;  %v3691_v42 = vpop.f32.mrb[199].mxu1  ;;  %v9230_v54 = vld [vmem:[#allocation66_spill] sm:$0xff] }
 0x782   : > { %v8684_v23 = vmul.f32 %v3691_v42, %v9220_v1  ;;  %3959 = vmatmul.mubr.f32.gmra.mrb[180].mxu0 %v6685_v50  ;;  %v6695_v1 = vld [vmem:[%s7032_s27 + $0xe0] sm:$0xff]  ;;  %v6696_v50 = vld [vmem:[%s7032_s27 + $0x108] sm:$0xff] }
 0x783   : > { %3963 = vmatprep.mubr.f32.mxu0 %v6686_v3 }
 0x784   : > { %v6105_v38 = vpack.c.bf16 %v8681_v57, %v8684_v23  ;;  %v5897_v63 = vpop.f32.mrb[200].mxu1  ;;  %v6706_v57 = vld [vmem:[%s7032_s27 + $0x1a8] sm:$0xff] }
 0x785   : > { %v8691_v5 = vmul.f32 %v5897_v63, %v9221_v55  ;;  %v3701_v2 = vpop.f32.mrb[201].mxu1  ;;  %v9231_v55 = vld [vmem:[#allocation67_spill] sm:$0xff] }
 0x786   : > { %v8694_v0 = vmul.f32 %v3701_v2, %v9222_v56  ;;  %3964 = vmatmul.mubr.f32.gmra.mrb[182].mxu0 %v6687_v27  ;;  %v9232_v27 = vld [vmem:[#allocation68_spill] sm:$0xff] }
 0x787   : > { %3968 = vmatprep.mubr.f32.mxu0 %v6688_v47 }
 0x788   : > { %v6109_v30 = vpack.c.bf16 %v8691_v5, %v8694_v0  ;;  %v5900_v16 = vpop.f32.mrb[202].mxu1  ;;  %v6708_v5 = vld [vmem:[%s7032_s27 + $0x1c8] sm:$0xff] }
 0x789   : > { %v8701_v15 = vmul.f32 %v5900_v16, %v9223_v59  ;;  %v3711_v53 = vpop.f32.mrb[203].mxu1  ;;  %v6697_v16 = vld [vmem:[%s7032_s27 + $0x100] sm:$0xff]  ;;  %v6698_v59 = vld [vmem:[%s7032_s27 + $0x128] sm:$0xff] }
 0x78a   : > { %v8704_v40 = vmul.f32 %v3711_v53, %v9224_v12  ;;  %3969 = vmatmul.mubr.f32.gmra.mrb[184].mxu0 %v6689_v22  ;;  %v9233_v22 = vld [vmem:[#allocation20_spill] sm:$0xff] }
 0x78b   : > { %3973 = vmatprep.mubr.f32.mxu0 %v6690_v33 }
 0x78c   : > { %v6113_v61 = vpack.c.bf16 %v8701_v15, %v8704_v40  ;;  %v5903_v35 = vpop.f32.mrb[204].mxu1  ;;  %v6710_v15 = vld [vmem:[%s7032_s27 + $0x1e8] sm:$0xff] }
 0x78d   : > { %v8711_v19 = vmul.f32 %v5903_v35, %v9225_v34  ;;  %v3721_v36 = vpop.f32.mrb[205].mxu1  ;;  %v9234_v34 = vld [vmem:[#allocation18_spill] sm:$0xff] }
 0x78e   : > { %v8714_v28 = vmul.f32 %v3721_v36, %v9226_v39  ;;  %3974 = vmatmul.mubr.f32.gmra.mrb[186].mxu0 %v6691_v32  ;;  %v6699_v39 = vld [vmem:[%s7032_s27 + $0x120] sm:$0xff]  ;;  %v9235_v32 = vld [vmem:[#allocation19_spill] sm:$0xff] }
 0x78f   : > { %3978 = vmatprep.mubr.f32.mxu0 %v6692_v37 }
 0x790   : > { %v6117_v14 = vpack.c.bf16 %v8711_v19, %v8714_v28  ;;  %v5906_v58 = vpop.f32.mrb[206].mxu1  ;;  %v6714_v19 = vld [vmem:[%s7032_s27 + $0x10] sm:$0xff]  ;;  %v6715_v28 = vld [vmem:[%s7032_s27 + $0x38] sm:$0xff] }
 0x791   : > { %v8721_v24 = vmul.f32 %v5906_v58, %v9227_v31  ;;  %v3731_v6 = vpop.f32.mrb[207].mxu1  ;;  %v9236_v31 = vld [vmem:[#allocation17_spill] sm:$0xff] }
 0x792   : > { %v8724_v48 = vmul.f32 %v3731_v6, %v9228_v11  ;;  %3979 = vmatmul.mubr.f32.gmra.mrb[188].mxu0 %v6693_v4  ;;  %v6701_v11 = vld [vmem:[%s7032_s27 + $0x140] sm:$0xff]  ;;  %v9237_v4 = vld [vmem:[#allocation24_spill] sm:$0xff] }
 0x793   : > { %3983 = vmatprep.mubr.f32.mxu0 %v6694_v60 }
 0x794   : > { %v6121_v9 = vpack.c.bf16 %v8721_v24, %v8724_v48  ;;  %v5909_v17 = vpop.f32.mrb[208].mxu1  ;;  %v6717_v24 = vld [vmem:[%s9014_s7 + $0x48] sm:$0xff]   ;;  %v6718_v48 = vld [vmem:[%s7032_s27 + $0x30] sm:$0xff] }
 0x795   : > { %v3869_v45 = vmul.f32 %v5909_v17, %v9229_v62  ;;  %v3741_v10 = vpop.f32.mrb[209].mxu1  ;;  %v9238_v62 = vld [vmem:[#allocation22_spill] sm:$0xff] }
 0x796   : > { %v3868_v42 = vmul.f32 %v3741_v10, %v9230_v54  ;;  %3984 = vmatmul.mubr.f32.gmra.mrb[190].mxu0 %v6695_v1  ;;  %v6703_v10 = vld [vmem:[%s7032_s27 + $0x160] sm:$0xff]  ;;  %v9239_v54 = vld [vmem:[#allocation23_spill] sm:$0xff] }
 0x797   : > { %3988 = vmatprep.mubr.f32.mxu0 %v6696_v50  ;;  %v9240_v50 = vld [vmem:[#allocation21_spill] sm:$0xff] }
 0x798   : > { %v6091_v3 = vpack.c.bf16 %v3869_v45, %v3868_v42  ;;  %v5912_v63 = vpop.f32.mrb[210].mxu1 }
 0x799   : > { %v3871_v2 = vmul.f32 %v5912_v63, %v9231_v55  ;;  %v3751_v56 = vpop.f32.mrb[211].mxu1  ;;  %v6705_v63 = vld [vmem:[%s7032_s27 + $0x180] sm:$0xff]  ;;  %v9241_v55 = vld [vmem:[#allocation28_spill] sm:$0xff] }
 0x79a   : > { %v3870_v47 = vmul.f32 %v3751_v56, %v9232_v27  ;;  %3989 = vmatmul.mubr.f32.gmra.mrb[192].mxu0 %v6697_v16  ;;  %6092 = vmatprep.subr.bf16.mxu0 %v6091_v3  ;;  %v9242_v27 = vld [vmem:[#allocation26_spill] sm:$0xff] }
 0x79b   : > { %6094 = vmatpush3.bf16.msra.mxu0 %v6093_v21  ;;  %3993 = vmatprep.mubr.f32.mxu0 %v6698_v59  ;;  %v6707_v16 = vld [vmem:[%s7032_s27 + $0x1a0] sm:$0xff]  ;;  %v9243_v59 = vld [vmem:[#allocation27_spill] sm:$0xff] }
 0x79c   : > { %v6095_v53 = vpack.c.bf16 %v3871_v2, %v3870_v47  ;;  %v5915_v12 = vpop.f32.mrb[212].mxu1 }
 0x79d   : > { %v3873_v33 = vmul.f32 %v5915_v12, %v9233_v22  ;;  %v3761_v35 = vpop.f32.mrb[213].mxu1  ;;  %v9244_v22 = vld [vmem:[#allocation25_spill] sm:$0xff] }
 0x79e   : > { %v3872_v36 = vmul.f32 %v3761_v35, %v9234_v34  ;;  %3994 = vmatmul.mubr.f32.gmra.mrb[194].mxu0 %v6699_v39  ;;  %6096 = vmatprep.subr.bf16.mxu0 %v6095_v53  ;;  %v6709_v35 = vld [vmem:[%s7032_s27 + $0x1c0] sm:$0xff]  ;;  %v6712_v34 = vld [vmem:[%s7032_s27 + $0x18] sm:$0xff]  ;;  %v6720_v39 = vld [vmem:[%s9014_s7 + $0x8] sm:$0xff]  }
 0x79f   : > { %6098 = vmatpush3.bf16.msra.mxu0 %v6097_v43  ;;  %3998 = vmatprep.mubr.f32.mxu0 %v6700_v7  ;;  %v6721_v7 = vld [vmem:[%s9014_s7 + $0x50] sm:$0xff]  }
 0x7a0   : > { %v6099_v46 = vpack.c.bf16 %v3873_v33, %v3872_v36  ;;  %v5918_v21 = vpop.f32.mrb[214].mxu1  ;;  %v6713_v36 = vld [vmem:[%s9014_s7 + $0x40] sm:$0xff]  }
 0x7a1   : > { %v3875_v37 = vmul.f32 %v5918_v21, %v9235_v32  ;;  %v3771_v58 = vpop.f32.mrb[215].mxu1  ;;  %v6723_v21 = vld [vmem:[%s7032_s27 + $0x78] sm:$0xff]  ;;  %v6724_v32 = vld [vmem:[%s9014_s7 + $0x10] sm:$0xff]  }
 0x7a2   : > { %v3874_v6 = vmul.f32 %v3771_v58, %v9236_v31  ;;  %3999 = vmatmul.mubr.f32.gmra.mrb[196].mxu0 %v6701_v11  ;;  %6100 = vmatprep.subr.bf16.mxu0 %v6099_v46  ;;  %v6722_v46 = vld [vmem:[%s7032_s27 + $0x50] sm:$0xff]  ;;  %v6727_v31 = vld [vmem:[%s7032_s27 + $0x98] sm:$0xff]  ;;  %v6729_v11 = vld [vmem:[%s9014_s7 + $0x60] sm:$0xff]  }
 0x7a3   : > { %6102 = vmatpush3.bf16.msra.mxu0 %v6101_v52  ;;  %4003 = vmatprep.mubr.f32.mxu0 %v6702_v20  ;;  %v6726_v58 = vld [vmem:[%s7032_s27 + $0x70] sm:$0xff] }
 0x7a4   : > { %v6103_v18 = vpack.c.bf16 %v3875_v37, %v3874_v6  ;;  %v5921_v43 = vpop.f32.mrb[216].mxu1  ;;  %v6725_v37 = vld [vmem:[%s9014_s7 + $0x58] sm:$0xff]   ;;  %v6730_v20 = vld [vmem:[%s7032_s27 + $0x90] sm:$0xff] }
 0x7a5   : > { %v3877_v60 = vmul.f32 %v5921_v43, %v9237_v4  ;;  %v3781_v17 = vpop.f32.mrb[217].mxu1  ;;  %v6728_v6 = vld [vmem:[%s9014_s7 + $0x18] sm:$0xff]   ;;  %v6732_v43 = vld [vmem:[%s9014_s7 + $0x20] sm:$0xff]   ;;  %v6733_v4 = vld [vmem:[%s9014_s7 + $0x68] sm:$0xff]  }
 0x7a6   : > { %v3876_v45 = vmul.f32 %v3781_v17, %v9238_v62  ;;  %4004 = vmatmul.mubr.f32.gmra.mrb[198].mxu0 %v6703_v10  ;;  %6104 = vmatprep.subr.bf16.mxu0 %v6103_v18  ;;  %v6731_v18 = vld [vmem:[%s7032_s27 + $0xb8] sm:$0xff]  ;;  %v6736_v62 = vld [vmem:[%s9014_s7 + $0x28] sm:$0xff]   ;;  %v6738_v10 = vld [vmem:[%s7032_s27 + $0xd0] sm:$0xff] }
 0x7a7   : > { %6106 = vmatpush3.bf16.msra.mxu0 %v6105_v38  ;;  %4008 = vmatprep.mubr.f32.mxu0 %v6704_v44  ;;  %v6735_v17 = vld [vmem:[%s7032_s27 + $0xd8] sm:$0xff] }
 0x7a8   : > { %v6107_v51 = vpack.c.bf16 %v3877_v60, %v3876_v45  ;;  %v5924_v52 = vpop.f32.mrb[218].mxu1  ;;  %v6734_v60 = vld [vmem:[%s7032_s27 + $0xb0] sm:$0xff]  ;;  %v6739_v44 = vld [vmem:[%s7032_s27 + $0xf8] sm:$0xff] }
 0x7a9   : > { %v3879_v42 = vmul.f32 %v5924_v52, %v9239_v54  ;;  %v3791_v1 = vpop.f32.mrb[219].mxu1  ;;  %v6737_v45 = vld [vmem:[%s9014_s7 + $0x70] sm:$0xff]   ;;  %v6741_v52 = vld [vmem:[%s9014_s7 + $0x78] sm:$0xff]  }
 0x7aa   : > { %v3878_v3 = vmul.f32 %v3791_v1, %v9240_v50  ;;  %4009 = vmatmul.mubr.f32.gmra.mrb[200].mxu0 %v6705_v63  ;;  %6108 = vmatprep.subr.bf16.mxu0 %v6107_v51  ;;  %v6740_v51 = vld [vmem:[%s9014_s7 + $0x30] sm:$0xff]   ;;  %v6744_v1 = vld [vmem:[%s9014_s7 + $0x38] sm:$0xff]  }
 0x7ab   : > { %6110 = vmatpush3.bf16.msra.mxu0 %v6109_v30  ;;  %4013 = vmatprep.mubr.f32.mxu0 %v6706_v57  ;;  %v6742_v54 = vld [vmem:[%s7032_s27 + $0xf0] sm:$0xff]  ;;  %v6748_v57 = vld [vmem:[%s7032_s27 + $0x158] sm:$0xff] }
 0x7ac   : > { %v6111_v23 = vpack.c.bf16 %v3879_v42, %v3878_v3  ;;  %v5927_v38 = vpop.f32.mrb[220].mxu1  ;;  %v6743_v42 = vld [vmem:[%s7032_s27 + $0x118] sm:$0xff]  ;;  %v6745_v50 = vld [vmem:[%s7032_s27 + $0x110] sm:$0xff] }
 0x7ad   : > { %v3881_v2 = vmul.f32 %v5927_v38, %v9241_v55  ;;  %v3801_v56 = vpop.f32.mrb[221].mxu1  ;;  %v6746_v3 = vld [vmem:[%s7032_s27 + $0x138] sm:$0xff]  ;;  %v6747_v63 = vld [vmem:[%s7032_s27 + $0x130] sm:$0xff] }
 0x7ae   : > { %v3880_v47 = vmul.f32 %v3801_v56, %v9242_v27  ;;  %4014 = vmatmul.mubr.f32.gmra.mrb[202].mxu0 %v6707_v16  ;;  %6112 = vmatprep.subr.bf16.mxu0 %v6111_v23  ;;  %v6749_v23 = vld [vmem:[%s7032_s27 + $0x150] sm:$0xff]  ;;  %v6750_v38 = vld [vmem:[%s7032_s27 + $0x178] sm:$0xff] }
 0x7af   : > { %6114 = vmatpush3.bf16.msra.mxu0 %v6113_v61  ;;  %4018 = vmatprep.mubr.f32.mxu0 %v6708_v5  ;;  %v6711_v61 = vld [vmem:[%s7032_s27 + $0x1e0] sm:$0xff]  ;;  %v6751_v55 = vld [vmem:[%s7032_s27 + $0x170] sm:$0xff]  ;;  %v6754_v27 = vld [vmem:[%s7032_s27 + $0x1b8] sm:$0xff] }
 0x7b0   : > { %v6115_v0 = vpack.c.bf16 %v3881_v2, %v3880_v47  ;;  %v5930_v30 = vpop.f32.mrb[222].mxu1  ;;  %v6752_v2 = vld [vmem:[%s7032_s27 + $0x198] sm:$0xff]  ;;  %v6753_v56 = vld [vmem:[%s7032_s27 + $0x190] sm:$0xff] }
 0x7b1   : > { %v3883_v53 = vmul.f32 %v5930_v30, %v9243_v59  ;;  %v3811_v12 = vpop.f32.mrb[223].mxu1  ;;  %v6755_v47 = vld [vmem:[%s7032_s27 + $0x1b0] sm:$0xff]  ;;  %v6756_v16 = vld [vmem:[%s7032_s27 + $0x1d8] sm:$0xff] }
 0x7b2   : > { %v3882_v33 = vmul.f32 %v3811_v12, %v9244_v22  ;;  %4019 = vmatmul.mubr.f32.gmra.mrb[204].mxu0 %v6709_v35  ;;  %6116 = vmatprep.subr.bf16.mxu0 %v6115_v0  ;;  %v6757_v5 = vld [vmem:[%s7032_s27 + $0x1d0] sm:$0xff]  ;;  %v6758_v0 = vld [vmem:[%s7032_s27 + $0x1f8] sm:$0xff] }
 0x7b3   : > { %6118 = vmatpush3.bf16.msra.mxu0 %v6117_v14  ;;  %4023 = vmatprep.mubr.f32.mxu0 %v6710_v15  ;;  %v6716_v14 = vld [vmem:[%s9014_s7] sm:$0xff]   ;;  %v6759_v30 = vld [vmem:[%s7032_s27 + $0x1f0] sm:$0xff] }
 0x7b4   : > { %v6119_v40 = vpack.c.bf16 %v3883_v53, %v3882_v33 }
 0x7b6   : > { %4024 = vmatmul.mubr.f32.gmra.mrb[206].mxu0 %v6711_v61  ;;  %6120 = vmatprep.subr.bf16.mxu0 %v6119_v40 }
 0x7b7   : > { %6122 = vmatpush3.bf16.msra.mxu0 %v6121_v9  ;;  %4093 = vmatprep.mubr.f32.mxu0 %v6712_v34  ;;  %v6719_v9 = vld [vmem:[%s7032_s27 + $0x58] sm:$0xff]  ;;  %s4538_s27 = sshll.u32 %s7028_s22, 7 }
 0x7b8   : > { %5383 = vmatprep.subr.bf16.mxu0 %v6713_v36  ;;  %s8917_s24 = scalar_lea.vmem [#allocation5], %s4538_s27 }
 0x7b9   : > { %s4421_s15 = sshll.u32 %s8917_s24, 4  ;;  %s8961_s15 = int_to_ptr.vmem [resolvable:$true] %s4421_s15 }
 0x7ba   : > { %4094 = vmatmul.mubr.f32.vlgmr.msra.gmra.mrb[208].mxu0 %v6714_v19  ;;  %s6790_s12 = scalar_lea.vmem %s8961_s15, 2048  ;;  %p6797_p10 = scmp.lt.s32.totalorder %s8961_s15, %s6795_s26 }
 0x7bb   : > { %4098 = vmatprep.mubr.f32.mxu0 %v6715_v28  ;;  %5384 = vmatpush3.bf16.msra.mxu0 %v6716_v14  ;;  %p6791_p6 = scmp.ne.s32.totalorder %s8961_s15, %s6790_s12  ;;  %p6798_p0 = scmp.lt.s32.totalorder %s6796_s13, %s6790_s12 }
 0x7bc   : > { %5385 = vmatprep.subr.bf16.mxu0 %v6717_v24 }
 0x7bd   : > { %p6792_p13 = pnand %p6791_p6, %p9245_p12  ;;  %p6799_p2 = por %p6798_p0, %p6797_p10 }
 0x7be   : > { %4099 = vmatmul.mubr.f32.gmra.mrb[210].mxu0 %v6718_v48 }
 0x7bf   : > { %4103 = vmatprep.mubr.f32.mxu0 %v6719_v9  ;;  %5386 = vmatpush3.bf16.msra.mxu0 %v6720_v39  ;;  %p6793_p8 = pneg %p6792_p13 }
 0x7c0   : > { %5387 = vmatprep.subr.bf16.mxu0 %v6721_v7 }
 0x7c1   : > { %p6800_p4 = pnand %p6799_p2, %p6793_p8 }
 0x7c2   : > { %4104 = vmatmul.mubr.f32.gmra.mrb[212].mxu0 %v6722_v46 }
 0x7c3   : > { %4108 = vmatprep.mubr.f32.mxu0 %v6723_v21  ;;  %5388 = vmatpush3.bf16.msra.mxu0 %v6724_v32 }
 0x7c4   : > { %5389 = vmatprep.subr.bf16.mxu0 %v6725_v37 }
 0x7c6   : > { %4109 = vmatmul.mubr.f32.gmra.mrb[214].mxu0 %v6726_v58 }
 0x7c7   : > { %4113 = vmatprep.mubr.f32.mxu0 %v6727_v31  ;;  %5390 = vmatpush3.bf16.msra.mxu0 %v6728_v6 }
 0x7c8   : > { %5391 = vmatprep.subr.bf16.mxu0 %v6729_v11 }
 0x7ca   : > { %4114 = vmatmul.mubr.f32.gmra.mrb[216].mxu0 %v6730_v20 }
 0x7cb   : > { %4118 = vmatprep.mubr.f32.mxu0 %v6731_v18  ;;  %5392 = vmatpush3.bf16.msra.mxu0 %v6732_v43 }
 0x7cc   : > { %5393 = vmatprep.subr.bf16.mxu0 %v6733_v4 }
 0x7ce   : > { %4119 = vmatmul.mubr.f32.gmra.mrb[218].mxu0 %v6734_v60 }
 0x7cf   : > { %4123 = vmatprep.mubr.f32.mxu0 %v6735_v17  ;;  %5394 = vmatpush3.bf16.msra.mxu0 %v6736_v62 }
 0x7d0   : > { %5395 = vmatprep.subr.bf16.mxu0 %v6737_v45 }
 0x7d2   : > { %4124 = vmatmul.mubr.f32.gmra.mrb[220].mxu0 %v6738_v10 }
 0x7d3   : > { %4128 = vmatprep.mubr.f32.mxu0 %v6739_v44  ;;  %5396 = vmatpush3.bf16.msra.mxu0 %v6740_v51 }
 0x7d4   : > { %5397 = vmatprep.subr.bf16.mxu0 %v6741_v52 }
 0x7d6   : > { %4129 = vmatmul.mubr.f32.gmra.mrb[222].mxu0 %v6742_v54 }
 0x7d7   : > { %4133 = vmatprep.mubr.f32.mxu0 %v6743_v42  ;;  %5398 = vmatpush3.bf16.msra.mxu0 %v6744_v1 }
 0x7da   : > { %4134 = vmatmul.mubr.f32.gmra.mrb[224].mxu0 %v6745_v50 }
 0x7db   : > { %4138 = vmatprep.mubr.f32.mxu0 %v6746_v3 }
 0x7de   : > { %4139 = vmatmul.mubr.f32.gmra.mrb[226].mxu0 %v6747_v63 }
 0x7df   : > { %4143 = vmatprep.mubr.f32.mxu0 %v6748_v57 }
 0x7e2   : > { %4144 = vmatmul.mubr.f32.gmra.mrb[228].mxu0 %v6749_v23 }
 0x7e3   : > { %4148 = vmatprep.mubr.f32.mxu0 %v6750_v38 }
 0x7e6   : > { %4149 = vmatmul.mubr.f32.gmra.mrb[230].mxu0 %v6751_v55 }
 0x7e7   : > { %4153 = vmatprep.mubr.f32.mxu0 %v6752_v2 }
 0x7ea   : > { %4154 = vmatmul.mubr.f32.gmra.mrb[232].mxu0 %v6753_v56 }
 0x7eb   : > { %4158 = vmatprep.mubr.f32.mxu0 %v6754_v27 }
 0x7ee   : > { %4159 = vmatmul.mubr.f32.gmra.mrb[234].mxu0 %v6755_v47 }
 0x7ef   : > { %4163 = vmatprep.mubr.f32.mxu0 %v6756_v16 }
 0x7f2   : > { %4164 = vmatmul.mubr.f32.gmra.mrb[236].mxu0 %v6757_v5 }
 0x7f3   : > { %4168 = vmatprep.mubr.f32.mxu0 %v6758_v0 }
 0x7f6   : > { %4169 = vmatmul.mubr.f32.gmra.mrb[238].mxu0 %v6759_v30 }
 0x7f7   : > { %4214 = vmatprep.mubr.bf16.mxu0 %v8493_v25 }
 0x84d   : > { %v5255_v59 = vpop.f32.mrb[176].mxu0 }
 0x84e   : > { %v5256_v53 = vpop.f32.mrb[177].mxu0 }
 0x84f   : > { %v5257_v12 = vadd.f32 %v5256_v53, %v5255_v59 }
 0x851   : > { %v5258_v22 = vpop.f32.mrb[178].mxu0 }
 0x852   : > { %v5259_v33 = vpop.f32.mrb[179].mxu0 }
 0x853   : > { %v5260_v35 = vadd.f32 %v5259_v33, %v5258_v22 }
 0x855   : > { %v5261_v15 = vpop.f32.mrb[180].mxu0 }
 0x856   : > { %v5262_v40 = vpop.f32.mrb[181].mxu0 }
 0x857   : > { %v5263_v61 = vadd.f32 %v5262_v40, %v5261_v15 }
 0x859   : > { %v5264_v34 = vpop.f32.mrb[182].mxu0 }
 0x85a   : > { %v5265_v36 = vpop.f32.mrb[183].mxu0 }
 0x85b   : > { %v5266_v19 = vadd.f32 %v5265_v36, %v5264_v34 }
 0x85d   : > { %v5267_v28 = vpop.f32.mrb[184].mxu0 }
 0x85e   : > { %v5268_v14 = vpop.f32.mrb[185].mxu0 }
 0x85f   : > { %v5269_v24 = vadd.f32 %v5268_v14, %v5267_v28 }
 0x861   : > { %v5270_v48 = vpop.f32.mrb[186].mxu0 }
 0x862   : > { %v5271_v9 = vpop.f32.mrb[187].mxu0 }
 0x863   : > { %v5272_v39 = vadd.f32 %v5271_v9, %v5270_v48 }
 0x865   : > { %v5273_v7 = vpop.f32.mrb[188].mxu0 }
 0x866   : > { %v5274_v25 = vpop.f32.mrb[189].mxu0 }
 0x867   : > { %v5275_v46 = vadd.f32 %v5274_v25, %v5273_v7 }
 0x869   : > { %v5276_v21 = vpop.f32.mrb[190].mxu0 }
 0x86a   : > { %v5277_v32 = vpop.f32.mrb[191].mxu0 }
 0x86b   : > { %v8868_v37 = vadd.f32 %v5277_v32, %v5276_v21 }
 0x86d   : > { %v5279_v58 = vpop.f32.mrb[192].mxu0 }
 0x86e   : > { %v5280_v31 = vpop.f32.mrb[193].mxu0 }
 0x86f   : > { %v8870_v6 = vadd.f32 %v5280_v31, %v5279_v58 }
 0x871   : > { %v5282_v11 = vpop.f32.mrb[194].mxu0 }
 0x872   : > { %v5283_v20 = vpop.f32.mrb[195].mxu0 }
 0x873   : > { %v8872_v18 = vadd.f32 %v5283_v20, %v5282_v11 }
 0x875   : > { %v5285_v43 = vpop.f32.mrb[196].mxu0 }
 0x876   : > { %v5286_v4 = vpop.f32.mrb[197].mxu0 }
 0x877   : > { %v8874_v60 = vadd.f32 %v5286_v4, %v5285_v43 }
 0x879   : > { %v5288_v17 = vpop.f32.mrb[198].mxu0 }
 0x87a   : > { %v5289_v62 = vpop.f32.mrb[199].mxu0 }
 0x87b   : > { %v8876_v45 = vadd.f32 %v5289_v62, %v5288_v17 }
 0x87d   : > { %v5291_v10 = vpop.f32.mrb[200].mxu0 }
 0x87e   : > { %v5292_v44 = vpop.f32.mrb[201].mxu0 }
 0x87f   : > { %v8878_v51 = vadd.f32 %v5292_v44, %v5291_v10 }
 0x881   : > { %v5294_v52 = vpop.f32.mrb[202].mxu0 }
 0x882   : > { %v5295_v54 = vpop.f32.mrb[203].mxu0 }
 0x883   : > { %v8880_v42 = vadd.f32 %v5295_v54, %v5294_v52 }
 0x885   : > { %v5297_v1 = vpop.f32.mrb[204].mxu0 }
 0x886   : > { %v5298_v50 = vpop.f32.mrb[205].mxu0 }
 0x887   : > { %v8882_v3 = vadd.f32 %v5298_v50, %v5297_v1 }
 0x889   : > { %v5300_v63 = vpop.f32.mrb[206].mxu0 }
 0x88a   : > { %v5301_v57 = vpop.f32.mrb[207].mxu0 }
 0x88b   : > { %v8884_v23 = vadd.f32 %v5301_v57, %v5300_v63 }
 0x88d   : > { %v5335_v38 = vpop.f32.mrb[208].mxu0 }
 0x88e   : > { %v5336_v55 = vpop.f32.mrb[209].mxu0 }
 0x88f   : > { %v5337_v2 = vadd.f32 %v5336_v55, %v5335_v38 }
 0x891   : > { %v4096_v56 = vadd.f32 %v5337_v2, %v5257_v12  ;;  %v5338_v27 = vpop.f32.mrb[210].mxu0 }
 0x892   : > { %v5339_v47 = vpop.f32.mrb[211].mxu0 }
 0x893   : > { %v5340_v16 = vadd.f32 %v5339_v47, %v5338_v27 }
 0x895   : > { %v4101_v5 = vadd.f32 %v5340_v16, %v5260_v35  ;;  %v5341_v0 = vpop.f32.mrb[212].mxu0 }
 0x896   : > { %v5342_v30 = vpop.f32.mrb[213].mxu0 }
 0x897   : > { %v4174_v59 = vpack.c.bf16 %v4101_v5, %v4096_v56  ;;  %v5343_v53 = vadd.f32 %v5342_v30, %v5341_v0 }
 0x899   : > { %v4106_v22 = vadd.f32 %v5343_v53, %v5263_v61  ;;  %v5344_v33 = vpop.f32.mrb[214].mxu0  ;;  %4215 = vmatmul.mubr.bf16.vlgmr.msra.gmra.mrb[240].mxu0 %v4174_v59 }
 0x89a   : > { %v5345_v15 = vpop.f32.mrb[215].mxu0  ;;  %4222 = vmatprep.mubr.bf16.mxu0 %v8501_v29 }
 0x89b   : > { %v5346_v40 = vadd.f32 %v5345_v15, %v5344_v33 }
 0x89d   : > { %v4111_v34 = vadd.f32 %v5346_v40, %v5266_v19  ;;  %v5347_v36 = vpop.f32.mrb[216].mxu0 }
 0x89e   : > { %v5348_v28 = vpop.f32.mrb[217].mxu0 }
 0x89f   : > { %v5349_v14 = vadd.f32 %v5348_v28, %v5347_v36  ;;  %v4175_v12 = vpack.c.bf16 %v4111_v34, %v4106_v22 }
 0x8a1   : > { %v4116_v48 = vadd.f32 %v5349_v14, %v5269_v24  ;;  %v5350_v9 = vpop.f32.mrb[218].mxu0  ;;  %4223 = vmatmul.mubr.bf16.gmra.mrb[244].mxu0 %v4175_v12 }
 0x8a2   : > { %v5351_v35 = vpop.f32.mrb[219].mxu0 }
 0x8a3   : > { %v5352_v7 = vadd.f32 %v5351_v35, %v5350_v9 }
 0x8a5   : > { %v4121_v25 = vadd.f32 %v5352_v7, %v5272_v39  ;;  %v5353_v21 = vpop.f32.mrb[220].mxu0 }
 0x8a6   : > { %v5354_v32 = vpop.f32.mrb[221].mxu0 }
 0x8a7   : > { %v4176_v61 = vpack.c.bf16 %v4121_v25, %v4116_v48  ;;  %v5355_v58 = vadd.f32 %v5354_v32, %v5353_v21 }
 0x8a9   : > { %v4126_v31 = vadd.f32 %v5355_v58, %v5275_v46  ;;  %v5356_v11 = vpop.f32.mrb[222].mxu0  ;;  %4231 = vmatmul.mubr.bf16.vlgmr.msra.gmra.mrb[224].mxu1 %v4176_v61 }
 0x8aa   : > { %v5357_v29 = vpop.f32.mrb[223].mxu0  ;;  %4238 = vmatprep.mubr.bf16.mxu1 %v8517_v26 }
 0x8ab   : > { %v5358_v19 = vadd.f32 %v5357_v29, %v5356_v11 }
 0x8ad   : > { %v4131_v20 = vadd.f32 %v5358_v19, %v8868_v37  ;;  %v5359_v43 = vpop.f32.mrb[224].mxu0 }
 0x8ae   : > { %v5360_v24 = vpop.f32.mrb[225].mxu0 }
 0x8af   : > { %v5361_v4 = vadd.f32 %v5360_v24, %v5359_v43  ;;  %v4177_v17 = vpack.c.bf16 %v4131_v20, %v4126_v31 }
 0x8b1   : > { %v4136_v62 = vadd.f32 %v5361_v4, %v8870_v6  ;;  %v5362_v39 = vpop.f32.mrb[226].mxu0  ;;  %4239 = vmatmul.mubr.bf16.gmra.mrb[228].mxu1 %v4177_v17 }
 0x8b2   : > { %v5363_v10 = vpop.f32.mrb[227].mxu0  ;;  %4246 = vmatprep.mubr.bf16.mxu1 %v8522_v49 }
 0x8b3   : > { %v5364_v46 = vadd.f32 %v5363_v10, %v5362_v39 }
 0x8b5   : > { %v4141_v44 = vadd.f32 %v5364_v46, %v8872_v18  ;;  %v5365_v52 = vpop.f32.mrb[228].mxu0 }
 0x8b6   : > { %v5366_v54 = vpop.f32.mrb[229].mxu0 }
 0x8b7   : > { %v5367_v26 = vadd.f32 %v5366_v54, %v5365_v52  ;;  %v4178_v1 = vpack.c.bf16 %v4141_v44, %v4136_v62 }
 0x8b9   : > { %v4146_v37 = vadd.f32 %v5367_v26, %v8874_v60  ;;  %v5368_v50 = vpop.f32.mrb[230].mxu0  ;;  %4247 = vmatmul.mubr.bf16.gmra.mrb[232].mxu1 %v4178_v1 }
 0x8ba   : > { %v5369_v63 = vpop.f32.mrb[231].mxu0  ;;  %4254 = vmatprep.mubr.bf16.mxu1 %v8527_v8 }
 0x8bb   : > { %v5370_v6 = vadd.f32 %v5369_v63, %v5368_v50 }
 0x8bd   : > { %v4151_v57 = vadd.f32 %v5370_v6, %v8876_v45  ;;  %v5371_v38 = vpop.f32.mrb[232].mxu0 }
 0x8be   : > { %v5372_v55 = vpop.f32.mrb[233].mxu0 }
 0x8bf   : > { %v5373_v49 = vadd.f32 %v5372_v55, %v5371_v38  ;;  %v4179_v2 = vpack.c.bf16 %v4151_v57, %v4146_v37 }
 0x8c1   : > { %v4156_v18 = vadd.f32 %v5373_v49, %v8878_v51  ;;  %v5374_v56 = vpop.f32.mrb[234].mxu0  ;;  %4255 = vmatmul.mubr.bf16.gmra.mrb[236].mxu1 %v4179_v2 }
 0x8c2   : > { %v5375_v27 = vpop.f32.mrb[235].mxu0  ;;  %4262 = vmatprep.mubr.bf16.mxu1 %v8530_v41 }
 0x8c3   : > { %v5376_v60 = vadd.f32 %v5375_v27, %v5374_v56 }
 0x8c5   : > { %v4161_v47 = vadd.f32 %v5376_v60, %v8880_v42  ;;  %v5377_v16 = vpop.f32.mrb[236].mxu0 }
 0x8c6   : > { %v5378_v5 = vpop.f32.mrb[237].mxu0 }
 0x8c7   : > { %v5379_v8 = vadd.f32 %v5378_v5, %v5377_v16  ;;  %v4180_v0 = vpack.c.bf16 %v4161_v47, %v4156_v18 }
 0x8c9   : > { %v4166_v45 = vadd.f32 %v5379_v8, %v8882_v3  ;;  %v5380_v30 = vpop.f32.mrb[238].mxu0  ;;  %4263 = vmatmul.mubr.bf16.gmra.mrb[240].mxu1 %v4180_v0 }
 0x8ca   : > { %v5381_v59 = vpop.f32.mrb[239].mxu0  ;;  %4270 = vmatprep.mubr.bf16.mxu1 %v8533_v13 }
 0x8cb   : > { %v5382_v51 = vadd.f32 %v5381_v59, %v5380_v30 }
 0x8cd   : > { %v4171_v53 = vadd.f32 %v5382_v51, %v8884_v23 }
 0x8cf   : > { %v4181_v22 = vpack.c.bf16 %v4171_v53, %v4166_v45 }
 0x8d1   : > { %4271 = vmatmul.mubr.bf16.gmra.mrb[244].mxu1 %v4181_v22 }
 0x96c   : > { %v5399_v41 = vpop.f32.mrb[240].mxu0 }
 0x96d   : > { %v5400_v33 = vpop.f32.mrb[241].mxu0 }
 0x96e   : > { %v5401_v15 = vadd.f32 %v5400_v33, %v5399_v41  ;;  %v5402_v42 = vpop.f32.mrb[242].mxu0 }
 0x96f   : > { %v5403_v40 = vpop.f32.mrb[243].mxu0 }
 0x970   : > { %v4699_v34 = vmul.f32 -1.442695, %v5401_v15  ;;  %v5404_v36 = vadd.f32 %v5403_v40, %v5402_v42 }
 0x972   : > { %6543 = vpow2.f32 %v4699_v34  ;;  %v4700_v28 = vmul.f32 -1.442695, %v5404_v36 }
 0x974   : > { %6545 = vpow2.f32 %v4700_v28  ;;  %v5405_v3 = vpop.f32.mrb[244].mxu0 }
 0x975   : > { %v5406_v14 = vpop.f32.mrb[245].mxu0 }
 0x976   : > { %v5407_v12 = vadd.f32 %v5406_v14, %v5405_v3  ;;  %v5408_v48 = vpop.f32.mrb[246].mxu0 }
 0x977   : > { %v5409_v13 = vpop.f32.mrb[247].mxu0 }
 0x978   : > { %v4701_v9 = vmul.f32 -1.442695, %v5407_v12  ;;  %v8901_v35 = vadd.f32 %v5409_v13, %v5408_v48 }
 0x97a   : > { %6547 = vpow2.f32 %v4701_v9  ;;  %v4702_v23 = vmul.f32 -1.442695, %v8901_v35 }
 0x97c   : > { %v6544_v7 = vpop.eup %6543  ;;  %6549 = vpow2.f32 %v4702_v23  ;;  %v5411_v25 = vpop.f32.mrb[224].mxu1 }
 0x97d   : > { %v4327_v21 = vadd.f32 1.0, %v6544_v7  ;;  %v5412_v32 = vpop.f32.mrb[225].mxu1 }
 0x97e   : > { %v6546_v61 = vpop.eup %6545  ;;  %v8904_v58 = vadd.f32 %v5412_v32, %v5411_v25  ;;  %v5414_v31 = vpop.f32.mrb[226].mxu1 }
 0x97f   : > { %6551 = vrcp.f32 %v4327_v21  ;;  %v4328_v11 = vadd.f32 1.0, %v6546_v61  ;;  %v5415_v29 = vpop.f32.mrb[227].mxu1 }
 0x980   : > { %v4703_v19 = vmul.f32 -1.442695, %v8904_v58  ;;  %v8907_v20 = vadd.f32 %v5415_v29, %v5414_v31 }
 0x981   : > { %6553 = vrcp.f32 %v4328_v11 }
 0x982   : > { %6555 = vpow2.f32 %v4703_v19  ;;  %v4704_v43 = vmul.f32 -1.442695, %v8907_v20 }
 0x984   : > { %v6548_v24 = vpop.eup %6547  ;;  %6557 = vpow2.f32 %v4704_v43  ;;  %v5417_v4 = vpop.f32.mrb[228].mxu1 }
 0x985   : > { %v4329_v17 = vadd.f32 1.0, %v6548_v24  ;;  %v5418_v62 = vpop.f32.mrb[229].mxu1 }
 0x986   : > { %v6550_v39 = vpop.eup %6549  ;;  %v8911_v10 = vadd.f32 %v5418_v62, %v5417_v4  ;;  %v5420_v46 = vpop.f32.mrb[230].mxu1 }
 0x987   : > { %6559 = vrcp.f32 %v4329_v17  ;;  %v4330_v44 = vadd.f32 1.0, %v6550_v39  ;;  %v5421_v52 = vpop.f32.mrb[231].mxu1 }
 0x988   : > { %v4705_v54 = vmul.f32 -1.442695, %v8911_v10  ;;  %v8914_v26 = vadd.f32 %v5421_v52, %v5420_v46 }
 0x989   : > { %v6552_v1 = vpop.eup %6551  ;;  %6561 = vrcp.f32 %v4330_v44 }
 0x98a   : > { %v4375_v37 = vmul.f32 %v6552_v1, %v5401_v15  ;;  %6563 = vpow2.f32 %v4705_v54  ;;  %v4706_v50 = vmul.f32 -1.442695, %v8914_v26 }
 0x98b   : > { %v6554_v63 = vpop.eup %6553 }
 0x98c   : > { %v6556_v6 = vpop.eup %6555  ;;  %4391 = vst [vmem:[%s8917_s24] sm:$0xff] %v4375_v37  ;;  %v4376_v57 = vmul.f32 %v6554_v63, %v5404_v36  ;;  %6565 = vpow2.f32 %v4706_v50  ;;  %v5423_v38 = vpop.f32.mrb[232].mxu1 }
 0x98d   : > { %v4331_v55 = vadd.f32 1.0, %v6556_v6  ;;  %v5424_v49 = vpop.f32.mrb[233].mxu1 }
 0x98e   : > { %v6558_v2 = vpop.eup %6557  ;;  %4392 = vst [vmem:[%s8917_s24 + $0x8] sm:$0xff] %v4376_v57  ;;  %v8921_v18 = vadd.f32 %v5424_v49, %v5423_v38  ;;  %v5426_v56 = vpop.f32.mrb[234].mxu1 }
 0x98f   : > { %6567 = vrcp.f32 %v4331_v55  ;;  %v4332_v27 = vadd.f32 1.0, %v6558_v2  ;;  %v5427_v60 = vpop.f32.mrb[235].mxu1 }
 0x990   : > { %v4707_v47 = vmul.f32 -1.442695, %v8921_v18  ;;  %v8924_v16 = vadd.f32 %v5427_v60, %v5426_v56 }
 0x991   : > { %v6560_v5 = vpop.eup %6559  ;;  %6569 = vrcp.f32 %v4332_v27 }
 0x992   : > { %v4377_v8 = vmul.f32 %v6560_v5, %v5407_v12  ;;  %6571 = vpow2.f32 %v4707_v47  ;;  %v4708_v0 = vmul.f32 -1.442695, %v8924_v16 }
 0x993   : > { %v6562_v45 = vpop.eup %6561 }
 0x994   : > { %v6564_v30 = vpop.eup %6563  ;;  %4393 = vst [vmem:[%s8917_s24 + $0x10] sm:$0xff] %v4377_v8  ;;  %v4378_v59 = vmul.f32 %v6562_v45, %v8901_v35  ;;  %6573 = vpow2.f32 %v4708_v0  ;;  %v5429_v51 = vpop.f32.mrb[236].mxu1 }
 0x995   : > { %v4333_v53 = vadd.f32 1.0, %v6564_v30  ;;  %v5430_v22 = vpop.f32.mrb[237].mxu1 }
 0x996   : > { %v6566_v41 = vpop.eup %6565  ;;  %4394 = vst [vmem:[%s8917_s24 + $0x18] sm:$0xff] %v4378_v59  ;;  %v8930_v33 = vadd.f32 %v5430_v22, %v5429_v51  ;;  %v5432_v15 = vpop.f32.mrb[238].mxu1 }
 0x997   : > { %6575 = vrcp.f32 %v4333_v53  ;;  %v4334_v42 = vadd.f32 1.0, %v6566_v41  ;;  %v5433_v40 = vpop.f32.mrb[239].mxu1 }
 0x998   : > { %v4709_v34 = vmul.f32 -1.442695, %v8930_v33  ;;  %v8933_v36 = vadd.f32 %v5433_v40, %v5432_v15 }
 0x999   : > { %v6568_v28 = vpop.eup %6567  ;;  %6577 = vrcp.f32 %v4334_v42 }
 0x99a   : > { %v4379_v3 = vmul.f32 %v6568_v28, %v8904_v58  ;;  %6579 = vpow2.f32 %v4709_v34  ;;  %v4710_v14 = vmul.f32 -1.442695, %v8933_v36 }
 0x99b   : > { %v6570_v12 = vpop.eup %6569 }
 0x99c   : > { %v6572_v48 = vpop.eup %6571  ;;  %4395 = vst [vmem:[%s8917_s24 + $0x20] sm:$0xff] %v4379_v3  ;;  %v4380_v13 = vmul.f32 %v6570_v12, %v8907_v20  ;;  %6581 = vpow2.f32 %v4710_v14  ;;  %v5435_v9 = vpop.f32.mrb[240].mxu1 }
 0x99d   : > { %v4335_v35 = vadd.f32 1.0, %v6572_v48  ;;  %v5436_v23 = vpop.f32.mrb[241].mxu1 }
 0x99e   : > { %v6574_v7 = vpop.eup %6573  ;;  %4396 = vst [vmem:[%s8917_s24 + $0x28] sm:$0xff] %v4380_v13  ;;  %v5437_v25 = vadd.f32 %v5436_v23, %v5435_v9  ;;  %v5438_v21 = vpop.f32.mrb[242].mxu1 }
 0x99f   : > { %6583 = vrcp.f32 %v4335_v35  ;;  %v4336_v32 = vadd.f32 1.0, %v6574_v7  ;;  %v5439_v61 = vpop.f32.mrb[243].mxu1 }
 0x9a0   : > { %v4711_v58 = vmul.f32 -1.442695, %v5437_v25  ;;  %v5440_v31 = vadd.f32 %v5439_v61, %v5438_v21 }
 0x9a1   : > { %v6576_v11 = vpop.eup %6575  ;;  %6585 = vrcp.f32 %v4336_v32 }
 0x9a2   : > { %v4381_v29 = vmul.f32 %v6576_v11, %v8911_v10  ;;  %6587 = vpow2.f32 %v4711_v58  ;;  %v4712_v19 = vmul.f32 -1.442695, %v5440_v31 }
 0x9a3   : > { %v6578_v20 = vpop.eup %6577 }
 0x9a4   : > { %v6580_v43 = vpop.eup %6579  ;;  %4397 = vst [vmem:[%s8917_s24 + $0x30] sm:$0xff] %v4381_v29  ;;  %v4382_v24 = vmul.f32 %v6578_v20, %v8914_v26  ;;  %6589 = vpow2.f32 %v4712_v19  ;;  %v5441_v4 = vpop.f32.mrb[244].mxu1 }
 0x9a5   : > { %v4337_v17 = vadd.f32 1.0, %v6580_v43  ;;  %v5442_v62 = vpop.f32.mrb[245].mxu1 }
 0x9a6   : > { %v6582_v39 = vpop.eup %6581  ;;  %4398 = vst [vmem:[%s8917_s24 + $0x38] sm:$0xff] %v4382_v24  ;;  %v5443_v46 = vadd.f32 %v5442_v62, %v5441_v4  ;;  %v5444_v44 = vpop.f32.mrb[246].mxu1 }
 0x9a7   : > { %6591 = vrcp.f32 %v4337_v17  ;;  %v4338_v52 = vadd.f32 1.0, %v6582_v39  ;;  %v5445_v10 = vpop.f32.mrb[247].mxu1 }
 0x9a8   : > { %v4713_v54 = vmul.f32 -1.442695, %v5443_v46  ;;  %v5446_v1 = vadd.f32 %v5445_v10, %v5444_v44 }
 0x9a9   : > { %v6584_v37 = vpop.eup %6583  ;;  %6593 = vrcp.f32 %v4338_v52 }
 0x9aa   : > { %v4383_v50 = vmul.f32 %v6584_v37, %v8921_v18  ;;  %6595 = vpow2.f32 %v4713_v54  ;;  %v4714_v26 = vmul.f32 -1.442695, %v5446_v1 }
 0x9ab   : > { %v6586_v63 = vpop.eup %6585 }
 0x9ac   : > { %v6588_v6 = vpop.eup %6587  ;;  %4399 = vst [vmem:[%s8917_s24 + $0x40] sm:$0xff] %v4383_v50  ;;  %v4384_v57 = vmul.f32 %v6586_v63, %v8924_v16  ;;  %6597 = vpow2.f32 %v4714_v26 }
 0x9ad   : > { %v4339_v38 = vadd.f32 1.0, %v6588_v6 }
 0x9ae   : > { %v6590_v55 = vpop.eup %6589  ;;  %4400 = vst [vmem:[%s8917_s24 + $0x48] sm:$0xff] %v4384_v57 }
 0x9af   : > { %6599 = vrcp.f32 %v4339_v38  ;;  %v4340_v49 = vadd.f32 1.0, %v6590_v55 }
 0x9b1   : > { %v6592_v2 = vpop.eup %6591  ;;  %6601 = vrcp.f32 %v4340_v49 }
 0x9b2   : > { %v4385_v18 = vmul.f32 %v6592_v2, %v8930_v33 }
 0x9b3   : > { %v6594_v56 = vpop.eup %6593 }
 0x9b4   : > { %v6596_v27 = vpop.eup %6595  ;;  %4401 = vst [vmem:[%s8917_s24 + $0x50] sm:$0xff] %v4385_v18  ;;  %v4386_v60 = vmul.f32 %v6594_v56, %v8933_v36 }
 0x9b5   : > { %v4341_v47 = vadd.f32 1.0, %v6596_v27 }
 0x9b6   : > { %v6598_v16 = vpop.eup %6597  ;;  %4402 = vst [vmem:[%s8917_s24 + $0x58] sm:$0xff] %v4386_v60 }
 0x9b7   : > { %6603 = vrcp.f32 %v4341_v47  ;;  %v4342_v5 = vadd.f32 1.0, %v6598_v16 }
 0x9b9   : > { %v6600_v8 = vpop.eup %6599  ;;  %6605 = vrcp.f32 %v4342_v5 }
 0x9ba   : > { %v4387_v0 = vmul.f32 %v6600_v8, %v5437_v25 }
 0x9bb   : > { %v6602_v45 = vpop.eup %6601 }
 0x9bc   : > { %4403 = vst [vmem:[%s8917_s24 + $0x60] sm:$0xff] %v4387_v0  ;;  %v4388_v30 = vmul.f32 %v6602_v45, %v5440_v31 }
 0x9be   : > { %4404 = vst [vmem:[%s8917_s24 + $0x68] sm:$0xff] %v4388_v30 }
 0x9c1   : > { %v6604_v59 = vpop.eup %6603 }
 0x9c2   : > { %v4389_v51 = vmul.f32 %v6604_v59, %v5443_v46 }
 0x9c3   : > { %v6606_v53 = vpop.eup %6605 }
 0x9c4   : > { %4405 = vst [vmem:[%s8917_s24 + $0x70] sm:$0xff] %v4389_v51  ;;  %v4390_v22 = vmul.f32 %v6606_v53, %v5446_v1 }
 0x9c6   : > { %4406 = vst [vmem:[%s8917_s24 + $0x78] sm:$0xff] %v4390_v22 }
 0x9c7   : > { %6803 = shalt.err (!%p6800_p4)
}
 0x9c8   : > { %s6804_s27 = scalar_lea.hbm %s8959_s14, 2048  ;;  %s6808_s19 = scalar_lea.hbm %s9018_s11, 4096 }
 0x9c9   : > { %p6805_p5 = scmp.ne.s32.totalorder %s8959_s14, %s6804_s27  ;;  %p6809_p1 = scmp.lt.u32.totalorder %s8959_s14, %s9018_s11 }
 0x9ca   : > { %p6810_p3 = scmp.lt.u32.totalorder %s6808_s19, %s6804_s27  ;;  %p6812_p6 = scmp.lt.u32.totalorder %s6804_s27, %s8959_s14 }
 0x9cb   : > { %p6806_p7 = pnand %p6805_p5, %p9245_p12 }
 0x9cc   : > { %p6811_p11 = por %p6810_p3, %p6809_p1 }
 0x9cd   : > { %p6807_p9 = pneg %p6806_p7 }
 0x9ce   : > { %p6813_p13 = por %p6812_p6, %p6811_p11 }
 0x9d0   : > { %p6814_p8 = pnand %p6813_p13, %p6807_p9 }
 0x9d2   : > { %6817 = shalt.err (!%p6814_p8)
}
 0x9d3   : > { %s6862_s12 = smov 128   ;;  %s6863_s26 = smov 8  }
 0x9d4   : > { %6143 = dma.vmem_to_hbm [thread:$0]  (%p9245_p12), %s8961_s15, 2048, %s8959_s14, %s4408_s16, %s6862_s12, %s6862_s12, %s6863_s26  }
 0x9d5 PF: > { %s4436_s13 = sand.u32 1, %s6844_s17   ;;  %p9246_p10 = scmp.ne.s32.totalorder %s9085_s30, 0 }
 0x9d6   : > { %p9247_p0 = scmp.ge.s32.totalorder %s6856_s20, 2  ;;  %s4437_s27 = scalar_lea.sflag [#allocation4], %s4436_s13 }
 0x9d8   : > { %p6150_p2 = pnand %p9247_p0, %p9246_p10 }
 0x9da   : > { %6839 = dma.done.wait (!%p6150_p2), %s4437_s27, 2048  }
 0x9db   : > { %6841 = vsyncadd (!%p6150_p2), %s4437_s27, 4294965248  ;;  %s9248_s24 = sld [smem:[#allocation8_spill]]  ;;  %s9249_s19 = sld [smem:[#allocation9_spill]] }
 0x9dc   : > { %p24_p4 = scmp.ge.s32.totalorder %s6949_s23, 4   ;;  %s9250_s17 = smov %s6848_s18 }
 0x9dd   : > { %s9252_s20 = smov %s6949_s23 }
 0x9de   :  { %26 = sbr.rel (!%p24_p4) target bundleno = 5 (0x5), region = 118 }
 0x9e1   : > { %s9251_s18 = smov %s9248_s24 }
 0x9e5   :  { %4442 = vsyncpa [#allocation3], 1 }
 0x9e6   :  { %4444 = vsyncpa [#allocation3 + $0x1], 1 }
 0x9e7   :  { %4445 = vsyncpa [#allocation4], 1 }
 0x9e8   :  { %4447 = vsyncpa [#allocation4 + $0x1], 1 }

</bundles_post_ra>
